<compile_context>
chip_gen: v5e
topology: v5e:2x2
jax: 0.10.0
libtpu: 0.0.40
codegen_flags: <defaults>
</compile_context>

<pallas_src>
import math
from functools import partial

import jax
import jax.numpy as jnp
from jax import lax
from jax.experimental import pallas as pl
from jax.experimental.pallas import tpu as pltpu

# ---------------- config (small synthetic shapes consistent with the module) ----------------
DIM = 32          # `dim`
DEPTH = 2         # `depth`
HEADS = 2         # `heads`
DIM_HEAD = 16     # `dim_headnumber`
FF_REPE = 4       # `ff_repe`
KSZ = 3           # `kernel`
BATCH = 2
SEQ = 16
LN_EPS = 1e-5     # MGFN custom LayerNorm eps for float32

LANE = 128


def _round_up(n, m=LANE):
    return pl.cdiv(n, m) * m


# ---------------- shared math helpers (pure jnp; usable inside and outside the kernel) -------
def _erf_poly(z):
    # Abramowitz & Stegun 7.1.26 rational approximation of erf, |err| <= 1.5e-7
    # -> matches PyTorch's exact-erf nn.GELU() within fp32 tolerance.
    sign = jnp.where(z >= 0.0, 1.0, -1.0)
    a = jnp.abs(z)
    t = 1.0 / (1.0 + 0.3275911 * a)
    poly = ((((1.061405429 * t - 1.453152027) * t + 1.421413741) * t
             - 0.284496736) * t + 0.254829592) * t
    return sign * (1.0 - poly * jnp.exp(-a * a))


def _gelu_exact(z):
    return 0.5 * z * (1.0 + _erf_poly(z * (1.0 / math.sqrt(2.0))))


def _chan_ln_ref(x, g, b):
    # MGFN LayerNorm: stats over channel axis (last axis here), biased variance.
    mean = jnp.mean(x, axis=-1, keepdims=True)
    var = jnp.mean(jnp.square(x - mean), axis=-1, keepdims=True)
    return (x - mean) / jnp.sqrt(var + LN_EPS) * g + b


# ---------------- Pallas kernel: whole Backbone for one batch element ------------------------
def make_backbone_kernel(depth, dim, heads, dim_head, hid):
    C = dim
    CP = _round_up(C)            # padded channel width (lane-dense)
    DHP = _round_up(dim_head)    # each head's q/k/v slab width (lane-aligned)
    HIDP = _round_up(hid)
    inv_C = 1.0 / C

    def kernel(x_ref, wA_ref, wB_ref, bz_ref, o_ref):
        x = x_ref[...]                                   # (T, CP) f32, padded lanes are zero
        T = x.shape[0]

        # channel-validity mask for LayerNorm variance on the padded lane axis
        lane_idx = lax.broadcasted_iota(jnp.int32, (1, CP), 1)
        cmask = (lane_idx < C).astype(jnp.float32)
        # temporal boundary masks for the k=3 conv (padding=1 -> zeros outside the sequence)
        row_idx = lax.broadcasted_iota(jnp.int32, (T, 1), 0)
        m_first = (row_idx > 0).astype(jnp.float32)      # zeroes row 0      (for x[t-1])
        m_last = (row_idx < T - 1).astype(jnp.float32)   # zeroes row T-1    (for x[t+1])

        def chan_ln(xx, g, b):
            mean = jnp.sum(xx, axis=-1, keepdims=True) * inv_C       # padded lanes are zero
            d = (xx - mean) * cmask
            var = jnp.sum(d * d, axis=-1, keepdims=True) * inv_C
            return (xx - mean) * lax.rsqrt(var + LN_EPS) * g + b

        for l in range(depth):                           # static unroll (depth is small)
            wA = wA_ref[l]                               # (3*CP + heads*DHP + HIDP, CP)
            wB = wB_ref[l]                               # (CP, heads*3*DHP + HIDP)
            bz = bz_ref[l]                               # (8, max(CP, HIDP))
            conv_b = bz[0:1, 0:CP]
            ln1_g, ln1_b = bz[1:2, 0:CP], bz[2:3, 0:CP]
            b_out = bz[3:4, 0:CP]
            ln2_g, ln2_b = bz[4:5, 0:CP], bz[5:6, 0:CP]
            b2 = bz[6:7, 0:CP]
            b1 = bz[7:8, 0:HIDP]

            # ---- sub-layer 1: x = x + Conv1d(dim, dim, 3, padding=1)(x) -------------------
            # Shifted copies via sublane roll (XLU) + boundary masks; three accumulating
            # lane-aligned MXU matmuls instead of a misaligned (T,3C) concat.
            x_m1 = pltpu.roll(x, shift=1, axis=0) * m_first          # x[t-1]
            x_p1 = pltpu.roll(x, shift=T - 1, axis=0) * m_last       # x[t+1]
            conv = (jnp.dot(x_m1, wA[0:CP], preferred_element_type=jnp.float32)
                    + jnp.dot(x, wA[CP:2 * CP], preferred_element_type=jnp.float32)
                    + jnp.dot(x_p1, wA[2 * CP:3 * CP], preferred_element_type=jnp.float32))
            x = x + conv + conv_b

            # ---- sub-layer 2: x = x + GLANCE(x)  (channel LN + global MHSA over T) --------
            xn = chan_ln(x, ln1_g, ln1_b)
            attn_out = jnp.zeros_like(x)
            for h in range(heads):                       # static unroll over heads
                base = 3 * h * DHP
                q = jnp.dot(xn, wB[:, base:base + DHP],
                            preferred_element_type=jnp.float32)       # scale folded in weights
                k = jnp.dot(xn, wB[:, base + DHP:base + 2 * DHP],
                            preferred_element_type=jnp.float32)
                v = jnp.dot(xn, wB[:, base + 2 * DHP:base + 3 * DHP],
                            preferred_element_type=jnp.float32)
                sim = lax.dot_general(q, k, (((1,), (1,)), ((), ())),
                                      preferred_element_type=jnp.float32)   # (T, T)
                sim = sim - jnp.max(sim, axis=-1, keepdims=True)
                p = jnp.exp(sim)
                attn = p / jnp.sum(p, axis=-1, keepdims=True)          # exact divide (tiny rows)
                o = jnp.dot(attn, v, preferred_element_type=jnp.float32)     # (T, DHP)
                w_o = wA[3 * CP + h * DHP:3 * CP + (h + 1) * DHP]            # (DHP, CP)
                attn_out = attn_out + jnp.dot(o, w_o, preferred_element_type=jnp.float32)
            x = x + attn_out + b_out

            # ---- sub-layer 3: x = x + FeedForward(x)  (LN -> 1x1 conv -> GELU -> 1x1 conv) -
            xn2 = chan_ln(x, ln2_g, ln2_b)
            w1 = wB[:, heads * 3 * DHP:heads * 3 * DHP + HIDP]
            w2 = wA[3 * CP + heads * DHP:3 * CP + heads * DHP + HIDP]
            h1 = _gelu_exact(jnp.dot(xn2, w1, preferred_element_type=jnp.float32) + b1)
            x = x + jnp.dot(h1, w2, preferred_element_type=jnp.float32) + b2

        o_ref[...] = x

    return kernel


# ---------------- parameter packing (lane-aligned, zero-padded slabs) -------------------------
def _pack_layer_params(layer_params, dim, heads, dim_head, hid):
    C = dim
    CP = _round_up(C)
    DHP = _round_up(dim_head)
    HIDP = _round_up(hid)
    BW = max(CP, HIDP)
    scale = dim_head ** -0.5
    f32 = jnp.float32

    def emb(a, rows, cols):
        out = jnp.zeros((rows, cols), f32)
        return out.at[:a.shape[0], :a.shape[1]].set(a)

    wA_l, wB_l, bz_l = [], [], []
    for p in layer_params:
        (conv_w, conv_b, ln1_g, ln1_b, w_q, w_k, w_v, w_out, b_out,
         ln2_g, ln2_b, w1, b1, w2, b2) = p
        # row slab: [conv tap0; tap1; tap2; out-proj per head; w2]
        blocks = [emb(conv_w[kk], CP, CP) for kk in range(3)]
        blocks += [emb(w_out[hh], DHP, CP) for hh in range(heads)]
        blocks += [emb(w2, HIDP, CP)]
        wA_l.append(jnp.concatenate(blocks, axis=0))
        # column slab: per head [q | k | v] each DHP wide (q pre-scaled), then w1
        cols = []
        for hh in range(heads):
            cols.append(emb(w_q[hh] * scale, CP, DHP))   # fold 1/sqrt(dim_head) into q weights
            cols.append(emb(w_k[hh], CP, DHP))
            cols.append(emb(w_v[hh], CP, DHP))
        cols.append(emb(w1, CP, HIDP))
        wB_l.append(jnp.concatenate(cols, axis=1))
        # bias slab: 8 rows x BW lanes
        rows = [emb(v.reshape(1, -1), 1, BW)
                for v in (conv_b, ln1_g, ln1_b, b_out, ln2_g, ln2_b, b2, b1)]
        bz_l.append(jnp.concatenate(rows, axis=0))
    return jnp.stack(wA_l), jnp.stack(wB_l), jnp.stack(bz_l)


# ---------------- jitted wrapper ---------------------------------------------------------------
@partial(jax.jit, static_argnames=("heads", "dim_head"))
def backbone_pallas(x_btc, layer_params, *, heads, dim_head):
    B, T, C = x_btc.shape
    depth = len(layer_params)
    hid = layer_params[0][11].shape[1]                   # w1: (dim, dim*ff_repe)
    CP = _round_up(C)

    wA, wB, bz = _pack_layer_params(layer_params, C, heads, dim_head, hid)
    x_pad = jnp.pad(x_btc, ((0, 0), (0, 0), (0, CP - C)))   # lane-dense channel axis

    kern = make_backbone_kernel(depth, C, heads, dim_head, hid)
    out = pl.pallas_call(
        kern,
        out_shape=jax.ShapeDtypeStruct((B, T, CP), jnp.float32),
        grid=(B,),                                        # one batch element per grid step
        in_specs=[
            pl.BlockSpec((None, T, CP), lambda b: (b, 0, 0)),
            pl.BlockSpec(wA.shape, lambda b: (0, 0, 0)),  # weight slabs: constant block index
            pl.BlockSpec(wB.shape, lambda b: (0, 0, 0)),
            pl.BlockSpec(bz.shape, lambda b: (0, 0, 0)),
        ],
        out_specs=pl.BlockSpec((None, T, CP), lambda b: (b, 0, 0)),
        compiler_params=pltpu.CompilerParams(dimension_semantics=("parallel",)),
    )(x_pad, wA, wB, bz)
    return out[:, :, :C]


# ---------------- deterministic synthetic parameters ------------------------------------------
def init_layer_params(key, dim, heads, dim_head, ff_repe, ksz):
    hid = dim * ff_repe
    ks = jax.random.split(key, 10)
    s = 0.05
    f32 = jnp.float32
    conv_w = jax.random.normal(ks[0], (ksz, dim, dim), f32) * s      # [k, c_in, c_out]
    conv_b = jax.random.normal(ks[1], (1, dim), f32) * s
    ln1_g = jnp.ones((1, dim), f32)
    ln1_b = jnp.zeros((1, dim), f32)
    w_q = jax.random.normal(ks[2], (heads, dim, dim_head), f32) * s  # to_qkv (head-split)
    w_k = jax.random.normal(ks[3], (heads, dim, dim_head), f32) * s
    w_v = jax.random.normal(ks[4], (heads, dim, dim_head), f32) * s
    w_out = jax.random.normal(ks[5], (heads, dim_head, dim), f32) * s
    b_out = jax.random.normal(ks[6], (1, dim), f32) * s
    ln2_g = jnp.ones((1, dim), f32)
    ln2_b = jnp.zeros((1, dim), f32)
    w1 = jax.random.normal(ks[7], (dim, hid), f32) * s
    b1 = jax.random.normal(ks[8], (1, hid), f32) * s
    w2 = jax.random.normal(ks[9], (hid, dim), f32) * s
    b2 = jnp.zeros((1, dim), f32)
    return (conv_w, conv_b, ln1_g, ln1_b, w_q, w_k, w_v, w_out, b_out,
            ln2_g, ln2_b, w1, b1, w2, b2)


# ---------------- pure-JAX reference (same math, no Pallas) for a numeric sanity check --------
def backbone_ref(x_btc, layer_params, *, heads, dim_head):
    x = x_btc
    for p in layer_params:
        (conv_w, conv_b, ln1_g, ln1_b, w_q, w_k, w_v, w_out, b_out,
         ln2_g, ln2_b, w1, b1, w2, b2) = p
        B, T, C = x.shape
        zp = jnp.zeros((B, 1, C), x.dtype)
        xm1 = jnp.concatenate([zp, x[:, :-1]], axis=1)
        xp1 = jnp.concatenate([x[:, 1:], zp], axis=1)
        x = x + (xm1 @ conv_w[0] + x @ conv_w[1] + xp1 @ conv_w[2] + conv_b)

        xn = _chan_ln_ref(x, ln1_g, ln1_b)
        q = jnp.einsum('btc,hcd->bhtd', xn, w_q) * dim_head ** -0.5
        k = jnp.einsum('btc,hcd->bhtd', xn, w_k)
        v = jnp.einsum('btc,hcd->bhtd', xn, w_v)
        attn = jax.nn.softmax(jnp.einsum('bhid,bhjd->bhij', q, k), axis=-1)
        o = jnp.einsum('bhij,bhjd->bhid', attn, v)
        x = x + jnp.einsum('bhtd,hdc->btc', o, w_out) + b_out

        xn2 = _chan_ln_ref(x, ln2_g, ln2_b)
        hdn = jax.nn.gelu(xn2 @ w1 + b1, approximate=False)
        x = x + hdn @ w2 + b2
    return x


if __name__ == "__main__":
    key = jax.random.PRNGKey(0)
    k_x, k_p = jax.random.split(key)

    # PyTorch Backbone input: (batch, dim, seq) = NCL
    x_ncl = jax.random.normal(k_x, (BATCH, DIM, SEQ), jnp.float32)
    # layout: transpose NCL -> channels-last (B, T, C) for the kernel
    x_btc = jnp.transpose(x_ncl, (0, 2, 1))

    layer_keys = jax.random.split(k_p, DEPTH)
    layer_params = [init_layer_params(k, DIM, HEADS, DIM_HEAD, FF_REPE, KSZ)
                    for k in layer_keys]

    out = backbone_pallas(x_btc, layer_params, heads=HEADS, dim_head=DIM_HEAD)
    out = jax.block_until_ready(out)

    ref = backbone_ref(x_btc, layer_params, heads=HEADS, dim_head=DIM_HEAD)
    assert out.shape == (BATCH, SEQ, DIM)
    assert bool(jnp.all(jnp.isfinite(out)))
    assert bool(jnp.allclose(out, ref, atol=2e-4, rtol=1e-3)), \
        ("max abs diff", float(jnp.max(jnp.abs(out - ref))))

    # back to the PyTorch NCL layout
    out_ncl = jnp.transpose(out, (0, 2, 1))
    assert out_ncl.shape == x_ncl.shape

    print("KERNEL_OK")
</pallas_src>

<mosaic_0001>
module attributes {stable_mosaic.version = 11 : i64} {
  func.func @kernel(%arg0: i32, %arg1: memref<1x16x128xf32, #tpu.memory_space<vmem>>, %arg2: memref<2x768x128xf32, #tpu.memory_space<vmem>>, %arg3: memref<2x128x896xf32, #tpu.memory_space<vmem>>, %arg4: memref<2x8x128xf32, #tpu.memory_space<vmem>>, %arg5: memref<1x16x128xf32, #tpu.memory_space<vmem>>) attributes {dimension_semantics = [#tpu.dimension_semantics<parallel>], iteration_bounds = array<i64: 2>, scalar_prefetch = 0 : i64, scratch_operands = 0 : i64, tpu.core_type = #tpu.core_type<tc>, window_params = [{transform_indices = @transform_0, window_bounds = array<i64: 1, 16, 128>}, {pipeline_mode = #tpu.pipeline_mode<synchronous>, transform_indices = @transform_1, window_bounds = array<i64: 2, 768, 128>}, {pipeline_mode = #tpu.pipeline_mode<synchronous>, transform_indices = @transform_2, window_bounds = array<i64: 2, 128, 896>}, {pipeline_mode = #tpu.pipeline_mode<synchronous>, transform_indices = @transform_3, window_bounds = array<i64: 2, 8, 128>}, {transform_indices = @transform_4, window_bounds = array<i64: 1, 16, 128>}]} {
    %c0 = arith.constant 0 : index
    %c0_0 = arith.constant 0 : index
    %c0_1 = arith.constant 0 : index
    %0 = vector.load %arg1[%c0, %c0_0, %c0_1] : memref<1x16x128xf32, #tpu.memory_space<vmem>>, vector<1x16x128xf32>
    %1 = vector.shape_cast %0 : vector<1x16x128xf32> to vector<16x128xf32>
    %2 = tpu.iota {dimensions = array<i32: 1>} : vector<1x128xi32>
    %c32_i32 = arith.constant 32 : i32
    %3 = vector.broadcast %c32_i32 : i32 to vector<1x128xi32>
    %4 = arith.cmpi slt, %2, %3 : vector<1x128xi32>
    %5 = arith.extui %4 : vector<1x128xi1> to vector<1x128xi32>
    %6 = arith.sitofp %5 : vector<1x128xi32> to vector<1x128xf32>
    %7 = tpu.iota {dimensions = array<i32: 0>} : vector<16x1xi32>
    %c0_i32 = arith.constant 0 : i32
    %8 = vector.broadcast %c0_i32 : i32 to vector<16x1xi32>
    %9 = arith.cmpi sgt, %7, %8 : vector<16x1xi32>
    %10 = arith.extui %9 : vector<16x1xi1> to vector<16x1xi32>
    %11 = arith.sitofp %10 : vector<16x1xi32> to vector<16x1xf32>
    %c15_i32 = arith.constant 15 : i32
    %12 = vector.broadcast %c15_i32 : i32 to vector<16x1xi32>
    %13 = arith.cmpi slt, %7, %12 : vector<16x1xi32>
    %14 = arith.extui %13 : vector<16x1xi1> to vector<16x1xi32>
    %15 = arith.sitofp %14 : vector<16x1xi32> to vector<16x1xf32>
    %c0_2 = arith.constant 0 : index
    %c0_3 = arith.constant 0 : index
    %c0_4 = arith.constant 0 : index
    %16 = vector.load %arg2[%c0_2, %c0_3, %c0_4] : memref<2x768x128xf32, #tpu.memory_space<vmem>>, vector<1x768x128xf32>
    %17 = vector.shape_cast %16 : vector<1x768x128xf32> to vector<768x128xf32>
    %c0_5 = arith.constant 0 : index
    %c0_6 = arith.constant 0 : index
    %c0_7 = arith.constant 0 : index
    %18 = vector.load %arg3[%c0_5, %c0_6, %c0_7] : memref<2x128x896xf32, #tpu.memory_space<vmem>>, vector<1x128x896xf32>
    %19 = vector.shape_cast %18 : vector<1x128x896xf32> to vector<128x896xf32>
    %c0_8 = arith.constant 0 : index
    %c0_9 = arith.constant 0 : index
    %c0_10 = arith.constant 0 : index
    %20 = vector.load %arg4[%c0_8, %c0_9, %c0_10] : memref<2x8x128xf32, #tpu.memory_space<vmem>>, vector<1x8x128xf32>
    %21 = vector.shape_cast %20 : vector<1x8x128xf32> to vector<8x128xf32>
    %22 = vector.extract_strided_slice %21 {offsets = [0, 0], sizes = [1, 128], strides = [1, 1]} : vector<8x128xf32> to vector<1x128xf32>
    %23 = vector.extract_strided_slice %21 {offsets = [1, 0], sizes = [1, 128], strides = [1, 1]} : vector<8x128xf32> to vector<1x128xf32>
    %24 = vector.extract_strided_slice %21 {offsets = [2, 0], sizes = [1, 128], strides = [1, 1]} : vector<8x128xf32> to vector<1x128xf32>
    %25 = vector.extract_strided_slice %21 {offsets = [3, 0], sizes = [1, 128], strides = [1, 1]} : vector<8x128xf32> to vector<1x128xf32>
    %26 = vector.extract_strided_slice %21 {offsets = [4, 0], sizes = [1, 128], strides = [1, 1]} : vector<8x128xf32> to vector<1x128xf32>
    %27 = vector.extract_strided_slice %21 {offsets = [5, 0], sizes = [1, 128], strides = [1, 1]} : vector<8x128xf32> to vector<1x128xf32>
    %28 = vector.extract_strided_slice %21 {offsets = [6, 0], sizes = [1, 128], strides = [1, 1]} : vector<8x128xf32> to vector<1x128xf32>
    %29 = vector.extract_strided_slice %21 {offsets = [7, 0], sizes = [1, 128], strides = [1, 1]} : vector<8x128xf32> to vector<1x128xf32>
    %c1_i32 = arith.constant 1 : i32
    %30 = tpu.dynamic_rotate %1 by %c1_i32 dim 0 : vector<16x128xf32>, i32 -> vector<16x128xf32>
    %31 = vector.broadcast %11 : vector<16x1xf32> to vector<16x128xf32>
    %32 = arith.mulf %30, %31 : vector<16x128xf32>
    %c15_i32_11 = arith.constant 15 : i32
    %33 = tpu.dynamic_rotate %1 by %c15_i32_11 dim 0 : vector<16x128xf32>, i32 -> vector<16x128xf32>
    %34 = vector.broadcast %15 : vector<16x1xf32> to vector<16x128xf32>
    %35 = arith.mulf %33, %34 : vector<16x128xf32>
    %36 = vector.extract_strided_slice %17 {offsets = [0, 0], sizes = [128, 128], strides = [1, 1]} : vector<768x128xf32> to vector<128x128xf32>
    %cst = arith.constant dense<0.000000e+00> : vector<16x128xf32>
    %37 = tpu.matmul %32, %36, %cst {dimension_numbers = #tpu.dot_dimension_numbers<[1], [0], [0], [1], [0, 0, 1, 1], [], []>} : vector<16x128xf32>, vector<128x128xf32>, vector<16x128xf32> -> vector<16x128xf32>
    %38 = vector.extract_strided_slice %17 {offsets = [128, 0], sizes = [128, 128], strides = [1, 1]} : vector<768x128xf32> to vector<128x128xf32>
    %cst_12 = arith.constant dense<0.000000e+00> : vector<16x128xf32>
    %39 = tpu.matmul %1, %38, %cst_12 {dimension_numbers = #tpu.dot_dimension_numbers<[1], [0], [0], [1], [0, 0, 1, 1], [], []>} : vector<16x128xf32>, vector<128x128xf32>, vector<16x128xf32> -> vector<16x128xf32>
    %40 = arith.addf %37, %39 : vector<16x128xf32>
    %41 = vector.extract_strided_slice %17 {offsets = [256, 0], sizes = [128, 128], strides = [1, 1]} : vector<768x128xf32> to vector<128x128xf32>
    %cst_13 = arith.constant dense<0.000000e+00> : vector<16x128xf32>
    %42 = tpu.matmul %35, %41, %cst_13 {dimension_numbers = #tpu.dot_dimension_numbers<[1], [0], [0], [1], [0, 0, 1, 1], [], []>} : vector<16x128xf32>, vector<128x128xf32>, vector<16x128xf32> -> vector<16x128xf32>
    %43 = arith.addf %40, %42 : vector<16x128xf32>
    %44 = arith.addf %1, %43 : vector<16x128xf32>
    %45 = vector.broadcast %22 : vector<1x128xf32> to vector<16x128xf32>
    %46 = arith.addf %44, %45 : vector<16x128xf32>
    %cst_14 = arith.constant dense<0.000000e+00> : vector<16xf32>
    %47 = vector.multi_reduction <add>, %46, %cst_14 [1] : vector<16x128xf32> to vector<16xf32>
    %48 = vector.shape_cast %47 : vector<16xf32> to vector<16x1xf32>
    %cst_15 = arith.constant 3.125000e-02 : f32
    %49 = vector.broadcast %cst_15 : f32 to vector<16x1xf32>
    %50 = arith.mulf %48, %49 : vector<16x1xf32>
    %51 = vector.broadcast %50 : vector<16x1xf32> to vector<16x128xf32>
    %52 = arith.subf %46, %51 : vector<16x128xf32>
    %53 = vector.broadcast %6 : vector<1x128xf32> to vector<16x128xf32>
    %54 = arith.mulf %52, %53 : vector<16x128xf32>
    %55 = arith.mulf %54, %54 : vector<16x128xf32>
    %cst_16 = arith.constant dense<0.000000e+00> : vector<16xf32>
    %56 = vector.multi_reduction <add>, %55, %cst_16 [1] : vector<16x128xf32> to vector<16xf32>
    %57 = vector.shape_cast %56 : vector<16xf32> to vector<16x1xf32>
    %cst_17 = arith.constant 3.125000e-02 : f32
    %58 = vector.broadcast %cst_17 : f32 to vector<16x1xf32>
    %59 = arith.mulf %57, %58 : vector<16x1xf32>
    %60 = vector.broadcast %50 : vector<16x1xf32> to vector<16x128xf32>
    %61 = arith.subf %46, %60 : vector<16x128xf32>
    %cst_18 = arith.constant 9.99999974E-6 : f32
    %62 = vector.broadcast %cst_18 : f32 to vector<16x1xf32>
    %63 = arith.addf %59, %62 : vector<16x1xf32>
    %64 = math.rsqrt %63 : vector<16x1xf32>
    %65 = vector.broadcast %64 : vector<16x1xf32> to vector<16x128xf32>
    %66 = arith.mulf %61, %65 : vector<16x128xf32>
    %67 = vector.broadcast %23 : vector<1x128xf32> to vector<16x128xf32>
    %68 = arith.mulf %66, %67 : vector<16x128xf32>
    %69 = vector.broadcast %24 : vector<1x128xf32> to vector<16x128xf32>
    %70 = arith.addf %68, %69 : vector<16x128xf32>
    %cst_19 = arith.constant 0.000000e+00 : f32
    %71 = vector.broadcast %cst_19 : f32 to vector<16x128xf32>
    %72 = vector.extract_strided_slice %19 {offsets = [0, 0], sizes = [128, 128], strides = [1, 1]} : vector<128x896xf32> to vector<128x128xf32>
    %cst_20 = arith.constant dense<0.000000e+00> : vector<16x128xf32>
    %73 = tpu.matmul %70, %72, %cst_20 {dimension_numbers = #tpu.dot_dimension_numbers<[1], [0], [0], [1], [0, 0, 1, 1], [], []>} : vector<16x128xf32>, vector<128x128xf32>, vector<16x128xf32> -> vector<16x128xf32>
    %74 = vector.extract_strided_slice %19 {offsets = [0, 128], sizes = [128, 128], strides = [1, 1]} : vector<128x896xf32> to vector<128x128xf32>
    %cst_21 = arith.constant dense<0.000000e+00> : vector<16x128xf32>
    %75 = tpu.matmul %70, %74, %cst_21 {dimension_numbers = #tpu.dot_dimension_numbers<[1], [0], [0], [1], [0, 0, 1, 1], [], []>} : vector<16x128xf32>, vector<128x128xf32>, vector<16x128xf32> -> vector<16x128xf32>
    %76 = vector.extract_strided_slice %19 {offsets = [0, 256], sizes = [128, 128], strides = [1, 1]} : vector<128x896xf32> to vector<128x128xf32>
    %cst_22 = arith.constant dense<0.000000e+00> : vector<16x128xf32>
    %77 = tpu.matmul %70, %76, %cst_22 {dimension_numbers = #tpu.dot_dimension_numbers<[1], [0], [0], [1], [0, 0, 1, 1], [], []>} : vector<16x128xf32>, vector<128x128xf32>, vector<16x128xf32> -> vector<16x128xf32>
    %cst_23 = arith.constant dense<0.000000e+00> : vector<16x16xf32>
    %78 = tpu.matmul %73, %75, %cst_23 {dimension_numbers = #tpu.dot_dimension_numbers<[1], [1], [0], [0], [0, 0, 1, 0], [], []>} : vector<16x128xf32>, vector<16x128xf32>, vector<16x16xf32> -> vector<16x16xf32>
    %cst_24 = arith.constant dense<0xFF800000> : vector<16xf32>
    %79 = vector.multi_reduction <maximumf>, %78, %cst_24 [1] : vector<16x16xf32> to vector<16xf32>
    %80 = vector.shape_cast %79 : vector<16xf32> to vector<16x1xf32>
    %81 = vector.broadcast %80 : vector<16x1xf32> to vector<16x16xf32>
    %82 = arith.subf %78, %81 : vector<16x16xf32>
    %83 = math.exp %82 : vector<16x16xf32>
    %cst_25 = arith.constant dense<0.000000e+00> : vector<16xf32>
    %84 = vector.multi_reduction <add>, %83, %cst_25 [1] : vector<16x16xf32> to vector<16xf32>
    %85 = vector.shape_cast %84 : vector<16xf32> to vector<16x1xf32>
    %86 = vector.broadcast %85 : vector<16x1xf32> to vector<16x16xf32>
    %87 = arith.divf %83, %86 : vector<16x16xf32>
    %cst_26 = arith.constant dense<0.000000e+00> : vector<16x128xf32>
    %88 = tpu.matmul %87, %77, %cst_26 {dimension_numbers = #tpu.dot_dimension_numbers<[1], [0], [0], [1], [0, 0, 1, 1], [], []>} : vector<16x16xf32>, vector<16x128xf32>, vector<16x128xf32> -> vector<16x128xf32>
    %89 = vector.extract_strided_slice %17 {offsets = [384, 0], sizes = [128, 128], strides = [1, 1]} : vector<768x128xf32> to vector<128x128xf32>
    %cst_27 = arith.constant dense<0.000000e+00> : vector<16x128xf32>
    %90 = tpu.matmul %88, %89, %cst_27 {dimension_numbers = #tpu.dot_dimension_numbers<[1], [0], [0], [1], [0, 0, 1, 1], [], []>} : vector<16x128xf32>, vector<128x128xf32>, vector<16x128xf32> -> vector<16x128xf32>
    %91 = arith.addf %71, %90 : vector<16x128xf32>
    %92 = vector.extract_strided_slice %19 {offsets = [0, 384], sizes = [128, 128], strides = [1, 1]} : vector<128x896xf32> to vector<128x128xf32>
    %cst_28 = arith.constant dense<0.000000e+00> : vector<16x128xf32>
    %93 = tpu.matmul %70, %92, %cst_28 {dimension_numbers = #tpu.dot_dimension_numbers<[1], [0], [0], [1], [0, 0, 1, 1], [], []>} : vector<16x128xf32>, vector<128x128xf32>, vector<16x128xf32> -> vector<16x128xf32>
    %94 = vector.extract_strided_slice %19 {offsets = [0, 512], sizes = [128, 128], strides = [1, 1]} : vector<128x896xf32> to vector<128x128xf32>
    %cst_29 = arith.constant dense<0.000000e+00> : vector<16x128xf32>
    %95 = tpu.matmul %70, %94, %cst_29 {dimension_numbers = #tpu.dot_dimension_numbers<[1], [0], [0], [1], [0, 0, 1, 1], [], []>} : vector<16x128xf32>, vector<128x128xf32>, vector<16x128xf32> -> vector<16x128xf32>
    %96 = vector.extract_strided_slice %19 {offsets = [0, 640], sizes = [128, 128], strides = [1, 1]} : vector<128x896xf32> to vector<128x128xf32>
    %cst_30 = arith.constant dense<0.000000e+00> : vector<16x128xf32>
    %97 = tpu.matmul %70, %96, %cst_30 {dimension_numbers = #tpu.dot_dimension_numbers<[1], [0], [0], [1], [0, 0, 1, 1], [], []>} : vector<16x128xf32>, vector<128x128xf32>, vector<16x128xf32> -> vector<16x128xf32>
    %cst_31 = arith.constant dense<0.000000e+00> : vector<16x16xf32>
    %98 = tpu.matmul %93, %95, %cst_31 {dimension_numbers = #tpu.dot_dimension_numbers<[1], [1], [0], [0], [0, 0, 1, 0], [], []>} : vector<16x128xf32>, vector<16x128xf32>, vector<16x16xf32> -> vector<16x16xf32>
    %cst_32 = arith.constant dense<0xFF800000> : vector<16xf32>
    %99 = vector.multi_reduction <maximumf>, %98, %cst_32 [1] : vector<16x16xf32> to vector<16xf32>
    %100 = vector.shape_cast %99 : vector<16xf32> to vector<16x1xf32>
    %101 = vector.broadcast %100 : vector<16x1xf32> to vector<16x16xf32>
    %102 = arith.subf %98, %101 : vector<16x16xf32>
    %103 = math.exp %102 : vector<16x16xf32>
    %cst_33 = arith.constant dense<0.000000e+00> : vector<16xf32>
    %104 = vector.multi_reduction <add>, %103, %cst_33 [1] : vector<16x16xf32> to vector<16xf32>
    %105 = vector.shape_cast %104 : vector<16xf32> to vector<16x1xf32>
    %106 = vector.broadcast %105 : vector<16x1xf32> to vector<16x16xf32>
    %107 = arith.divf %103, %106 : vector<16x16xf32>
    %cst_34 = arith.constant dense<0.000000e+00> : vector<16x128xf32>
    %108 = tpu.matmul %107, %97, %cst_34 {dimension_numbers = #tpu.dot_dimension_numbers<[1], [0], [0], [1], [0, 0, 1, 1], [], []>} : vector<16x16xf32>, vector<16x128xf32>, vector<16x128xf32> -> vector<16x128xf32>
    %109 = vector.extract_strided_slice %17 {offsets = [512, 0], sizes = [128, 128], strides = [1, 1]} : vector<768x128xf32> to vector<128x128xf32>
    %cst_35 = arith.constant dense<0.000000e+00> : vector<16x128xf32>
    %110 = tpu.matmul %108, %109, %cst_35 {dimension_numbers = #tpu.dot_dimension_numbers<[1], [0], [0], [1], [0, 0, 1, 1], [], []>} : vector<16x128xf32>, vector<128x128xf32>, vector<16x128xf32> -> vector<16x128xf32>
    %111 = arith.addf %91, %110 : vector<16x128xf32>
    %112 = arith.addf %46, %111 : vector<16x128xf32>
    %113 = vector.broadcast %25 : vector<1x128xf32> to vector<16x128xf32>
    %114 = arith.addf %112, %113 : vector<16x128xf32>
    %cst_36 = arith.constant dense<0.000000e+00> : vector<16xf32>
    %115 = vector.multi_reduction <add>, %114, %cst_36 [1] : vector<16x128xf32> to vector<16xf32>
    %116 = vector.shape_cast %115 : vector<16xf32> to vector<16x1xf32>
    %cst_37 = arith.constant 3.125000e-02 : f32
    %117 = vector.broadcast %cst_37 : f32 to vector<16x1xf32>
    %118 = arith.mulf %116, %117 : vector<16x1xf32>
    %119 = vector.broadcast %118 : vector<16x1xf32> to vector<16x128xf32>
    %120 = arith.subf %114, %119 : vector<16x128xf32>
    %121 = vector.broadcast %6 : vector<1x128xf32> to vector<16x128xf32>
    %122 = arith.mulf %120, %121 : vector<16x128xf32>
    %123 = arith.mulf %122, %122 : vector<16x128xf32>
    %cst_38 = arith.constant dense<0.000000e+00> : vector<16xf32>
    %124 = vector.multi_reduction <add>, %123, %cst_38 [1] : vector<16x128xf32> to vector<16xf32>
    %125 = vector.shape_cast %124 : vector<16xf32> to vector<16x1xf32>
    %cst_39 = arith.constant 3.125000e-02 : f32
    %126 = vector.broadcast %cst_39 : f32 to vector<16x1xf32>
    %127 = arith.mulf %125, %126 : vector<16x1xf32>
    %128 = vector.broadcast %118 : vector<16x1xf32> to vector<16x128xf32>
    %129 = arith.subf %114, %128 : vector<16x128xf32>
    %cst_40 = arith.constant 9.99999974E-6 : f32
    %130 = vector.broadcast %cst_40 : f32 to vector<16x1xf32>
    %131 = arith.addf %127, %130 : vector<16x1xf32>
    %132 = math.rsqrt %131 : vector<16x1xf32>
    %133 = vector.broadcast %132 : vector<16x1xf32> to vector<16x128xf32>
    %134 = arith.mulf %129, %133 : vector<16x128xf32>
    %135 = vector.broadcast %26 : vector<1x128xf32> to vector<16x128xf32>
    %136 = arith.mulf %134, %135 : vector<16x128xf32>
    %137 = vector.broadcast %27 : vector<1x128xf32> to vector<16x128xf32>
    %138 = arith.addf %136, %137 : vector<16x128xf32>
    %139 = vector.extract_strided_slice %19 {offsets = [0, 768], sizes = [128, 128], strides = [1, 1]} : vector<128x896xf32> to vector<128x128xf32>
    %140 = vector.extract_strided_slice %17 {offsets = [640, 0], sizes = [128, 128], strides = [1, 1]} : vector<768x128xf32> to vector<128x128xf32>
    %cst_41 = arith.constant dense<0.000000e+00> : vector<16x128xf32>
    %141 = tpu.matmul %138, %139, %cst_41 {dimension_numbers = #tpu.dot_dimension_numbers<[1], [0], [0], [1], [0, 0, 1, 1], [], []>} : vector<16x128xf32>, vector<128x128xf32>, vector<16x128xf32> -> vector<16x128xf32>
    %142 = vector.broadcast %29 : vector<1x128xf32> to vector<16x128xf32>
    %143 = arith.addf %141, %142 : vector<16x128xf32>
    %cst_42 = arith.constant 5.000000e-01 : f32
    %144 = vector.broadcast %cst_42 : f32 to vector<16x128xf32>
    %145 = arith.mulf %144, %143 : vector<16x128xf32>
    %cst_43 = arith.constant 0.707106769 : f32
    %146 = vector.broadcast %cst_43 : f32 to vector<16x128xf32>
    %147 = arith.mulf %143, %146 : vector<16x128xf32>
    %cst_44 = arith.constant 0.000000e+00 : f32
    %148 = vector.broadcast %cst_44 : f32 to vector<16x128xf32>
    %149 = arith.cmpf oge, %147, %148 : vector<16x128xf32>
    %cst_45 = arith.constant 1.000000e+00 : f32
    %cst_46 = arith.constant -1.000000e+00 : f32
    %150 = vector.broadcast %cst_45 : f32 to vector<16x128xf32>
    %151 = vector.broadcast %cst_46 : f32 to vector<16x128xf32>
    %152 = arith.select %149, %150, %151 : vector<16x128xi1>, vector<16x128xf32>
    %153 = math.absf %147 : vector<16x128xf32>
    %cst_47 = arith.constant 0.327591091 : f32
    %154 = vector.broadcast %cst_47 : f32 to vector<16x128xf32>
    %155 = arith.mulf %154, %153 : vector<16x128xf32>
    %cst_48 = arith.constant 1.000000e+00 : f32
    %156 = vector.broadcast %cst_48 : f32 to vector<16x128xf32>
    %157 = arith.addf %156, %155 : vector<16x128xf32>
    %cst_49 = arith.constant 1.000000e+00 : f32
    %158 = vector.broadcast %cst_49 : f32 to vector<16x128xf32>
    %159 = arith.divf %158, %157 : vector<16x128xf32>
    %cst_50 = arith.constant 1.06140542 : f32
    %160 = vector.broadcast %cst_50 : f32 to vector<16x128xf32>
    %161 = arith.mulf %160, %159 : vector<16x128xf32>
    %cst_51 = arith.constant 1.45315206 : f32
    %162 = vector.broadcast %cst_51 : f32 to vector<16x128xf32>
    %163 = arith.subf %161, %162 : vector<16x128xf32>
    %164 = arith.mulf %163, %159 : vector<16x128xf32>
    %cst_52 = arith.constant 1.42141378 : f32
    %165 = vector.broadcast %cst_52 : f32 to vector<16x128xf32>
    %166 = arith.addf %164, %165 : vector<16x128xf32>
    %167 = arith.mulf %166, %159 : vector<16x128xf32>
    %cst_53 = arith.constant 0.284496725 : f32
    %168 = vector.broadcast %cst_53 : f32 to vector<16x128xf32>
    %169 = arith.subf %167, %168 : vector<16x128xf32>
    %170 = arith.mulf %169, %159 : vector<16x128xf32>
    %cst_54 = arith.constant 0.254829586 : f32
    %171 = vector.broadcast %cst_54 : f32 to vector<16x128xf32>
    %172 = arith.addf %170, %171 : vector<16x128xf32>
    %173 = arith.mulf %172, %159 : vector<16x128xf32>
    %cst_55 = arith.constant 0.000000e+00 : f32
    %174 = vector.broadcast %cst_55 : f32 to vector<16x128xf32>
    %175 = arith.subf %174, %153 : vector<16x128xf32>
    %176 = arith.mulf %175, %153 : vector<16x128xf32>
    %177 = math.exp %176 : vector<16x128xf32>
    %178 = arith.mulf %173, %177 : vector<16x128xf32>
    %cst_56 = arith.constant 1.000000e+00 : f32
    %179 = vector.broadcast %cst_56 : f32 to vector<16x128xf32>
    %180 = arith.subf %179, %178 : vector<16x128xf32>
    %181 = arith.mulf %152, %180 : vector<16x128xf32>
    %cst_57 = arith.constant 1.000000e+00 : f32
    %182 = vector.broadcast %cst_57 : f32 to vector<16x128xf32>
    %183 = arith.addf %182, %181 : vector<16x128xf32>
    %184 = arith.mulf %145, %183 : vector<16x128xf32>
    %cst_58 = arith.constant dense<0.000000e+00> : vector<16x128xf32>
    %185 = tpu.matmul %184, %140, %cst_58 {dimension_numbers = #tpu.dot_dimension_numbers<[1], [0], [0], [1], [0, 0, 1, 1], [], []>} : vector<16x128xf32>, vector<128x128xf32>, vector<16x128xf32> -> vector<16x128xf32>
    %186 = arith.addf %114, %185 : vector<16x128xf32>
    %187 = vector.broadcast %28 : vector<1x128xf32> to vector<16x128xf32>
    %188 = arith.addf %186, %187 : vector<16x128xf32>
    %c1 = arith.constant 1 : index
    %c0_59 = arith.constant 0 : index
    %c0_60 = arith.constant 0 : index
    %189 = vector.load %arg2[%c1, %c0_59, %c0_60] : memref<2x768x128xf32, #tpu.memory_space<vmem>>, vector<1x768x128xf32>
    %190 = vector.shape_cast %189 : vector<1x768x128xf32> to vector<768x128xf32>
    %c1_61 = arith.constant 1 : index
    %c0_62 = arith.constant 0 : index
    %c0_63 = arith.constant 0 : index
    %191 = vector.load %arg3[%c1_61, %c0_62, %c0_63] : memref<2x128x896xf32, #tpu.memory_space<vmem>>, vector<1x128x896xf32>
    %192 = vector.shape_cast %191 : vector<1x128x896xf32> to vector<128x896xf32>
    %c1_64 = arith.constant 1 : index
    %c0_65 = arith.constant 0 : index
    %c0_66 = arith.constant 0 : index
    %193 = vector.load %arg4[%c1_64, %c0_65, %c0_66] : memref<2x8x128xf32, #tpu.memory_space<vmem>>, vector<1x8x128xf32>
    %194 = vector.shape_cast %193 : vector<1x8x128xf32> to vector<8x128xf32>
    %195 = vector.extract_strided_slice %194 {offsets = [0, 0], sizes = [1, 128], strides = [1, 1]} : vector<8x128xf32> to vector<1x128xf32>
    %196 = vector.extract_strided_slice %194 {offsets = [1, 0], sizes = [1, 128], strides = [1, 1]} : vector<8x128xf32> to vector<1x128xf32>
    %197 = vector.extract_strided_slice %194 {offsets = [2, 0], sizes = [1, 128], strides = [1, 1]} : vector<8x128xf32> to vector<1x128xf32>
    %198 = vector.extract_strided_slice %194 {offsets = [3, 0], sizes = [1, 128], strides = [1, 1]} : vector<8x128xf32> to vector<1x128xf32>
    %199 = vector.extract_strided_slice %194 {offsets = [4, 0], sizes = [1, 128], strides = [1, 1]} : vector<8x128xf32> to vector<1x128xf32>
    %200 = vector.extract_strided_slice %194 {offsets = [5, 0], sizes = [1, 128], strides = [1, 1]} : vector<8x128xf32> to vector<1x128xf32>
    %201 = vector.extract_strided_slice %194 {offsets = [6, 0], sizes = [1, 128], strides = [1, 1]} : vector<8x128xf32> to vector<1x128xf32>
    %202 = vector.extract_strided_slice %194 {offsets = [7, 0], sizes = [1, 128], strides = [1, 1]} : vector<8x128xf32> to vector<1x128xf32>
    %c1_i32_67 = arith.constant 1 : i32
    %203 = tpu.dynamic_rotate %188 by %c1_i32_67 dim 0 : vector<16x128xf32>, i32 -> vector<16x128xf32>
    %204 = vector.broadcast %11 : vector<16x1xf32> to vector<16x128xf32>
    %205 = arith.mulf %203, %204 : vector<16x128xf32>
    %c15_i32_68 = arith.constant 15 : i32
    %206 = tpu.dynamic_rotate %188 by %c15_i32_68 dim 0 : vector<16x128xf32>, i32 -> vector<16x128xf32>
    %207 = vector.broadcast %15 : vector<16x1xf32> to vector<16x128xf32>
    %208 = arith.mulf %206, %207 : vector<16x128xf32>
    %209 = vector.extract_strided_slice %190 {offsets = [0, 0], sizes = [128, 128], strides = [1, 1]} : vector<768x128xf32> to vector<128x128xf32>
    %cst_69 = arith.constant dense<0.000000e+00> : vector<16x128xf32>
    %210 = tpu.matmul %205, %209, %cst_69 {dimension_numbers = #tpu.dot_dimension_numbers<[1], [0], [0], [1], [0, 0, 1, 1], [], []>} : vector<16x128xf32>, vector<128x128xf32>, vector<16x128xf32> -> vector<16x128xf32>
    %211 = vector.extract_strided_slice %190 {offsets = [128, 0], sizes = [128, 128], strides = [1, 1]} : vector<768x128xf32> to vector<128x128xf32>
    %cst_70 = arith.constant dense<0.000000e+00> : vector<16x128xf32>
    %212 = tpu.matmul %188, %211, %cst_70 {dimension_numbers = #tpu.dot_dimension_numbers<[1], [0], [0], [1], [0, 0, 1, 1], [], []>} : vector<16x128xf32>, vector<128x128xf32>, vector<16x128xf32> -> vector<16x128xf32>
    %213 = arith.addf %210, %212 : vector<16x128xf32>
    %214 = vector.extract_strided_slice %190 {offsets = [256, 0], sizes = [128, 128], strides = [1, 1]} : vector<768x128xf32> to vector<128x128xf32>
    %cst_71 = arith.constant dense<0.000000e+00> : vector<16x128xf32>
    %215 = tpu.matmul %208, %214, %cst_71 {dimension_numbers = #tpu.dot_dimension_numbers<[1], [0], [0], [1], [0, 0, 1, 1], [], []>} : vector<16x128xf32>, vector<128x128xf32>, vector<16x128xf32> -> vector<16x128xf32>
    %216 = arith.addf %213, %215 : vector<16x128xf32>
    %217 = arith.addf %188, %216 : vector<16x128xf32>
    %218 = vector.broadcast %195 : vector<1x128xf32> to vector<16x128xf32>
    %219 = arith.addf %217, %218 : vector<16x128xf32>
    %cst_72 = arith.constant dense<0.000000e+00> : vector<16xf32>
    %220 = vector.multi_reduction <add>, %219, %cst_72 [1] : vector<16x128xf32> to vector<16xf32>
    %221 = vector.shape_cast %220 : vector<16xf32> to vector<16x1xf32>
    %cst_73 = arith.constant 3.125000e-02 : f32
    %222 = vector.broadcast %cst_73 : f32 to vector<16x1xf32>
    %223 = arith.mulf %221, %222 : vector<16x1xf32>
    %224 = vector.broadcast %223 : vector<16x1xf32> to vector<16x128xf32>
    %225 = arith.subf %219, %224 : vector<16x128xf32>
    %226 = vector.broadcast %6 : vector<1x128xf32> to vector<16x128xf32>
    %227 = arith.mulf %225, %226 : vector<16x128xf32>
    %228 = arith.mulf %227, %227 : vector<16x128xf32>
    %cst_74 = arith.constant dense<0.000000e+00> : vector<16xf32>
    %229 = vector.multi_reduction <add>, %228, %cst_74 [1] : vector<16x128xf32> to vector<16xf32>
    %230 = vector.shape_cast %229 : vector<16xf32> to vector<16x1xf32>
    %cst_75 = arith.constant 3.125000e-02 : f32
    %231 = vector.broadcast %cst_75 : f32 to vector<16x1xf32>
    %232 = arith.mulf %230, %231 : vector<16x1xf32>
    %233 = vector.broadcast %223 : vector<16x1xf32> to vector<16x128xf32>
    %234 = arith.subf %219, %233 : vector<16x128xf32>
    %cst_76 = arith.constant 9.99999974E-6 : f32
    %235 = vector.broadcast %cst_76 : f32 to vector<16x1xf32>
    %236 = arith.addf %232, %235 : vector<16x1xf32>
    %237 = math.rsqrt %236 : vector<16x1xf32>
    %238 = vector.broadcast %237 : vector<16x1xf32> to vector<16x128xf32>
    %239 = arith.mulf %234, %238 : vector<16x128xf32>
    %240 = vector.broadcast %196 : vector<1x128xf32> to vector<16x128xf32>
    %241 = arith.mulf %239, %240 : vector<16x128xf32>
    %242 = vector.broadcast %197 : vector<1x128xf32> to vector<16x128xf32>
    %243 = arith.addf %241, %242 : vector<16x128xf32>
    %cst_77 = arith.constant 0.000000e+00 : f32
    %244 = vector.broadcast %cst_77 : f32 to vector<16x128xf32>
    %245 = vector.extract_strided_slice %192 {offsets = [0, 0], sizes = [128, 128], strides = [1, 1]} : vector<128x896xf32> to vector<128x128xf32>
    %cst_78 = arith.constant dense<0.000000e+00> : vector<16x128xf32>
    %246 = tpu.matmul %243, %245, %cst_78 {dimension_numbers = #tpu.dot_dimension_numbers<[1], [0], [0], [1], [0, 0, 1, 1], [], []>} : vector<16x128xf32>, vector<128x128xf32>, vector<16x128xf32> -> vector<16x128xf32>
    %247 = vector.extract_strided_slice %192 {offsets = [0, 128], sizes = [128, 128], strides = [1, 1]} : vector<128x896xf32> to vector<128x128xf32>
    %cst_79 = arith.constant dense<0.000000e+00> : vector<16x128xf32>
    %248 = tpu.matmul %243, %247, %cst_79 {dimension_numbers = #tpu.dot_dimension_numbers<[1], [0], [0], [1], [0, 0, 1, 1], [], []>} : vector<16x128xf32>, vector<128x128xf32>, vector<16x128xf32> -> vector<16x128xf32>
    %249 = vector.extract_strided_slice %192 {offsets = [0, 256], sizes = [128, 128], strides = [1, 1]} : vector<128x896xf32> to vector<128x128xf32>
    %cst_80 = arith.constant dense<0.000000e+00> : vector<16x128xf32>
    %250 = tpu.matmul %243, %249, %cst_80 {dimension_numbers = #tpu.dot_dimension_numbers<[1], [0], [0], [1], [0, 0, 1, 1], [], []>} : vector<16x128xf32>, vector<128x128xf32>, vector<16x128xf32> -> vector<16x128xf32>
    %cst_81 = arith.constant dense<0.000000e+00> : vector<16x16xf32>
    %251 = tpu.matmul %246, %248, %cst_81 {dimension_numbers = #tpu.dot_dimension_numbers<[1], [1], [0], [0], [0, 0, 1, 0], [], []>} : vector<16x128xf32>, vector<16x128xf32>, vector<16x16xf32> -> vector<16x16xf32>
    %cst_82 = arith.constant dense<0xFF800000> : vector<16xf32>
    %252 = vector.multi_reduction <maximumf>, %251, %cst_82 [1] : vector<16x16xf32> to vector<16xf32>
    %253 = vector.shape_cast %252 : vector<16xf32> to vector<16x1xf32>
    %254 = vector.broadcast %253 : vector<16x1xf32> to vector<16x16xf32>
    %255 = arith.subf %251, %254 : vector<16x16xf32>
    %256 = math.exp %255 : vector<16x16xf32>
    %cst_83 = arith.constant dense<0.000000e+00> : vector<16xf32>
    %257 = vector.multi_reduction <add>, %256, %cst_83 [1] : vector<16x16xf32> to vector<16xf32>
    %258 = vector.shape_cast %257 : vector<16xf32> to vector<16x1xf32>
    %259 = vector.broadcast %258 : vector<16x1xf32> to vector<16x16xf32>
    %260 = arith.divf %256, %259 : vector<16x16xf32>
    %cst_84 = arith.constant dense<0.000000e+00> : vector<16x128xf32>
    %261 = tpu.matmul %260, %250, %cst_84 {dimension_numbers = #tpu.dot_dimension_numbers<[1], [0], [0], [1], [0, 0, 1, 1], [], []>} : vector<16x16xf32>, vector<16x128xf32>, vector<16x128xf32> -> vector<16x128xf32>
    %262 = vector.extract_strided_slice %190 {offsets = [384, 0], sizes = [128, 128], strides = [1, 1]} : vector<768x128xf32> to vector<128x128xf32>
    %cst_85 = arith.constant dense<0.000000e+00> : vector<16x128xf32>
    %263 = tpu.matmul %261, %262, %cst_85 {dimension_numbers = #tpu.dot_dimension_numbers<[1], [0], [0], [1], [0, 0, 1, 1], [], []>} : vector<16x128xf32>, vector<128x128xf32>, vector<16x128xf32> -> vector<16x128xf32>
    %264 = arith.addf %244, %263 : vector<16x128xf32>
    %265 = vector.extract_strided_slice %192 {offsets = [0, 384], sizes = [128, 128], strides = [1, 1]} : vector<128x896xf32> to vector<128x128xf32>
    %cst_86 = arith.constant dense<0.000000e+00> : vector<16x128xf32>
    %266 = tpu.matmul %243, %265, %cst_86 {dimension_numbers = #tpu.dot_dimension_numbers<[1], [0], [0], [1], [0, 0, 1, 1], [], []>} : vector<16x128xf32>, vector<128x128xf32>, vector<16x128xf32> -> vector<16x128xf32>
    %267 = vector.extract_strided_slice %192 {offsets = [0, 512], sizes = [128, 128], strides = [1, 1]} : vector<128x896xf32> to vector<128x128xf32>
    %cst_87 = arith.constant dense<0.000000e+00> : vector<16x128xf32>
    %268 = tpu.matmul %243, %267, %cst_87 {dimension_numbers = #tpu.dot_dimension_numbers<[1], [0], [0], [1], [0, 0, 1, 1], [], []>} : vector<16x128xf32>, vector<128x128xf32>, vector<16x128xf32> -> vector<16x128xf32>
    %269 = vector.extract_strided_slice %192 {offsets = [0, 640], sizes = [128, 128], strides = [1, 1]} : vector<128x896xf32> to vector<128x128xf32>
    %cst_88 = arith.constant dense<0.000000e+00> : vector<16x128xf32>
    %270 = tpu.matmul %243, %269, %cst_88 {dimension_numbers = #tpu.dot_dimension_numbers<[1], [0], [0], [1], [0, 0, 1, 1], [], []>} : vector<16x128xf32>, vector<128x128xf32>, vector<16x128xf32> -> vector<16x128xf32>
    %cst_89 = arith.constant dense<0.000000e+00> : vector<16x16xf32>
    %271 = tpu.matmul %266, %268, %cst_89 {dimension_numbers = #tpu.dot_dimension_numbers<[1], [1], [0], [0], [0, 0, 1, 0], [], []>} : vector<16x128xf32>, vector<16x128xf32>, vector<16x16xf32> -> vector<16x16xf32>
    %cst_90 = arith.constant dense<0xFF800000> : vector<16xf32>
    %272 = vector.multi_reduction <maximumf>, %271, %cst_90 [1] : vector<16x16xf32> to vector<16xf32>
    %273 = vector.shape_cast %272 : vector<16xf32> to vector<16x1xf32>
    %274 = vector.broadcast %273 : vector<16x1xf32> to vector<16x16xf32>
    %275 = arith.subf %271, %274 : vector<16x16xf32>
    %276 = math.exp %275 : vector<16x16xf32>
    %cst_91 = arith.constant dense<0.000000e+00> : vector<16xf32>
    %277 = vector.multi_reduction <add>, %276, %cst_91 [1] : vector<16x16xf32> to vector<16xf32>
    %278 = vector.shape_cast %277 : vector<16xf32> to vector<16x1xf32>
    %279 = vector.broadcast %278 : vector<16x1xf32> to vector<16x16xf32>
    %280 = arith.divf %276, %279 : vector<16x16xf32>
    %cst_92 = arith.constant dense<0.000000e+00> : vector<16x128xf32>
    %281 = tpu.matmul %280, %270, %cst_92 {dimension_numbers = #tpu.dot_dimension_numbers<[1], [0], [0], [1], [0, 0, 1, 1], [], []>} : vector<16x16xf32>, vector<16x128xf32>, vector<16x128xf32> -> vector<16x128xf32>
    %282 = vector.extract_strided_slice %190 {offsets = [512, 0], sizes = [128, 128], strides = [1, 1]} : vector<768x128xf32> to vector<128x128xf32>
    %cst_93 = arith.constant dense<0.000000e+00> : vector<16x128xf32>
    %283 = tpu.matmul %281, %282, %cst_93 {dimension_numbers = #tpu.dot_dimension_numbers<[1], [0], [0], [1], [0, 0, 1, 1], [], []>} : vector<16x128xf32>, vector<128x128xf32>, vector<16x128xf32> -> vector<16x128xf32>
    %284 = arith.addf %264, %283 : vector<16x128xf32>
    %285 = arith.addf %219, %284 : vector<16x128xf32>
    %286 = vector.broadcast %198 : vector<1x128xf32> to vector<16x128xf32>
    %287 = arith.addf %285, %286 : vector<16x128xf32>
    %cst_94 = arith.constant dense<0.000000e+00> : vector<16xf32>
    %288 = vector.multi_reduction <add>, %287, %cst_94 [1] : vector<16x128xf32> to vector<16xf32>
    %289 = vector.shape_cast %288 : vector<16xf32> to vector<16x1xf32>
    %cst_95 = arith.constant 3.125000e-02 : f32
    %290 = vector.broadcast %cst_95 : f32 to vector<16x1xf32>
    %291 = arith.mulf %289, %290 : vector<16x1xf32>
    %292 = vector.broadcast %291 : vector<16x1xf32> to vector<16x128xf32>
    %293 = arith.subf %287, %292 : vector<16x128xf32>
    %294 = vector.broadcast %6 : vector<1x128xf32> to vector<16x128xf32>
    %295 = arith.mulf %293, %294 : vector<16x128xf32>
    %296 = arith.mulf %295, %295 : vector<16x128xf32>
    %cst_96 = arith.constant dense<0.000000e+00> : vector<16xf32>
    %297 = vector.multi_reduction <add>, %296, %cst_96 [1] : vector<16x128xf32> to vector<16xf32>
    %298 = vector.shape_cast %297 : vector<16xf32> to vector<16x1xf32>
    %cst_97 = arith.constant 3.125000e-02 : f32
    %299 = vector.broadcast %cst_97 : f32 to vector<16x1xf32>
    %300 = arith.mulf %298, %299 : vector<16x1xf32>
    %301 = vector.broadcast %291 : vector<16x1xf32> to vector<16x128xf32>
    %302 = arith.subf %287, %301 : vector<16x128xf32>
    %cst_98 = arith.constant 9.99999974E-6 : f32
    %303 = vector.broadcast %cst_98 : f32 to vector<16x1xf32>
    %304 = arith.addf %300, %303 : vector<16x1xf32>
    %305 = math.rsqrt %304 : vector<16x1xf32>
    %306 = vector.broadcast %305 : vector<16x1xf32> to vector<16x128xf32>
    %307 = arith.mulf %302, %306 : vector<16x128xf32>
    %308 = vector.broadcast %199 : vector<1x128xf32> to vector<16x128xf32>
    %309 = arith.mulf %307, %308 : vector<16x128xf32>
    %310 = vector.broadcast %200 : vector<1x128xf32> to vector<16x128xf32>
    %311 = arith.addf %309, %310 : vector<16x128xf32>
    %312 = vector.extract_strided_slice %192 {offsets = [0, 768], sizes = [128, 128], strides = [1, 1]} : vector<128x896xf32> to vector<128x128xf32>
    %313 = vector.extract_strided_slice %190 {offsets = [640, 0], sizes = [128, 128], strides = [1, 1]} : vector<768x128xf32> to vector<128x128xf32>
    %cst_99 = arith.constant dense<0.000000e+00> : vector<16x128xf32>
    %314 = tpu.matmul %311, %312, %cst_99 {dimension_numbers = #tpu.dot_dimension_numbers<[1], [0], [0], [1], [0, 0, 1, 1], [], []>} : vector<16x128xf32>, vector<128x128xf32>, vector<16x128xf32> -> vector<16x128xf32>
    %315 = vector.broadcast %202 : vector<1x128xf32> to vector<16x128xf32>
    %316 = arith.addf %314, %315 : vector<16x128xf32>
    %cst_100 = arith.constant 5.000000e-01 : f32
    %317 = vector.broadcast %cst_100 : f32 to vector<16x128xf32>
    %318 = arith.mulf %317, %316 : vector<16x128xf32>
    %cst_101 = arith.constant 0.707106769 : f32
    %319 = vector.broadcast %cst_101 : f32 to vector<16x128xf32>
    %320 = arith.mulf %316, %319 : vector<16x128xf32>
    %cst_102 = arith.constant 0.000000e+00 : f32
    %321 = vector.broadcast %cst_102 : f32 to vector<16x128xf32>
    %322 = arith.cmpf oge, %320, %321 : vector<16x128xf32>
    %cst_103 = arith.constant 1.000000e+00 : f32
    %cst_104 = arith.constant -1.000000e+00 : f32
    %323 = vector.broadcast %cst_103 : f32 to vector<16x128xf32>
    %324 = vector.broadcast %cst_104 : f32 to vector<16x128xf32>
    %325 = arith.select %322, %323, %324 : vector<16x128xi1>, vector<16x128xf32>
    %326 = math.absf %320 : vector<16x128xf32>
    %cst_105 = arith.constant 0.327591091 : f32
    %327 = vector.broadcast %cst_105 : f32 to vector<16x128xf32>
    %328 = arith.mulf %327, %326 : vector<16x128xf32>
    %cst_106 = arith.constant 1.000000e+00 : f32
    %329 = vector.broadcast %cst_106 : f32 to vector<16x128xf32>
    %330 = arith.addf %329, %328 : vector<16x128xf32>
    %cst_107 = arith.constant 1.000000e+00 : f32
    %331 = vector.broadcast %cst_107 : f32 to vector<16x128xf32>
    %332 = arith.divf %331, %330 : vector<16x128xf32>
    %cst_108 = arith.constant 1.06140542 : f32
    %333 = vector.broadcast %cst_108 : f32 to vector<16x128xf32>
    %334 = arith.mulf %333, %332 : vector<16x128xf32>
    %cst_109 = arith.constant 1.45315206 : f32
    %335 = vector.broadcast %cst_109 : f32 to vector<16x128xf32>
    %336 = arith.subf %334, %335 : vector<16x128xf32>
    %337 = arith.mulf %336, %332 : vector<16x128xf32>
    %cst_110 = arith.constant 1.42141378 : f32
    %338 = vector.broadcast %cst_110 : f32 to vector<16x128xf32>
    %339 = arith.addf %337, %338 : vector<16x128xf32>
    %340 = arith.mulf %339, %332 : vector<16x128xf32>
    %cst_111 = arith.constant 0.284496725 : f32
    %341 = vector.broadcast %cst_111 : f32 to vector<16x128xf32>
    %342 = arith.subf %340, %341 : vector<16x128xf32>
    %343 = arith.mulf %342, %332 : vector<16x128xf32>
    %cst_112 = arith.constant 0.254829586 : f32
    %344 = vector.broadcast %cst_112 : f32 to vector<16x128xf32>
    %345 = arith.addf %343, %344 : vector<16x128xf32>
    %346 = arith.mulf %345, %332 : vector<16x128xf32>
    %cst_113 = arith.constant 0.000000e+00 : f32
    %347 = vector.broadcast %cst_113 : f32 to vector<16x128xf32>
    %348 = arith.subf %347, %326 : vector<16x128xf32>
    %349 = arith.mulf %348, %326 : vector<16x128xf32>
    %350 = math.exp %349 : vector<16x128xf32>
    %351 = arith.mulf %346, %350 : vector<16x128xf32>
    %cst_114 = arith.constant 1.000000e+00 : f32
    %352 = vector.broadcast %cst_114 : f32 to vector<16x128xf32>
    %353 = arith.subf %352, %351 : vector<16x128xf32>
    %354 = arith.mulf %325, %353 : vector<16x128xf32>
    %cst_115 = arith.constant 1.000000e+00 : f32
    %355 = vector.broadcast %cst_115 : f32 to vector<16x128xf32>
    %356 = arith.addf %355, %354 : vector<16x128xf32>
    %357 = arith.mulf %318, %356 : vector<16x128xf32>
    %cst_116 = arith.constant dense<0.000000e+00> : vector<16x128xf32>
    %358 = tpu.matmul %357, %313, %cst_116 {dimension_numbers = #tpu.dot_dimension_numbers<[1], [0], [0], [1], [0, 0, 1, 1], [], []>} : vector<16x128xf32>, vector<128x128xf32>, vector<16x128xf32> -> vector<16x128xf32>
    %359 = arith.addf %287, %358 : vector<16x128xf32>
    %360 = vector.broadcast %201 : vector<1x128xf32> to vector<16x128xf32>
    %361 = arith.addf %359, %360 : vector<16x128xf32>
    %c0_117 = arith.constant 0 : index
    %c0_118 = arith.constant 0 : index
    %c0_119 = arith.constant 0 : index
    %362 = vector.load %arg5[%c0_117, %c0_118, %c0_119] : memref<1x16x128xf32, #tpu.memory_space<vmem>>, vector<1x16x128xf32>
    %363 = vector.shape_cast %362 : vector<1x16x128xf32> to vector<16x128xf32>
    %364 = vector.shape_cast %361 : vector<16x128xf32> to vector<1x16x128xf32>
    tpu.vector_store %arg5[%c0_117, %c0_118, %c0_119], %364 {strides = array<i32>} : memref<1x16x128xf32, #tpu.memory_space<vmem>>, vector<1x16x128xf32>,
    return
  }
  func.func @transform_0(%arg0: i32) -> (i32, i32, i32) {
    %c0_i32 = arith.constant 0 : i32
    %c0_i32_0 = arith.constant 0 : i32
    %c0_i32_1 = arith.constant 0 : i32
    return %arg0, %c0_i32, %c0_i32_0 : i32, i32, i32
  }
  func.func @transform_1(%arg0: i32) -> (i32, i32, i32) {
    %c0_i32 = arith.constant 0 : i32
    %c0_i32_0 = arith.constant 0 : i32
    %c0_i32_1 = arith.constant 0 : i32
    %c0_i32_2 = arith.constant 0 : i32
    return %c0_i32, %c0_i32_0, %c0_i32_1 : i32, i32, i32
  }
  func.func @transform_2(%arg0: i32) -> (i32, i32, i32) {
    %c0_i32 = arith.constant 0 : i32
    %c0_i32_0 = arith.constant 0 : i32
    %c0_i32_1 = arith.constant 0 : i32
    %c0_i32_2 = arith.constant 0 : i32
    return %c0_i32, %c0_i32_0, %c0_i32_1 : i32, i32, i32
  }
  func.func @transform_3(%arg0: i32) -> (i32, i32, i32) {
    %c0_i32 = arith.constant 0 : i32
    %c0_i32_0 = arith.constant 0 : i32
    %c0_i32_1 = arith.constant 0 : i32
    %c0_i32_2 = arith.constant 0 : i32
    return %c0_i32, %c0_i32_0, %c0_i32_1 : i32, i32, i32
  }
  func.func @transform_4(%arg0: i32) -> (i32, i32, i32) {
    %c0_i32 = arith.constant 0 : i32
    %c0_i32_0 = arith.constant 0 : i32
    %c0_i32_1 = arith.constant 0 : i32
    return %arg0, %c0_i32, %c0_i32_0 : i32, i32, i32
  }
}

</mosaic_0001>

<bundles_post_ra>
// kernel: backbone_pallas.1
= control target key start
LH: loop header
LB: loop body
LE: loop exit
PB: predicated region body
PF: predicated region fallthrough
CT: control target
= control target key end

     0   :  { %9 = vsyncpa [#allocation3], 0  ;;  %s4187_s0 = inlined_call_operand.vmem [shape: f32[2,16,128], index: 0, kind: input, shape index: {}]   ;;  %s4188_s1 = inlined_call_operand.vmem [shape: f32[2,768,128], index: 1, kind: input, shape index: {}]   ;;  %s4189_s2 = inlined_call_operand.vmem [shape: f32[2,128,896], index: 2, kind: input, shape index: {}]   ;;  %s4190_s3 = inlined_call_operand.vmem [shape: f32[2,8,128], index: 3, kind: input, shape index: {}]   ;;  %s4191_s4 = inlined_call_operand.hbm [shape: f32[2,16,128], index: 4, kind: output, shape index: {}]  }
   0x1   :  { %11 = vsyncpa [#allocation3 + $0x1], 0  ;;  %s2576_s15 = smov 0   ;;  %s2578_s16 = smov 0  }
   0x2   :  { %s2580_s17 = smov 0   ;;  %s2582_s18 = smov 0  }
   0x3 LB: > { %s2597_s19 = sadd.s32 4294967295, %s2545_s18   ;;  %s2132_s20 = sadd.s32 4294967294, %s2545_s18   ;;  %s2545_s18 = sphi %s2582_s18, %s4197_s18   ;;  %s2541_s17 = sphi %s2580_s17, %s4196_s17   ;;  %s2537_s16 = sphi %s2578_s16, %s4195_s16   ;;  %s2533_s15 = sphi %s2576_s15, %s4194_s15  }
   0x4   : > { %s2601_s21 = sadd.s32 1, %s2545_s18   ;;  %s113_s22 = sadd.s32 1, %s2541_s17 }
   0x5   : > { %s110_s23 = ssub.s32 %s2545_s18, %s2601_s21  ;;  %p123_p0 = scmp.ne.s32.totalorder %s2541_s17, %s2537_s16 }
   0x6   : > { %p111_p1 = scmp.eq.s32.totalorder %s110_s23, 0  ;;  %p124_p2 = scmp.eq.s32.totalorder %s2597_s19, 1 }
   0x7   : > { %p129_p3 = scmp.ne.s32.totalorder %s2537_s16, %s2533_s15  ;;  %p130_p4 = scmp.eq.s32.totalorder %s2132_s20, 1 }
   0x8   : > { %s2612_s24 = scalar_select %p111_p1, %s2541_s17, %s113_s22  }
   0x9   : > { %p2614_p5 = por %p124_p2, %p123_p0  ;;  %p2618_p6 = por %p130_p4, %p129_p3 }
   0xa   : > { %p2135_p7 = scmp.ge.s32.totalorder %s2545_s18, 1  ;;  %p165_p8 = scmp.lt.s32.totalorder %s2545_s18, 3 }
   0xc   : > { %p166_p9 = pnand %p2135_p7, %p165_p8 }
   0xd   : > { %p191_p10 = scmp.lt.s32.totalorder (!%p166_p9), %s2597_s19, 1  ;;  %s188_s14 = sand.u32 (!%p166_p9), 1, %s2537_s16  }
   0xe   : > { %169 = sbr.rel (%p166_p9) target bundleno = 4768 (0x12a0), region = 36  ;;  %s2373_s20 = sshll.u32 (!%p166_p9), %s2597_s19, 4 }
   0xf   : > { %s2066_s28 = scalar_lea.hbm (!%p166_p9), %s4191_s4, %s2373_s20  ;;  %s2055_s6 = scalar_lea.sflag (!%p166_p9), [#allocation3], %s188_s14 }
  0x10   : > { %s2069_s30 = sshll.u32 (!%p166_p9), %s2066_s28, 4  ;;  %s2503_s11 = scalar_lea.hbm (!%p166_p9), %s4191_s4, 32  ;;  %s2070_s30 = int_to_ptr.hbm [resolvable:$true] %s2069_s30 }
  0x11   : > { %s2497_s7 = sshra.s32 (!%p166_p9), %s2070_s30, 4  ;;  %s2498_s7 = int_to_ptr.hbm [resolvable:$true] %s2497_s7 }
  0x12   : > { %p2504_p0 = scmp.lt.s32.totalorder (!%p166_p9), %s2498_s7, %s4191_s4 }
  0x13   : > { %v265_v0 = vld [vmem:[%s4188_s1 + $0x178] sm:$0xff]  ;;  %v264_v1 = vld [vmem:[%s4188_s1 + $0x170] sm:$0xff]  ;;  %v198_v3 = vlaneseq  ;;  %v263_v6 = vld [vmem:[%s4188_s1 + $0x168] sm:$0xff]  ;;  %v2547_v14 = vmov 0.0   ;;  %s192_s9 = scalar_select %p191_p10, %s2597_s19, 1  ;;  %vm657_vm11 = vcmask 130048  }
  0x14   : > { %v249_v2 = vld [vmem:[%s4188_s1 + $0xf8] sm:$0xff]  ;;  %487 = vmatpush.msra.mxu2 %v265_v0  ;;  %v248_v5 = vld [vmem:[%s4188_s1 + $0xf0] sm:$0xff]  ;;  %v247_v8 = vld [vmem:[%s4188_s1 + $0xe8] sm:$0xff]  ;;  %s2499_s19 = scalar_lea.hbm %s2498_s7, 16 }
  0x15   : > { %441 = vmatpush.msra.mxu0 %v249_v2  ;;  %v233_v4 = vld [vmem:[%s4188_s1 + $0x78] sm:$0xff]  ;;  %v232_v7 = vld [vmem:[%s4188_s1 + $0x70] sm:$0xff]  ;;  %v199_v9 = vand.u32 127, %v198_v3  ;;  %v231_v10 = vld [vmem:[%s4188_s1 + $0x68] sm:$0xff]  ;;  %s2372_s5 = sshll.u32 %s192_s9, 4  ;;  %v2744_v42 = vshrl.u32 %v198_v3, 7  ;;  %p2500_p11 = scmp.ne.s32.totalorder %s2498_s7, %s2499_s19 }
  0x16   : > { %464 = vmatpush.msra.mxu1 %v233_v4  ;;  %488 = vmatpush.msra.mxu2 %v264_v1  ;;  %v262_v11 = vld [vmem:[%s4188_s1 + $0x160] sm:$0xff]  ;;  %v261_v16 = vld [vmem:[%s4188_s1 + $0x158] sm:$0xff]  ;;  %v260_v19 = vld [vmem:[%s4188_s1 + $0x150] sm:$0xff]  ;;  %s195_s27 = scalar_lea.vmem %s4187_s0, %s2372_s5  ;;  %s2136_s9 = sshll.u32 %s188_s14, 4 }
  0x17   : > { %442 = vmatpush.msra.mxu0 %v248_v5  ;;  %v246_v12 = vld [vmem:[%s4188_s1 + $0xe0] sm:$0xff]  ;;  %vm200_vm0 = vcmp.lt.s32.totalorder %v199_v9, 32  ;;  %v245_v17 = vld [vmem:[%s4188_s1 + $0xd8] sm:$0xff]  ;;  %v244_v20 = vld [vmem:[%s4188_s1 + $0xd0] sm:$0xff]  ;;  %vm206_vm1 = vcmp.gt.s32.totalorder %v2744_v42, 0  ;;  %vm429_vm2 = vcmp.lt.s32.totalorder %v2744_v42, 1  ;;  %p2501_p12 = pnand %p2500_p11, %p2614_p5  ;;  %p2505_p1 = scmp.lt.s32.totalorder %s2503_s11, %s2499_s19 }
  0x18   : > { %465 = vmatpush.msra.mxu1 %v232_v7  ;;  %489 = vmatpush.msra.mxu2 %v263_v6  ;;  %v230_v13 = vld [vmem:[%s4188_s1 + $0x60] sm:$0xff]  ;;  %v2662_v15 = vsel %vm200_vm0, 1.0, %v2547_v14  ;;  %v229_v18 = vld [vmem:[%s4188_s1 + $0x58] sm:$0xff]  ;;  %v228_v21 = vld [vmem:[%s4188_s1 + $0x50] sm:$0xff]  ;;  %vm436_vm3 = vcmp.lt.s32.totalorder %v2744_v42, 7  ;;  %v2776_v55 = vsel %vm206_vm1, 1.0, %v2547_v14 }
  0x19   : > { %443 = vmatpush.msra.mxu0 %v247_v8  ;;  %v259_v22 = vld [vmem:[%s4188_s1 + $0x148] sm:$0xff]  ;;  %v258_v25 = vld [vmem:[%s4188_s1 + $0x140] sm:$0xff]  ;;  %v257_v28 = vld [vmem:[%s4188_s1 + $0x138] sm:$0xff]  ;;  %v205_v57 = vadd.s32 8, %v2744_v42  ;;  %s190_s22 = scalar_lea.vmem [#allocation2], %s2136_s9  ;;  %p2502_p13 = pneg %p2501_p12 }
  0x1a   : > { %466 = vmatpush.msra.mxu1 %v231_v10  ;;  %490 = vmatpush.msra.mxu2 %v262_v11  ;;  %v243_v23 = vld [vmem:[%s4188_s1 + $0xc8] sm:$0xff]  ;;  %v242_v26 = vld [vmem:[%s4188_s1 + $0xc0] sm:$0xff]  ;;  %v241_v29 = vld [vmem:[%s4188_s1 + $0xb8] sm:$0xff]  ;;  %s2067_s29 = sshll.u32 %s190_s22, 4  ;;  %p2506_p2 = por %p2505_p1, %p2504_p0  ;;  %s2068_s29 = int_to_ptr.vmem [resolvable:$true] %s2067_s29 }
  0x1b   : > { %444 = vmatpush.msra.mxu0 %v246_v12  ;;  %v227_v24 = vld [vmem:[%s4188_s1 + $0x48] sm:$0xff]  ;;  %v226_v27 = vld [vmem:[%s4188_s1 + $0x40] sm:$0xff]  ;;  %v225_v30 = vld [vmem:[%s4188_s1 + $0x38] sm:$0xff]  ;;  %vm213_vm4 = vcmp.lt.s32.totalorder %v205_v57, 15 }
  0x1c   : > { %467 = vmatpush.msra.mxu1 %v230_v13  ;;  %491 = vmatpush.msra.mxu2 %v261_v16  ;;  %v256_v31 = vld [vmem:[%s4188_s1 + $0x130] sm:$0xff]  ;;  %v255_v34 = vld [vmem:[%s4188_s1 + $0x128] sm:$0xff]  ;;  %v254_v37 = vld [vmem:[%s4188_s1 + $0x120] sm:$0xff]  ;;  %v2797_v0 = vsel %vm213_vm4, 1.0, %v2547_v14  ;;  %p2507_p3 = pnand %p2506_p2, %p2502_p13 }
  0x1d   : > { %445 = vmatpush.msra.mxu0 %v245_v17  ;;  %v240_v32 = vld [vmem:[%s4188_s1 + $0xb0] sm:$0xff]  ;;  %v239_v35 = vld [vmem:[%s4188_s1 + $0xa8] sm:$0xff]  ;;  %v238_v38 = vld [vmem:[%s4188_s1 + $0xa0] sm:$0xff] }
  0x1e   : > { %468 = vmatpush.msra.mxu1 %v229_v18  ;;  %492 = vmatpush.msra.mxu2 %v260_v19  ;;  %v224_v33 = vld [vmem:[%s4188_s1 + $0x30] sm:$0xff]  ;;  %v223_v36 = vld [vmem:[%s4188_s1 + $0x28] sm:$0xff]  ;;  %v222_v39 = vld [vmem:[%s4188_s1 + $0x20] sm:$0xff] }
  0x1f   : > { %446 = vmatpush.msra.mxu0 %v244_v20  ;;  %v196_v40 = vld [vmem:[%s195_s27] sm:$0xff]  ;;  %v2741_v41 = vld [vmem:[%s195_s27 + $0x8] sm:$0xff]  ;;  %v253_v43 = vld [vmem:[%s4188_s1 + $0x118] sm:$0xff] }
  0x20   : > { %469 = vmatpush.msra.mxu1 %v228_v21  ;;  %493 = vmatpush.msra.mxu2 %v259_v22  ;;  %v237_v44 = vld [vmem:[%s4188_s1 + $0x98] sm:$0xff]  ;;  %v427_v45 = vrot.slane %v196_v40, 7  ;;  %v428_v46 = vrot.slane %v2741_v41, 7  ;;  %v252_v48 = vld [vmem:[%s4188_s1 + $0x110] sm:$0xff]  ;;  %v434_v51 = vrot.slane %v196_v40, 1  ;;  %v435_v52 = vrot.slane %v2741_v41, 1 }
  0x21   : > { %447 = vmatpush.msra.mxu0 %v243_v23  ;;  %v221_v47 = vld [vmem:[%s4188_s1 + $0x18] sm:$0xff]  ;;  %v236_v49 = vld [vmem:[%s4188_s1 + $0x90] sm:$0xff]  ;;  %v251_v53 = vld [vmem:[%s4188_s1 + $0x108] sm:$0xff] }
  0x22   : > { %470 = vmatpush.msra.mxu1 %v227_v24  ;;  %494 = vmatpush.msra.mxu2 %v258_v25  ;;  %v220_v50 = vld [vmem:[%s4188_s1 + $0x10] sm:$0xff]  ;;  %v235_v54 = vld [vmem:[%s4188_s1 + $0x88] sm:$0xff]  ;;  %v431_v56 = vsel %vm429_vm2, %v428_v46, %v427_v45  ;;  %v250_v59 = vld [vmem:[%s4188_s1 + $0x100] sm:$0xff]  ;;  %v437_v61 = vsel %vm436_vm3, %v434_v51, %v435_v52  ;;  %v438_v1 = vsel %vm436_vm3, %v435_v52, %v434_v51 }
  0x23   : > { %448 = vmatpush.msra.mxu0 %v242_v26  ;;  %v219_v58 = vld [vmem:[%s4188_s1 + $0x8] sm:$0xff]  ;;  %v234_v60 = vld [vmem:[%s4188_s1 + $0x80] sm:$0xff]  ;;  %v432_v63 = vmul.f32 %v2776_v55, %v431_v56  ;;  %v440_v2 = vmul.f32 %v2797_v0, %v438_v1  ;;  %v430_v3 = vsel %vm429_vm2, %v427_v45, %v428_v46  ;;  %v420_v21 = vld [vmem:[%s4189_s2 + $0x350] sm:$0xff] }
  0x24   : > { %471 = vmatpush.msra.mxu1 %v226_v27  ;;  %495 = vmatpush.msra.mxu2 %v257_v28  ;;  %v218_v62 = vld [vmem:[%s4188_s1] sm:$0xff]  ;;  %v413_v22 = vld [vmem:[%s4189_s2 + $0x318] sm:$0xff]  ;;  %v419_v24 = vld [vmem:[%s4189_s2 + $0x348] sm:$0xff] }
  0x25   : > { %449 = vmatpush.msra.mxu0 %v241_v29  ;;  %v2808_v7 = vld [vmem:[%s4190_s3] sm:$0xff]  ;;  %565 = vmatpush.msra.mxu3 %v419_v24  ;;  %v421_v25 = vld [vmem:[%s4189_s2 + $0x358] sm:$0xff]  ;;  %v412_v26 = vld [vmem:[%s4189_s2 + $0x310] sm:$0xff] }
  0x26   : > { %472 = vmatpush.msra.mxu1 %v225_v30  ;;  %496 = vmatpush.msra.mxu2 %v256_v31  ;;  %v514_v10 = vperm.slane %v2808_v7, 0  ;;  %v406_v23 = vld [vmem:[%s4189_s2 + $0x2e0] sm:$0xff]  ;;  %v399_v27 = vld [vmem:[%s4189_s2 + $0x2a8] sm:$0xff]  ;;  %v392_v29 = vld [vmem:[%s4189_s2 + $0x270] sm:$0xff] }
  0x27   : > { %450 = vmatpush.msra.mxu0 %v240_v32  ;;  %v414_v28 = vld [vmem:[%s4189_s2 + $0x320] sm:$0xff]  ;;  %566 = vmatpush.msra.mxu3 %v412_v26  ;;  %v385_v30 = vld [vmem:[%s4189_s2 + $0x238] sm:$0xff]  ;;  %v371_v32 = vld [vmem:[%s4189_s2 + $0x1c8] sm:$0xff] }
  0x28   : > { %473 = vmatpush.msra.mxu1 %v224_v33  ;;  %497 = vmatpush.msra.mxu2 %v255_v34  ;;  %v378_v31 = vld [vmem:[%s4189_s2 + $0x200] sm:$0xff]  ;;  %v364_v33 = vld [vmem:[%s4189_s2 + $0x190] sm:$0xff]  ;;  %v357_v45 = vld [vmem:[%s4189_s2 + $0x158] sm:$0xff] }
  0x29   : > { %451 = vmatpush.msra.mxu0 %v239_v35  ;;  %v405_v46 = vld [vmem:[%s4189_s2 + $0x2d8] sm:$0xff]  ;;  %v343_v51 = vld [vmem:[%s4189_s2 + $0xe8] sm:$0xff]  ;;  %v384_v56 = vld [vmem:[%s4189_s2 + $0x230] sm:$0xff] }
  0x2a   : > { %474 = vmatpush.msra.mxu1 %v223_v36  ;;  %498 = vmatpush.msra.mxu2 %v254_v37  ;;  %v391_v52 = vld [vmem:[%s4189_s2 + $0x268] sm:$0xff]  ;;  %v386_v57 = vld [vmem:[%s4189_s2 + $0x240] sm:$0xff]  ;;  %v321_v24 = vld [vmem:[%s4189_s2 + $0x38] sm:$0xff] }
  0x2b   : > { %452 = vmatpush.msra.mxu0 %v238_v38  ;;  %567 = vmatpush.msra.mxu3 %v405_v46  ;;  %v315_v1 = vld [vmem:[%s4189_s2 + $0x8] sm:$0xff]  ;;  %v382_v26 = vld [vmem:[%s4189_s2 + $0x220] sm:$0xff] }
  0x2c   : > { %475 = vmatpush.msra.mxu1 %v222_v39  ;;  %499 = vmatpush.msra.mxu2 %v253_v43 }
  0x2d   : > { %453 = vmatpush.msra.mxu0 %v237_v44 }
  0x2e   : > { %476 = vmatpush.msra.mxu1 %v221_v47  ;;  %500 = vmatpush.msra.mxu2 %v252_v48  ;;  %v407_v47 = vld [vmem:[%s4189_s2 + $0x2e8] sm:$0xff]  ;;  %v350_v48 = vld [vmem:[%s4189_s2 + $0x120] sm:$0xff] }
  0x2f   : > { %454 = vmatpush.msra.mxu0 %v236_v49  ;;  %v398_v49 = vld [vmem:[%s4189_s2 + $0x2a0] sm:$0xff] }
  0x30   : > { %477 = vmatpush.msra.mxu1 %v220_v50  ;;  %501 = vmatpush.msra.mxu2 %v251_v53  ;;  %v400_v50 = vld [vmem:[%s4189_s2 + $0x2b0] sm:$0xff]  ;;  %v393_v53 = vld [vmem:[%s4189_s2 + $0x278] sm:$0xff] }
  0x31   : > { %455 = vmatpush.msra.mxu0 %v235_v54  ;;  %568 = vmatpush.msra.mxu3 %v398_v49  ;;  %v336_v54 = vld [vmem:[%s4189_s2 + $0xb0] sm:$0xff] }
  0x32   : > { %478 = vmatpush.msra.mxu1 %v219_v58  ;;  %502 = vmatpush.msra.mxu2 %v250_v59  ;;  %v329_v58 = vld [vmem:[%s4189_s2 + $0x78] sm:$0xff] }
  0x33   : > { %456 = vmatpush.msra.mxu0 %v234_v60  ;;  %503 = vmatmul.f32.vlgmr.msra.gmra.mxu2 %v437_v61  ;;  %v377_v59 = vld [vmem:[%s4189_s2 + $0x1f8] sm:$0xff]  ;;  %v379_v60 = vld [vmem:[%s4189_s2 + $0x208] sm:$0xff]  ;;  %v322_v61 = vld [vmem:[%s4189_s2 + $0x40] sm:$0xff] }
  0x34   : > { %479 = vmatpush.msra.mxu1 %v218_v62  ;;  %457 = vmatmul.f32.vlgmr.msra.gmra.mxu0 %v196_v40  ;;  %v370_v62 = vld [vmem:[%s4189_s2 + $0x1c0] sm:$0xff] }
  0x35   : > { %480 = vmatmul.f32.vlgmr.msra.gmra.mxu1 %v432_v63  ;;  %588 = vmatpush.msrb.mxu0 %v420_v21  ;;  %v372_v63 = vld [vmem:[%s4189_s2 + $0x1d0] sm:$0xff] }
  0x36   : > { %611 = vmatpush.msrb.mxu1 %v421_v25  ;;  %569 = vmatpush.msra.mxu3 %v391_v52  ;;  %v328_v21 = vld [vmem:[%s4189_s2 + $0x70] sm:$0xff]  ;;  %v323_v25 = vld [vmem:[%s4189_s2 + $0x48] sm:$0xff] }
  0x37   : > { %589 = vmatpush.msrb.mxu0 %v413_v22  ;;  %v330_v22 = vld [vmem:[%s4189_s2 + $0x80] sm:$0xff] }
  0x38   : > { %612 = vmatpush.msrb.mxu1 %v414_v28  ;;  %570 = vmatpush.msra.mxu3 %v384_v56  ;;  %v316_v28 = vld [vmem:[%s4189_s2 + $0x10] sm:$0xff]  ;;  %v559_v56 = vperm.slane %v2808_v7, 1 }
  0x39   : > { %590 = vmatpush.msrb.mxu0 %v406_v23  ;;  %v389_v23 = vld [vmem:[%s4189_s2 + $0x258] sm:$0xff] }
  0x3a   : > { %613 = vmatpush.msrb.mxu1 %v407_v47  ;;  %571 = vmatpush.msra.mxu3 %v377_v59  ;;  %v562_v59 = vperm.slane %v2808_v7, 2 }
  0x3b   : > { %506 = vmatmul.f32.gmra.mxu2 %v440_v2  ;;  %591 = vmatpush.msrb.mxu0 %v399_v27  ;;  %v363_v2 = vld [vmem:[%s4189_s2 + $0x188] sm:$0xff]  ;;  %v314_v27 = vld [vmem:[%s4189_s2] sm:$0xff] }
  0x3c   : > { %460 = vmatmul.f32.gmra.mxu0 %v2741_v41  ;;  %614 = vmatpush.msrb.mxu1 %v400_v50 }
  0x3d   : > { %483 = vmatmul.f32.gmra.mxu1 %v430_v3  ;;  %592 = vmatpush.msrb.mxu0 %v392_v29  ;;  %v365_v3 = vld [vmem:[%s4189_s2 + $0x198] sm:$0xff]  ;;  %v375_v29 = vld [vmem:[%s4189_s2 + $0x1e8] sm:$0xff] }
  0x3e   : > { %615 = vmatpush.msrb.mxu1 %v393_v53  ;;  %572 = vmatpush.msra.mxu3 %v370_v62 }
  0x3f   : > { %593 = vmatpush.msrb.mxu0 %v385_v30  ;;  %v368_v30 = vld [vmem:[%s4189_s2 + $0x1b0] sm:$0xff] }
  0x40   : > { %616 = vmatpush.msrb.mxu1 %v386_v57  ;;  %573 = vmatpush.msra.mxu3 %v363_v2 }
  0x41   : > { %594 = vmatpush.msrb.mxu0 %v378_v31 }
  0x42   : > { %617 = vmatpush.msrb.mxu1 %v379_v60 }
  0x43   : > { %595 = vmatpush.msrb.mxu0 %v371_v32  ;;  %v361_v32 = vld [vmem:[%s4189_s2 + $0x178] sm:$0xff] }
  0x44   : > { %618 = vmatpush.msrb.mxu1 %v372_v63 }
  0x45   : > { %596 = vmatpush.msrb.mxu0 %v364_v33 }
  0x46   : > { %619 = vmatpush.msrb.mxu1 %v365_v3 }
  0x47   : > { %597 = vmatpush.msrb.mxu0 %v357_v45  ;;  %v319_v45 = vld [vmem:[%s4189_s2 + $0x28] sm:$0xff] }
  0x49   : > { %598 = vmatpush.msrb.mxu0 %v350_v48 }
  0x4b   : > { %599 = vmatpush.msrb.mxu0 %v343_v51 }
  0x4d   : > { %600 = vmatpush.msrb.mxu0 %v336_v54 }
  0x4f   : > { %601 = vmatpush.msrb.mxu0 %v329_v58 }
  0x51   : > { %602 = vmatpush.msrb.mxu0 %v322_v61 }
  0x53   : > { %603 = vmatpush.msrb.mxu0 %v315_v1 }
  0xb1   : > { %v458_v4 = vpop.f32.mrf.mxu0 }
  0xb2   : > { %v481_v5 = vpop.f32.mrf.mxu1 }
  0xb3   : > { %v482_v6 = vadd.f32 %v481_v5, %v458_v4  ;;  %v424_v4 = vld [vmem:[%s4189_s2 + $0x370] sm:$0xff] }
  0xb4   : > { %781 = vmatpush.msra.mxu0 %v424_v4  ;;  %v356_v5 = vld [vmem:[%s4189_s2 + $0x150] sm:$0xff] }
  0xb5   : > { %574 = vmatpush.msra.mxu3 %v356_v5 }
  0xb6   : > { %v504_v8 = vpop.f32.mrf.mxu2 }
  0xb7   : > { %v510_v9 = vadd.f32 %v504_v8, %v482_v6  ;;  %v358_v6 = vld [vmem:[%s4189_s2 + $0x160] sm:$0xff]  ;;  %v417_v8 = vld [vmem:[%s4189_s2 + $0x338] sm:$0xff] }
  0xb8   : > { %620 = vmatpush.msrb.mxu1 %v358_v6  ;;  %782 = vmatpush.msra.mxu0 %v417_v8 }
  0xb9   : > { %v512_v11 = vadd.f32 %v510_v9, %v196_v40  ;;  %v461_v12 = vpop.f32.mrf.mxu0  ;;  %v349_v9 = vld [vmem:[%s4189_s2 + $0x118] sm:$0xff] }
  0xba   : > { %v484_v13 = vpop.f32.mrf.mxu1  ;;  %575 = vmatpush.msra.mxu3 %v349_v9 }
  0xbb   : > { %v485_v14 = vadd.f32 %v484_v13, %v461_v12  ;;  %v2811_v16 = vadd.f32 %v514_v10, %v512_v11  ;;  %v410_v11 = vld [vmem:[%s4189_s2 + $0x300] sm:$0xff]  ;;  %v344_v13 = vld [vmem:[%s4189_s2 + $0xf0] sm:$0xff] }
  0xbc   : > { %783 = vmatpush.msra.mxu0 %v410_v11  ;;  %v342_v12 = vld [vmem:[%s4189_s2 + $0xe0] sm:$0xff] }
  0xbd   : > { %517 = vadd.xlane.f32.xlu0 %v2811_v16  ;;  %576 = vmatpush.msra.mxu3 %v342_v12  ;;  %v415_v12 = vld [vmem:[%s4189_s2 + $0x328] sm:$0xff] }
  0xbe   : > { %v507_v17 = vpop.f32.mrf.mxu2 }
  0xbf   : > { %v511_v18 = vadd.f32 %v507_v17, %v485_v14  ;;  %v403_v14 = vld [vmem:[%s4189_s2 + $0x2c8] sm:$0xff] }
  0xc0   : > { %784 = vmatpush.msra.mxu0 %v403_v14  ;;  %v335_v17 = vld [vmem:[%s4189_s2 + $0xa8] sm:$0xff]  ;;  %v401_v14 = vld [vmem:[%s4189_s2 + $0x2b8] sm:$0xff] }
  0xc1   : > { %v513_v19 = vadd.f32 %v511_v18, %v2741_v41  ;;  %v337_v18 = vld [vmem:[%s4189_s2 + $0xb8] sm:$0xff]  ;;  %577 = vmatpush.msra.mxu3 %v335_v17  ;;  %v394_v17 = vld [vmem:[%s4189_s2 + $0x280] sm:$0xff] }
  0xc3   : > { %v2815_v20 = vadd.f32 %v514_v10, %v513_v19  ;;  %v351_v10 = vld [vmem:[%s4189_s2 + $0x128] sm:$0xff]  ;;  %v396_v19 = vld [vmem:[%s4189_s2 + $0x290] sm:$0xff]  ;;  %578 = vmatpush.msra.mxu3 %v328_v21 }
  0xc4   : > { %621 = vmatpush.msrb.mxu1 %v351_v10  ;;  %785 = vmatpush.msra.mxu0 %v396_v19  ;;  %v380_v21 = vld [vmem:[%s4189_s2 + $0x210] sm:$0xff] }
  0xc5   : > { %519 = vadd.xlane.f32.xlu0 %v2815_v20  ;;  %579 = vmatpush.msra.mxu3 %v321_v24  ;;  %v359_v24 = vld [vmem:[%s4189_s2 + $0x168] sm:$0xff] }
  0xc6   : > { %622 = vmatpush.msrb.mxu1 %v344_v13  ;;  %786 = vmatpush.msra.mxu0 %v389_v23  ;;  %v408_v13 = vld [vmem:[%s4189_s2 + $0x2f0] sm:$0xff]  ;;  %v366_v23 = vld [vmem:[%s4189_s2 + $0x1a0] sm:$0xff] }
  0xc7   : > { %580 = vmatpush.msra.mxu3 %v314_v27  ;;  %v338_v27 = vld [vmem:[%s4189_s2 + $0xc0] sm:$0xff] }
  0xc8   : > { %623 = vmatpush.msrb.mxu1 %v337_v18  ;;  %787 = vmatpush.msra.mxu0 %v382_v26  ;;  %v387_v18 = vld [vmem:[%s4189_s2 + $0x248] sm:$0xff]  ;;  %v345_v26 = vld [vmem:[%s4189_s2 + $0xf8] sm:$0xff] }
  0xca   : > { %624 = vmatpush.msrb.mxu1 %v330_v22  ;;  %788 = vmatpush.msra.mxu0 %v375_v29  ;;  %v373_v22 = vld [vmem:[%s4189_s2 + $0x1d8] sm:$0xff]  ;;  %v324_v29 = vld [vmem:[%s4189_s2 + $0x50] sm:$0xff] }
  0xcc   : > { %625 = vmatpush.msrb.mxu1 %v323_v25  ;;  %789 = vmatpush.msra.mxu0 %v368_v30  ;;  %v352_v25 = vld [vmem:[%s4189_s2 + $0x130] sm:$0xff]  ;;  %v317_v30 = vld [vmem:[%s4189_s2 + $0x18] sm:$0xff] }
  0xce   : > { %626 = vmatpush.msrb.mxu1 %v316_v28  ;;  %790 = vmatpush.msra.mxu0 %v361_v32  ;;  %v331_v28 = vld [vmem:[%s4189_s2 + $0x88] sm:$0xff] }
 0x130   : > { %v518_v34 = vpop.xlane.xlu0 %517 }
 0x131   : > { %v521_v35 = vmul.f32 0.03125, %v518_v34  ;;  %v354_v34 = vld [vmem:[%s4189_s2 + $0x140] sm:$0xff] }
 0x132   : > { %791 = vmatpush.msra.mxu0 %v354_v34 }
 0x133   : > { %v2858_v36 = vsub.f32 %v2811_v16, %v521_v35 }
 0x135   : > { %v525_v37 = vmul.f32 %v2662_v15, %v2858_v36 }
 0x137   : > { %v527_v38 = vmul.f32 %v525_v37, %v525_v37  ;;  %v347_v37 = vld [vmem:[%s4189_s2 + $0x108] sm:$0xff] }
 0x138   : > { %v520_v39 = vpop.xlane.xlu0 %519  ;;  %792 = vmatpush.msra.mxu0 %v347_v37 }
 0x139   : > { %v522_v40 = vmul.f32 0.03125, %v520_v39  ;;  %529 = vadd.xlane.f32.xlu1 %v527_v38  ;;  %v340_v38 = vld [vmem:[%s4189_s2 + $0xd0] sm:$0xff]  ;;  %v333_v39 = vld [vmem:[%s4189_s2 + $0x98] sm:$0xff] }
 0x13a   : > { %793 = vmatpush.msra.mxu0 %v340_v38 }
 0x13b   : > { %v2863_v41 = vsub.f32 %v2815_v20, %v522_v40 }
 0x13c   : > { %794 = vmatpush.msra.mxu0 %v333_v39 }
 0x13d   : > { %v526_v43 = vmul.f32 %v2662_v15, %v2863_v41 }
 0x13f   : > { %v528_v44 = vmul.f32 %v526_v43, %v526_v43  ;;  %v326_v43 = vld [vmem:[%s4189_s2 + $0x60] sm:$0xff] }
 0x140   : > { %795 = vmatpush.msra.mxu0 %v326_v43 }
 0x141   : > { %531 = vadd.xlane.f32.xlu1 %v528_v44 }
 0x142   : > { %796 = vmatpush.msra.mxu0 %v319_v45 }
 0x1ac   : > { %v530_v31 = vpop.xlane.xlu1 %529 }
 0x1ad   : > { %v533_v33 = vmul.f32 0.03125, %v530_v31 }
 0x1af   : > { %v535_v35 = vadd.f32 1e-05, %v533_v33 }
 0x1b1   : > { %2417 = vrsqrt.f32 %v535_v35  ;;  %vm543_vm6 = vweird.f32 %v535_v35 }
 0x1b4   : > { %v532_v40 = vpop.xlane.xlu1 %531 }
 0x1b5   : > { %v534_v44 = vmul.f32 0.03125, %v532_v40 }
 0x1b7   : > { %v2418_v46 = vpop.eup %2417  ;;  %v536_v47 = vadd.f32 1e-05, %v534_v44 }
 0x1b8   : > { %v538_v48 = vmul.f32 %v2418_v46, %v535_v35  ;;  %vm544_vm5 = vweird.f32 %v2418_v46 }
 0x1b9   : > { %2419 = vrsqrt.f32 %v536_v47  ;;  %vm545_vm7 = vmor %vm543_vm6, %vm544_vm5  ;;  %vm553_vm9 = vweird.f32 %v536_v47 }
 0x1ba   : > { %v539_v49 = vmul.f32 %v2418_v46, %v538_v48  ;;  %v423_v48 = vld [vmem:[%s4189_s2 + $0x368] sm:$0xff] }
 0x1bc   : > { %v540_v50 = vmul.f32 0.5, %v539_v49  ;;  %v416_v49 = vld [vmem:[%s4189_s2 + $0x330] sm:$0xff] }
 0x1be   : > { %v541_v51 = vsub.f32 1.5, %v540_v50  ;;  %v409_v50 = vld [vmem:[%s4189_s2 + $0x2f8] sm:$0xff] }
 0x1bf   : > { %v2420_v52 = vpop.eup %2419 }
 0x1c0   : > { %v542_v53 = vmul.f32 %v2418_v46, %v541_v51  ;;  %v548_v54 = vmul.f32 %v2420_v52, %v536_v47  ;;  %vm554_vm8 = vweird.f32 %v2420_v52  ;;  %v402_v51 = vld [vmem:[%s4189_s2 + $0x2c0] sm:$0xff] }
 0x1c1   : > { %vm555_vm10 = vmor %vm553_vm9, %vm554_vm8 }
 0x1c2   : > { %v546_v57 = vsel %vm545_vm7, %v2418_v46, %v542_v53  ;;  %v549_v58 = vmul.f32 %v2420_v52, %v548_v54  ;;  %v388_v53 = vld [vmem:[%s4189_s2 + $0x250] sm:$0xff]  ;;  %v381_v54 = vld [vmem:[%s4189_s2 + $0x218] sm:$0xff] }
 0x1c3   : > { %v557_v60 = vmul.f32 %v546_v57, %v2858_v36  ;;  %v367_v57 = vld [vmem:[%s4189_s2 + $0x1a8] sm:$0xff] }
 0x1c4   : > { %v550_v61 = vmul.f32 0.5, %v549_v58  ;;  %v360_v58 = vld [vmem:[%s4189_s2 + $0x170] sm:$0xff] }
 0x1c5   : > { %v560_v62 = vmul.f32 %v559_v56, %v557_v60  ;;  %v346_v60 = vld [vmem:[%s4189_s2 + $0x100] sm:$0xff] }
 0x1c6   : > { %v551_v63 = vsub.f32 1.5, %v550_v61  ;;  %v339_v61 = vld [vmem:[%s4189_s2 + $0xc8] sm:$0xff] }
 0x1c7   : > { %v3023_v1 = vadd.f32 %v562_v59, %v560_v62  ;;  %v332_v62 = vld [vmem:[%s4189_s2 + $0x90] sm:$0xff] }
 0x1c8   : > { %v552_v2 = vmul.f32 %v2420_v52, %v551_v63  ;;  %v325_v63 = vld [vmem:[%s4189_s2 + $0x58] sm:$0xff] }
 0x1c9   : > { %581 = vmatmul.f32.vlgmr.msra.gmra.mxu3 %v3023_v1  ;;  %604 = vmatmul.f32.vlgmr.msrb.gmra.mxu0 %v3023_v1 }
 0x1ca   : > { %v556_v3 = vsel %vm555_vm10, %v2420_v52, %v552_v2  ;;  %627 = vmatmul.f32.vlgmr.msrb.gmra.mxu1 %v3023_v1  ;;  %v395_v52 = vld [vmem:[%s4189_s2 + $0x288] sm:$0xff] }
 0x1cb   : > { %v558_v4 = vmul.f32 %v556_v3, %v2863_v41  ;;  %v422_v41 = vld [vmem:[%s4189_s2 + $0x360] sm:$0xff] }
 0x1cc   : > { %v318_v3 = vld [vmem:[%s4189_s2 + $0x20] sm:$0xff] }
 0x1cd   : > { %v561_v5 = vmul.f32 %v559_v56, %v558_v4  ;;  %v374_v56 = vld [vmem:[%s4189_s2 + $0x1e0] sm:$0xff] }
 0x1cf   : > { %v3029_v36 = vadd.f32 %v562_v59, %v561_v5  ;;  %v353_v59 = vld [vmem:[%s4189_s2 + $0x138] sm:$0xff] }
 0x1d1   : > { %584 = vmatmul.f32.gmra.mxu3 %v3029_v36  ;;  %607 = vmatmul.f32.gmra.mxu0 %v3029_v36 }
 0x1d2   : > { %630 = vmatmul.f32.gmra.mxu1 %v3029_v36 }
 0x1d9   : > { %797 = vmatmul.f32.vlgmr.msra.gmra.mxu0 %v3023_v1 }
 0x1e1   : > { %800 = vmatmul.f32.gmra.mxu0 %v3029_v36 }
 0x246   : > { %v605_v6 = vpop.f32.mrf.mxu0 }
 0x247   : > { %v628_v8 = vpop.f32.mrf.mxu1 }
 0x24c   : > { %v582_v11 = vpop.f32.mrf.mxu3 }
 0x24e   : > { %v608_v9 = vpop.f32.mrf.mxu0 }
 0x24f   : > { %v631_v10 = vpop.f32.mrf.mxu1  ;;  %648 = vmatpush.xpose.msrb.mxu2 %v608_v9 }
 0x250   : > { %726 = vmatpush.msrb.mxu3 %v631_v10 }
 0x252   : > { %727 = vmatpush.msrb.mxu3 %v628_v8 }
 0x253   : > { %649 = vmatpush.xpose.msrb.mxu2 %v605_v6 }
 0x254   : > { %v585_v19 = vpop.f32.mrf.mxu3  ;;  %758 = vmatpush.msra.mxu3 %v423_v48 }
 0x256   : > { %650 = vmatmul.f32.vlgmr.msrb.gmra.mxu2 %v582_v11  ;;  %759 = vmatpush.msra.mxu3 %v416_v49 }
 0x257   : > { %735 = vmatpush.msra.mxu2 %v422_v41 }
 0x258   : > { %760 = vmatpush.msra.mxu3 %v409_v50  ;;  %v798_v50 = vpop.f32.mrf.mxu0 }
 0x259   : > { %736 = vmatpush.msra.mxu2 %v415_v12 }
 0x25a   : > { %761 = vmatpush.msra.mxu3 %v402_v51 }
 0x25b   : > { %737 = vmatpush.msra.mxu2 %v408_v13 }
 0x25c   : > { %762 = vmatpush.msra.mxu3 %v395_v52 }
 0x25d   : > { %738 = vmatpush.msra.mxu2 %v401_v14 }
 0x25e   : > { %653 = vmatmul.f32.gmra.mxu2 %v585_v19  ;;  %763 = vmatpush.msra.mxu3 %v388_v53 }
 0x25f   : > { %739 = vmatpush.msra.mxu2 %v394_v17 }
 0x260   : > { %764 = vmatpush.msra.mxu3 %v381_v54  ;;  %v801_v52 = vpop.f32.mrf.mxu0 }
 0x261   : > { %740 = vmatpush.msra.mxu2 %v387_v18 }
 0x262   : > { %765 = vmatpush.msra.mxu3 %v374_v56 }
 0x263   : > { %741 = vmatpush.msra.mxu2 %v380_v21 }
 0x264   : > { %766 = vmatpush.msra.mxu3 %v367_v57 }
 0x265   : > { %742 = vmatpush.msra.mxu2 %v373_v22  ;;  %v281_v22 = vld [vmem:[%s4188_s1 + $0x1f8] sm:$0xff] }
 0x266   : > { %767 = vmatpush.msra.mxu3 %v360_v58 }
 0x267   : > { %743 = vmatpush.msra.mxu2 %v366_v23 }
 0x268   : > { %768 = vmatpush.msra.mxu3 %v353_v59 }
 0x269   : > { %744 = vmatpush.msra.mxu2 %v359_v24 }
 0x26a   : > { %769 = vmatpush.msra.mxu3 %v346_v60 }
 0x26b   : > { %745 = vmatpush.msra.mxu2 %v352_v25 }
 0x26c   : > { %770 = vmatpush.msra.mxu3 %v339_v61 }
 0x26d   : > { %746 = vmatpush.msra.mxu2 %v345_v26  ;;  %v280_v26 = vld [vmem:[%s4188_s1 + $0x1f0] sm:$0xff] }
 0x26e   : > { %771 = vmatpush.msra.mxu3 %v332_v62 }
 0x26f   : > { %747 = vmatpush.msra.mxu2 %v338_v27 }
 0x270   : > { %772 = vmatpush.msra.mxu3 %v325_v63 }
 0x271   : > { %748 = vmatpush.msra.mxu2 %v331_v28  ;;  %v279_v28 = vld [vmem:[%s4188_s1 + $0x1e8] sm:$0xff] }
 0x272   : > { %773 = vmatpush.msra.mxu3 %v318_v3 }
 0x273   : > { %749 = vmatpush.msra.mxu2 %v324_v29 }
 0x275   : > { %750 = vmatpush.msra.mxu2 %v317_v30 }
 0x276   : > { %751 = vmatmul.f32.vlgmr.msra.gmra.mxu2 %v3023_v1 }
 0x27e   : > { %754 = vmatmul.f32.gmra.mxu2 %v3029_v36 }
 0x2d9   : > { %v651_v31 = vpop.f32.mrf.mxu2 }
 0x2da   : > { %v658_v32 = vsel %vm657_vm11, %v651_v31, -inf }
 0x2db   : > { %659 = vmax.xlane.f32.xlu2 %v658_v32 }
 0x2e1   : > { %v654_v33 = vpop.f32.mrf.mxu2 }
 0x2e2   : > { %v661_v34 = vsel %vm657_vm11, %v654_v33, -inf }
 0x2e3   : > { %662 = vmax.xlane.f32.xlu2 %v661_v34  ;;  %v277_v34 = vld [vmem:[%s4188_s1 + $0x1d8] sm:$0xff] }
 0x2f9   : > { %v752_v53 = vpop.f32.mrf.mxu2 }
 0x301   : > { %v755_v54 = vpop.f32.mrf.mxu2 }
 0x34e   : > { %v660_v35 = vpop.xlane.xlu2 %659 }
 0x34f   : > { %v664_v37 = vsub.f32 %v651_v31, %v660_v35  ;;  %v278_v31 = vld [vmem:[%s4188_s1 + $0x1e0] sm:$0xff]  ;;  %v276_v35 = vld [vmem:[%s4188_s1 + $0x1d0] sm:$0xff] }
 0x351   : > { %v666_v38 = vmul.f32 1.442695, %v664_v37  ;;  %v275_v37 = vld [vmem:[%s4188_s1 + $0x1c8] sm:$0xff] }
 0x353   : > { %2421 = vpow2.f32 %v666_v38  ;;  %v274_v38 = vld [vmem:[%s4188_s1 + $0x1c0] sm:$0xff] }
 0x356   : > { %v663_v39 = vpop.xlane.xlu2 %662 }
 0x357   : > { %v665_v40 = vsub.f32 %v654_v33, %v663_v39  ;;  %v273_v39 = vld [vmem:[%s4188_s1 + $0x1b8] sm:$0xff] }
 0x359   : > { %v2422_v43 = vpop.eup %2421  ;;  %v668_v44 = vmul.f32 1.442695, %v665_v40  ;;  %v272_v40 = vld [vmem:[%s4188_s1 + $0x1b0] sm:$0xff] }
 0x35a   : > { %v670_v45 = vsel %vm657_vm11, %v2422_v43, 0.0 }
 0x35b   : > { %2423 = vpow2.f32 %v668_v44  ;;  %671 = vadd.xlane.f32.xlu0 %v670_v45  ;;  %v270_v44 = vld [vmem:[%s4188_s1 + $0x1a0] sm:$0xff]  ;;  %v269_v45 = vld [vmem:[%s4188_s1 + $0x198] sm:$0xff] }
 0x361   : > { %v3089_v46 = vpop.eup %2423 }
 0x362   : > { %v673_v47 = vsel %vm657_vm11, %v3089_v46, 0.0 }
 0x363   : > { %674 = vadd.xlane.f32.xlu1 %v673_v47  ;;  %v266_v47 = vld [vmem:[%s4188_s1 + $0x180] sm:$0xff] }
 0x3ce   : > { %v672_v2 = vpop.xlane.xlu0 %671 }
 0x3cf   : > { %2425 = vrcp.f32 %v672_v2  ;;  %v687_v9 = vand.u32 2147483648, %v672_v2  ;;  %v685_v41 = vand.u32 2147483647, %v672_v2  ;;  %vm681_vm13 = vweird.f32 %v672_v2 }
 0x3d1   : > { %v688_v13 = vor.u32 1.1754944e-38, %v687_v9  ;;  %vm686_vm15 = vcmp.eq.f32.partialorder %v685_v41, 8.507059e+37  ;;  %v297_v9 = vld [vmem:[%s4188_s1 + $0x278] sm:$0xff]  ;;  %v295_v41 = vld [vmem:[%s4188_s1 + $0x268] sm:$0xff] }
 0x3d2   : > { %904 = vmatpush.msrb.mxu2 %v297_v9 }
 0x3d5   : > { %v2426_v4 = vpop.eup %2425 }
 0x3d6   : > { %v677_v5 = vmul.f32 %v2426_v4, %v672_v2  ;;  %v675_v6 = vpop.xlane.xlu1 %674  ;;  %vm682_vm12 = vweird.f32 %v2426_v4 }
 0x3d7   : > { %2427 = vrcp.f32 %v675_v6  ;;  %vm683_vm14 = vmor %vm681_vm13, %vm682_vm12  ;;  %v702_v23 = vand.u32 2147483648, %v675_v6  ;;  %v700_v25 = vand.u32 2147483647, %v675_v6  ;;  %vm696_vm1 = vweird.f32 %v675_v6 }
 0x3d8   : > { %v678_v8 = vsub.f32 1.0, %v677_v5 }
 0x3d9   : > { %v703_v29 = vor.u32 1.1754944e-38, %v702_v23  ;;  %vm701_vm5 = vcmp.eq.f32.partialorder %v700_v25, 8.507059e+37 }
 0x3da   : > { %v679_v10 = vmul.f32 %v2426_v4, %v678_v8 }
 0x3dc   : > { %v680_v11 = vadd.f32 %v2426_v4, %v679_v10  ;;  %v296_v10 = vld [vmem:[%s4188_s1 + $0x270] sm:$0xff] }
 0x3dd   : > { %v2428_v12 = vpop.eup %2427  ;;  %905 = vmatpush.msrb.mxu2 %v296_v10 }
 0x3de   : > { %v692_v14 = vmul.f32 %v2428_v12, %v675_v6  ;;  %v684_v17 = vsel %vm683_vm14, %v2426_v4, %v680_v11  ;;  %vm697_vm0 = vweird.f32 %v2428_v12 }
 0x3df   : > { %v689_v18 = vsel %vm686_vm15, %v688_v13, %v684_v17  ;;  %vm698_vm4 = vmor %vm696_vm1, %vm697_vm0  ;;  %906 = vmatpush.msrb.mxu2 %v295_v41  ;;  %v293_v13 = vld [vmem:[%s4188_s1 + $0x258] sm:$0xff]  ;;  %v291_v17 = vld [vmem:[%s4188_s1 + $0x248] sm:$0xff] }
 0x3e0   : > { %v693_v19 = vsub.f32 1.0, %v692_v14  ;;  %v690_v21 = vmul.f32 %v2422_v43, %v689_v18  ;;  %v271_v43 = vld [vmem:[%s4188_s1 + $0x1a8] sm:$0xff]  ;;  %v292_v14 = vld [vmem:[%s4188_s1 + $0x250] sm:$0xff] }
 0x3e2   : > { %v694_v24 = vmul.f32 %v2428_v12, %v693_v19  ;;  %2142 = vmatmul.msk.f32.vlgmr.msrb.gmra.mxu3 %vm657_vm11, %v690_v21 }
 0x3e3   : > { %927 = vmatpush.msrb.mxu3 %v281_v22  ;;  %v290_v22 = vld [vmem:[%s4188_s1 + $0x240] sm:$0xff] }
 0x3e4   : > { %v695_v27 = vadd.f32 %v2428_v12, %v694_v24  ;;  %v289_v24 = vld [vmem:[%s4188_s1 + $0x238] sm:$0xff] }
 0x3e5   : > { %928 = vmatpush.msrb.mxu3 %v280_v26 }
 0x3e6   : > { %v699_v30 = vsel %vm698_vm4, %v2428_v12, %v695_v27  ;;  %v294_v12 = vld [vmem:[%s4188_s1 + $0x260] sm:$0xff] }
 0x3e7   : > { %v704_v32 = vsel %vm701_vm5, %v703_v29, %v699_v30  ;;  %929 = vmatpush.msrb.mxu3 %v279_v28  ;;  %907 = vmatpush.msrb.mxu2 %v294_v12  ;;  %v288_v28 = vld [vmem:[%s4188_s1 + $0x230] sm:$0xff]  ;;  %v287_v30 = vld [vmem:[%s4188_s1 + $0x228] sm:$0xff] }
 0x3e8   : > { %v705_v33 = vmul.f32 %v3089_v46, %v704_v32  ;;  %v267_v46 = vld [vmem:[%s4188_s1 + $0x188] sm:$0xff] }
 0x3e9   : > { %930 = vmatpush.msrb.mxu3 %v278_v31  ;;  %908 = vmatpush.msrb.mxu2 %v293_v13  ;;  %v411_v13 = vld [vmem:[%s4189_s2 + $0x308] sm:$0xff] }
 0x3ea   : > { %2143 = vmatmul.msk.f32.gmra.mxu3 %vm657_vm11, %v705_v33 }
 0x3eb   : > { %931 = vmatpush.msrb.mxu3 %v277_v34  ;;  %909 = vmatpush.msrb.mxu2 %v292_v14  ;;  %v404_v14 = vld [vmem:[%s4189_s2 + $0x2d0] sm:$0xff] }
 0x3ed   : > { %932 = vmatpush.msrb.mxu3 %v276_v35  ;;  %910 = vmatpush.msrb.mxu2 %v291_v17  ;;  %v286_v35 = vld [vmem:[%s4188_s1 + $0x220] sm:$0xff]  ;;  %v397_v17 = vld [vmem:[%s4189_s2 + $0x298] sm:$0xff] }
 0x3ef   : > { %933 = vmatpush.msrb.mxu3 %v275_v37  ;;  %911 = vmatpush.msrb.mxu2 %v290_v22  ;;  %v369_v22 = vld [vmem:[%s4189_s2 + $0x1b8] sm:$0xff] }
 0x3f1   : > { %934 = vmatpush.msrb.mxu3 %v274_v38  ;;  %912 = vmatpush.msrb.mxu2 %v289_v24  ;;  %v355_v24 = vld [vmem:[%s4189_s2 + $0x148] sm:$0xff] }
 0x3f2   : > { %774 = vmatmul.f32.vlgmr.msra.gmra.mxu3 %v3023_v1  ;;  %v268_v1 = vld [vmem:[%s4188_s1 + $0x190] sm:$0xff] }
 0x3f3   : > { %935 = vmatpush.msrb.mxu3 %v273_v39  ;;  %913 = vmatpush.msrb.mxu2 %v288_v28  ;;  %v327_v28 = vld [vmem:[%s4189_s2 + $0x68] sm:$0xff] }
 0x3f5   : > { %936 = vmatpush.msrb.mxu3 %v272_v40  ;;  %914 = vmatpush.msrb.mxu2 %v287_v30  ;;  %v285_v40 = vld [vmem:[%s4188_s1 + $0x218] sm:$0xff] }
 0x3f7   : > { %937 = vmatpush.msrb.mxu3 %v271_v43  ;;  %915 = vmatpush.msrb.mxu2 %v286_v35 }
 0x3f9   : > { %938 = vmatpush.msrb.mxu3 %v270_v44  ;;  %916 = vmatpush.msrb.mxu2 %v285_v40 }
 0x3fa   : > { %777 = vmatmul.f32.gmra.mxu3 %v3029_v36 }
 0x3fb   : > { %939 = vmatpush.msrb.mxu3 %v269_v45 }
 0x3fd   : > { %940 = vmatpush.msrb.mxu3 %v268_v1  ;;  %v284_v1 = vld [vmem:[%s4188_s1 + $0x210] sm:$0xff] }
 0x3fe   : > { %917 = vmatpush.msrb.mxu2 %v284_v1 }
 0x3ff   : > { %941 = vmatpush.msrb.mxu3 %v267_v46 }
 0x401   : > { %942 = vmatpush.msrb.mxu3 %v266_v47  ;;  %v283_v47 = vld [vmem:[%s4188_s1 + $0x208] sm:$0xff] }
 0x402   : > { %918 = vmatpush.msrb.mxu2 %v283_v47 }
 0x465   : > { %v729_v48 = vpop.f32.mrf.mxu3 }
 0x466   : > { %943 = vmatmul.f32.vlgmr.msrb.gmra.mxu3 %v729_v48 }
 0x46d   : > { %v732_v49 = vpop.f32.mrf.mxu3 }
 0x46e   : > { %946 = vmatmul.f32.gmra.mxu3 %v732_v49 }
 0x475   : > { %v775_v36 = vpop.f32.mrf.mxu3 }
 0x47d   : > { %v778_v51 = vpop.f32.mrf.mxu3 }
 0x47e   : > { %818 = vmatpush.xpose.msra.mxu1 %v778_v51  ;;  %v282_v51 = vld [vmem:[%s4188_s1 + $0x200] sm:$0xff] }
 0x47f   : > { %919 = vmatpush.msrb.mxu2 %v282_v51 }
 0x482   : > { %819 = vmatpush.xpose.msra.mxu1 %v775_v36 }
 0x485   : > { %820 = vmatmul.f32.vlgmr.msra.gmra.mxu1 %v752_v53 }
 0x486   : > { %895 = vmatpush.msrb.mxu1 %v801_v52 }
 0x488   : > { %896 = vmatpush.msrb.mxu1 %v798_v50 }
 0x48d   : > { %823 = vmatmul.f32.gmra.mxu1 %v755_v54 }
 0x4e9   : > { %v944_v54 = vpop.f32.mrf.mxu3 }
 0x502   : > { %v821_v56 = vpop.f32.mrf.mxu1 }
 0x503   : > { %v827_v57 = vsel %vm657_vm11, %v821_v56, -inf }
 0x504   : > { %828 = vmax.xlane.f32.xlu2 %v827_v57 }
 0x50a   : > { %v824_v58 = vpop.f32.mrf.mxu1 }
 0x50b   : > { %v830_v59 = vsel %vm657_vm11, %v824_v58, -inf }
 0x50c   : > { %831 = vmax.xlane.f32.xlu0 %v830_v59 }
 0x577   : > { %v829_v60 = vpop.xlane.xlu2 %828 }
 0x578   : > { %v833_v61 = vsub.f32 %v821_v56, %v829_v60 }
 0x57a   : > { %v835_v62 = vmul.f32 1.442695, %v833_v61  ;;  %v947_v61 = vpop.f32.mrf.mxu3 }
 0x57c   : > { %2429 = vpow2.f32 %v835_v62 }
 0x57f   : > { %v832_v63 = vpop.xlane.xlu0 %831 }
 0x580   : > { %v834_v2 = vsub.f32 %v824_v58, %v832_v63  ;;  %v952_v58 = vperm.slane %v2808_v7, 3  ;;  %v418_v7 = vld [vmem:[%s4189_s2 + $0x340] sm:$0xff] }
 0x582   : > { %v2430_v3 = vpop.eup %2429  ;;  %v837_v4 = vmul.f32 1.442695, %v834_v2 }
 0x583   : > { %v839_v5 = vsel %vm657_vm11, %v2430_v3, 0.0 }
 0x584   : > { %2431 = vpow2.f32 %v837_v4  ;;  %840 = vadd.xlane.f32.xlu1 %v839_v5  ;;  %v425_v4 = vld [vmem:[%s4189_s2 + $0x378] sm:$0xff] }
 0x585   : > { %1004 = vmatpush.msrb.mxu0 %v425_v4  ;;  %v311_v4 = vld [vmem:[%s4188_s1 + $0x2e8] sm:$0xff] }
 0x587   : > { %1005 = vmatpush.msrb.mxu0 %v418_v7  ;;  %v310_v7 = vld [vmem:[%s4188_s1 + $0x2e0] sm:$0xff] }
 0x589   : > { %1006 = vmatpush.msrb.mxu0 %v411_v13 }
 0x58a   : > { %v3197_v6 = vpop.eup %2431 }
 0x58b   : > { %v842_v8 = vsel %vm657_vm11, %v3197_v6, 0.0  ;;  %1007 = vmatpush.msrb.mxu0 %v404_v14 }
 0x58c   : > { %843 = vadd.xlane.f32.xlu2 %v842_v8 }
 0x58d   : > { %1008 = vmatpush.msrb.mxu0 %v397_v17  ;;  %v305_v17 = vld [vmem:[%s4188_s1 + $0x2b8] sm:$0xff] }
 0x5f7   : > { %v841_v11 = vpop.xlane.xlu1 %840 }
 0x5f8   : > { %2433 = vrcp.f32 %v841_v11  ;;  %v856_v25 = vand.u32 2147483648, %v841_v11  ;;  %v854_v27 = vand.u32 2147483647, %v841_v11  ;;  %vm850_vm7 = vweird.f32 %v841_v11 }
 0x5fa   : > { %v857_v32 = vor.u32 1.1754944e-38, %v856_v25  ;;  %vm855_vm9 = vcmp.eq.f32.partialorder %v854_v27, 8.507059e+37  ;;  %v348_v25 = vld [vmem:[%s4189_s2 + $0x110] sm:$0xff]  ;;  %v334_v27 = vld [vmem:[%s4189_s2 + $0xa0] sm:$0xff] }
 0x5fe   : > { %v2434_v18 = vpop.eup %2433 }
 0x5ff   : > { %v846_v19 = vmul.f32 %v2434_v18, %v841_v11  ;;  %v844_v21 = vpop.xlane.xlu2 %843  ;;  %vm851_vm6 = vweird.f32 %v2434_v18 }
 0x600   : > { %2435 = vrcp.f32 %v844_v21  ;;  %vm852_vm8 = vmor %vm850_vm7, %vm851_vm6  ;;  %v871_v43 = vand.u32 2147483648, %v844_v21  ;;  %v869_v45 = vand.u32 2147483647, %v844_v21  ;;  %vm865_vm12 = vweird.f32 %v844_v21 }
 0x601   : > { %v847_v23 = vsub.f32 1.0, %v846_v19  ;;  %v383_v19 = vld [vmem:[%s4189_s2 + $0x228] sm:$0xff] }
 0x602   : > { %v872_v48 = vor.u32 1.1754944e-38, %v871_v43  ;;  %vm870_vm14 = vcmp.eq.f32.partialorder %v869_v45, 8.507059e+37 }
 0x603   : > { %v848_v26 = vmul.f32 %v2434_v18, %v847_v23  ;;  %v362_v23 = vld [vmem:[%s4189_s2 + $0x180] sm:$0xff] }
 0x605   : > { %v849_v29 = vadd.f32 %v2434_v18, %v848_v26  ;;  %v341_v26 = vld [vmem:[%s4189_s2 + $0xd8] sm:$0xff] }
 0x606   : > { %v2436_v31 = vpop.eup %2435 }
 0x607   : > { %v853_v33 = vsel %vm852_vm8, %v2434_v18, %v849_v29  ;;  %v861_v34 = vmul.f32 %v2436_v31, %v844_v21  ;;  %vm866_vm10 = vweird.f32 %v2436_v31  ;;  %v390_v18 = vld [vmem:[%s4189_s2 + $0x260] sm:$0xff]  ;;  %v376_v21 = vld [vmem:[%s4189_s2 + $0x1f0] sm:$0xff] }
 0x608   : > { %v858_v37 = vsel %vm855_vm9, %v857_v32, %v853_v33  ;;  %vm867_vm13 = vmor %vm865_vm12, %vm866_vm10  ;;  %1009 = vmatpush.msrb.mxu0 %v390_v18  ;;  %v320_v29 = vld [vmem:[%s4189_s2 + $0x30] sm:$0xff] }
 0x609   : > { %v862_v38 = vsub.f32 1.0, %v861_v34  ;;  %v859_v39 = vmul.f32 %v2430_v3, %v858_v37  ;;  %v304_v18 = vld [vmem:[%s4188_s1 + $0x2b0] sm:$0xff] }
 0x60a   : > { %1010 = vmatpush.msrb.mxu0 %v383_v19 }
 0x60b   : > { %v863_v44 = vmul.f32 %v2436_v31, %v862_v38  ;;  %2144 = vmatmul.msk.f32.vlgmr.msrb.gmra.mxu1 %vm657_vm11, %v859_v39 }
 0x60c   : > { %1011 = vmatpush.msrb.mxu0 %v376_v21  ;;  %v303_v21 = vld [vmem:[%s4188_s1 + $0x2a8] sm:$0xff] }
 0x60d   : > { %v864_v46 = vadd.f32 %v2436_v31, %v863_v44 }
 0x60e   : > { %1012 = vmatpush.msrb.mxu0 %v369_v22 }
 0x60f   : > { %v868_v49 = vsel %vm867_vm13, %v2436_v31, %v864_v46  ;;  %v3319_v46 = vld [vmem:[%s4190_s3] sm:$0xff] }
 0x610   : > { %v873_v36 = vsel %vm870_vm14, %v872_v48, %v868_v49  ;;  %1013 = vmatpush.msrb.mxu0 %v362_v23  ;;  %v997_v47 = vperm.slane %v3319_v46, 4  ;;  %v302_v23 = vld [vmem:[%s4188_s1 + $0x2a0] sm:$0xff] }
 0x611   : > { %v874_v50 = vmul.f32 %v3197_v6, %v873_v36 }
 0x612   : > { %1014 = vmatpush.msrb.mxu0 %v355_v24 }
 0x613   : > { %2145 = vmatmul.msk.f32.gmra.mxu1 %vm657_vm11, %v874_v50  ;;  %v1000_v50 = vperm.slane %v3319_v46, 5 }
 0x614   : > { %1015 = vmatpush.msrb.mxu0 %v348_v25 }
 0x616   : > { %1016 = vmatpush.msrb.mxu0 %v341_v26  ;;  %v301_v26 = vld [vmem:[%s4188_s1 + $0x298] sm:$0xff] }
 0x618   : > { %1017 = vmatpush.msrb.mxu0 %v334_v27 }
 0x61a   : > { %1018 = vmatpush.msrb.mxu0 %v327_v28 }
 0x61c   : > { %1019 = vmatpush.msrb.mxu0 %v320_v29  ;;  %v300_v29 = vld [vmem:[%s4188_s1 + $0x290] sm:$0xff] }
 0x688   : > { %v898_v52 = vpop.f32.mrf.mxu1 }
 0x689   : > { %920 = vmatmul.f32.vlgmr.msrb.gmra.mxu2 %v898_v52 }
 0x690   : > { %v901_v53 = vpop.f32.mrf.mxu1 }
 0x691   : > { %923 = vmatmul.f32.gmra.mxu2 %v901_v53 }
 0x70c   : > { %v921_v56 = vpop.f32.mrf.mxu2 }
 0x70d   : > { %v945_v57 = vadd.f32 %v944_v54, %v921_v56 }
 0x70f   : > { %v950_v59 = vadd.f32 %v945_v57, %v2811_v16 }
 0x711   : > { %v3254_v60 = vadd.f32 %v952_v58, %v950_v59 }
 0x713   : > { %955 = vadd.xlane.f32.xlu0 %v3254_v60 }
 0x714   : > { %v924_v62 = vpop.f32.mrf.mxu2 }
 0x715   : > { %v948_v63 = vadd.f32 %v947_v61, %v924_v62  ;;  %v313_v62 = vld [vmem:[%s4188_s1 + $0x2f8] sm:$0xff] }
 0x716   : > { %1107 = vmatpush.msra.mxu1 %v313_v62  ;;  %v2179_v62 = vld [vmem:[%s4188_s1 + $0x3e8] sm:$0xff] }
 0x717   : > { %v951_v2 = vadd.f32 %v948_v63, %v2815_v20  ;;  %v312_v63 = vld [vmem:[%s4188_s1 + $0x2f0] sm:$0xff] }
 0x718   : > { %1108 = vmatpush.msra.mxu1 %v312_v63  ;;  %v2197_v63 = vld [vmem:[%s4188_s1 + $0x478] sm:$0xff] }
 0x719   : > { %v3258_v3 = vadd.f32 %v952_v58, %v951_v2  ;;  %v1003_v2 = vperm.slane %v3319_v46, 7  ;;  %1405 = vmatpush.msra.mxu0 %v2197_v63 }
 0x71a   : > { %1109 = vmatpush.msra.mxu1 %v311_v4 }
 0x71b   : > { %957 = vadd.xlane.f32.xlu1 %v3258_v3 }
 0x71c   : > { %1110 = vmatpush.msra.mxu1 %v310_v7 }
 0x786   : > { %v956_v16 = vpop.xlane.xlu0 %955 }
 0x787   : > { %v959_v5 = vmul.f32 0.03125, %v956_v16 }
 0x789   : > { %v961_v6 = vsub.f32 %v3254_v60, %v959_v5 }
 0x78b   : > { %v963_v20 = vmul.f32 %v2662_v15, %v961_v6 }
 0x78d   : > { %v965_v8 = vmul.f32 %v963_v20, %v963_v20 }
 0x78e   : > { %v958_v9 = vpop.xlane.xlu1 %957 }
 0x78f   : > { %v960_v10 = vmul.f32 0.03125, %v958_v9  ;;  %967 = vadd.xlane.f32.xlu2 %v965_v8  ;;  %v308_v8 = vld [vmem:[%s4188_s1 + $0x2d0] sm:$0xff] }
 0x791   : > { %v3270_v41 = vsub.f32 %v3258_v3, %v960_v10  ;;  %v307_v10 = vld [vmem:[%s4188_s1 + $0x2c8] sm:$0xff] }
 0x793   : > { %v964_v11 = vmul.f32 %v2662_v15, %v3270_v41 }
 0x795   : > { %v966_v12 = vmul.f32 %v964_v11, %v964_v11  ;;  %v306_v11 = vld [vmem:[%s4188_s1 + $0x2c0] sm:$0xff] }
 0x797   : > { %969 = vadd.xlane.f32.xlu0 %v966_v12 }
 0x802   : > { %v968_v30 = vpop.xlane.xlu2 %967 }
 0x803   : > { %v971_v31 = vmul.f32 0.03125, %v968_v30 }
 0x805   : > { %v973_v32 = vadd.f32 1e-05, %v971_v31 }
 0x807   : > { %2437 = vrsqrt.f32 %v973_v32  ;;  %vm981_vm0 = vweird.f32 %v973_v32 }
 0x80a   : > { %v970_v33 = vpop.xlane.xlu0 %969 }
 0x80b   : > { %v972_v34 = vmul.f32 0.03125, %v970_v33 }
 0x80d   : > { %v2438_v35 = vpop.eup %2437  ;;  %v974_v37 = vadd.f32 1e-05, %v972_v34 }
 0x80e   : > { %v976_v38 = vmul.f32 %v2438_v35, %v973_v32  ;;  %vm982_vm15 = vweird.f32 %v2438_v35  ;;  %v299_v32 = vld [vmem:[%s4188_s1 + $0x288] sm:$0xff] }
 0x80f   : > { %2439 = vrsqrt.f32 %v974_v37  ;;  %vm983_vm1 = vmor %vm981_vm0, %vm982_vm15  ;;  %vm991_vm5 = vweird.f32 %v974_v37 }
 0x810   : > { %v977_v39 = vmul.f32 %v2438_v35, %v976_v38 }
 0x812   : > { %v978_v40 = vmul.f32 0.5, %v977_v39 }
 0x814   : > { %v979_v43 = vsub.f32 1.5, %v978_v40 }
 0x815   : > { %v2440_v44 = vpop.eup %2439 }
 0x816   : > { %v980_v45 = vmul.f32 %v2438_v35, %v979_v43  ;;  %v986_v1 = vmul.f32 %v2440_v44, %v974_v37  ;;  %vm992_vm4 = vweird.f32 %v2440_v44 }
 0x817   : > { %vm993_vm6 = vmor %vm991_vm5, %vm992_vm4 }
 0x818   : > { %v984_v48 = vsel %vm983_vm1, %v2438_v35, %v980_v45  ;;  %v987_v49 = vmul.f32 %v2440_v44, %v986_v1  ;;  %v298_v35 = vld [vmem:[%s4188_s1 + $0x280] sm:$0xff] }
 0x819   : > { %v995_v36 = vmul.f32 %v984_v48, %v961_v6  ;;  %v309_v6 = vld [vmem:[%s4188_s1 + $0x2d8] sm:$0xff] }
 0x81a   : > { %v988_v51 = vmul.f32 0.5, %v987_v49  ;;  %1111 = vmatpush.msra.mxu1 %v309_v6  ;;  %v2196_v6 = vld [vmem:[%s4188_s1 + $0x470] sm:$0xff] }
 0x81b   : > { %v998_v52 = vmul.f32 %v997_v47, %v995_v36  ;;  %1406 = vmatpush.msra.mxu0 %v2196_v6  ;;  %v2158_v6 = vld [vmem:[%s4188_s1 + $0x340] sm:$0xff] }
 0x81c   : > { %v989_v53 = vsub.f32 1.5, %v988_v51  ;;  %1112 = vmatpush.msra.mxu1 %v308_v8  ;;  %v2164_v8 = vld [vmem:[%s4188_s1 + $0x370] sm:$0xff] }
 0x81d   : > { %v1001_v54 = vadd.f32 %v1000_v50, %v998_v52 }
 0x81e   : > { %v990_v56 = vmul.f32 %v2440_v44, %v989_v53  ;;  %1113 = vmatpush.msra.mxu1 %v307_v10  ;;  %v2178_v10 = vld [vmem:[%s4188_s1 + $0x3e0] sm:$0xff] }
 0x81f   : > { %1020 = vmatmul.f32.vlgmr.msrb.gmra.mxu0 %v1001_v54  ;;  %v2181_v54 = vld [vmem:[%s4188_s1 + $0x3f8] sm:$0xff] }
 0x820   : > { %v994_v57 = vsel %vm993_vm6, %v2440_v44, %v990_v56  ;;  %1114 = vmatpush.msra.mxu1 %v306_v11  ;;  %v2180_v56 = vld [vmem:[%s4188_s1 + $0x3f0] sm:$0xff]  ;;  %1359 = vmatpush.msra.mxu2 %v2181_v54 }
 0x821   : > { %v996_v58 = vmul.f32 %v994_v57, %v3270_v41 }
 0x822   : > { %1115 = vmatpush.msra.mxu1 %v305_v17  ;;  %1360 = vmatpush.msra.mxu2 %v2180_v56  ;;  %v2177_v17 = vld [vmem:[%s4188_s1 + $0x3d8] sm:$0xff] }
 0x823   : > { %v999_v59 = vmul.f32 %v997_v47, %v996_v58 }
 0x824   : > { %1116 = vmatpush.msra.mxu1 %v304_v18  ;;  %1361 = vmatpush.msra.mxu2 %v2179_v62  ;;  %v2194_v18 = vld [vmem:[%s4188_s1 + $0x460] sm:$0xff]  ;;  %v2169_v62 = vld [vmem:[%s4188_s1 + $0x398] sm:$0xff] }
 0x825   : > { %v1002_v61 = vadd.f32 %v1000_v50, %v999_v59 }
 0x826   : > { %1117 = vmatpush.msra.mxu1 %v303_v21  ;;  %1362 = vmatpush.msra.mxu2 %v2178_v10  ;;  %v2188_v10 = vld [vmem:[%s4188_s1 + $0x430] sm:$0xff] }
 0x827   : > { %1023 = vmatmul.f32.gmra.mxu0 %v1002_v61 }
 0x828   : > { %1118 = vmatpush.msra.mxu1 %v302_v23  ;;  %1363 = vmatpush.msra.mxu2 %v2177_v17  ;;  %v2186_v17 = vld [vmem:[%s4188_s1 + $0x420] sm:$0xff] }
 0x82a   : > { %1119 = vmatpush.msra.mxu1 %v301_v26  ;;  %v2176_v26 = vld [vmem:[%s4188_s1 + $0x3d0] sm:$0xff] }
 0x82b   : > { %1364 = vmatpush.msra.mxu2 %v2176_v26  ;;  %v2183_v26 = vld [vmem:[%s4188_s1 + $0x408] sm:$0xff] }
 0x82c   : > { %1120 = vmatpush.msra.mxu1 %v300_v29 }
 0x82e   : > { %1121 = vmatpush.msra.mxu1 %v299_v32 }
 0x830   : > { %1122 = vmatpush.msra.mxu1 %v298_v35 }
 0x89c   : > { %v1021_v16 = vpop.f32.mrf.mxu0 }
 0x89d   : > { %v3337_v5 = vadd.f32 %v1021_v16, %v1003_v2 }
 0x89f   : > { %v3343_v20 = vmul.f32 0.70710677, %v3337_v5 }
 0x8a1   : > { %v1035_v9 = vand.u32 2147483647, %v3343_v20  ;;  %vm1031_vm0 = vcmp.ge.f32.partialorder %v3343_v20, 0.0  ;;  %v2548_v20 = vmov -1.0  }
 0x8a3   : > { %v1037_v41 = vmul.f32 0.3275911, %v1035_v9  ;;  %v1089_v44 = vsub.f32 0.0, %v1035_v9 }
 0x8a4   : > { %v1024_v12 = vpop.f32.mrf.mxu0 }
 0x8a5   : > { %v1039_v13 = vadd.f32 1.0, %v1037_v41  ;;  %v3355_v14 = vadd.f32 %v1024_v12, %v1003_v2  ;;  %v1091_v36 = vmul.f32 %v1089_v44, %v1035_v9  ;;  %v2165_v2 = vld [vmem:[%s4188_s1 + $0x378] sm:$0xff]  ;;  %v2195_v41 = vld [vmem:[%s4188_s1 + $0x468] sm:$0xff] }
 0x8a6   : > { %1382 = vmatpush.msra.mxu3 %v2165_v2  ;;  %v2163_v12 = vld [vmem:[%s4188_s1 + $0x368] sm:$0xff]  ;;  %1407 = vmatpush.msra.mxu0 %v2195_v41  ;;  %v2166_v41 = vld [vmem:[%s4188_s1 + $0x380] sm:$0xff] }
 0x8a7   : > { %2441 = vrcp.f32 %v1039_v13  ;;  %v3364_v19 = vmul.f32 0.70710677, %v3355_v14  ;;  %v1052_v31 = vand.u32 2147483648, %v1039_v13  ;;  %v1050_v34 = vand.u32 2147483647, %v1039_v13 }
 0x8a8   : > { %vm1046_vm8 = vweird.f32 %v1039_v13  ;;  %v1093_v59 = vmul.f32 1.442695, %v1091_v36  ;;  %1383 = vmatpush.msra.mxu3 %v2164_v8  ;;  %1408 = vmatpush.msra.mxu0 %v2194_v18  ;;  %v2172_v36 = vld [vmem:[%s4188_s1 + $0x3b0] sm:$0xff]  ;;  %v2189_v8 = vld [vmem:[%s4188_s1 + $0x438] sm:$0xff]  ;;  %v2154_v18 = vld [vmem:[%s4188_s1 + $0x320] sm:$0xff] }
 0x8a9   : > { %v3370_v22 = vand.u32 2147483647, %v3364_v19  ;;  %v1053_v38 = vor.u32 1.1754944e-38, %v1052_v31  ;;  %vm1051_vm10 = vcmp.eq.f32.partialorder %v1050_v34, 8.507059e+37  ;;  %v2192_v31 = vld [vmem:[%s4188_s1 + $0x450] sm:$0xff]  ;;  %vm1032_vm1 = vcmp.ge.f32.partialorder %v3364_v19, 0.0 }
 0x8aa   : > { %1384 = vmatpush.msra.mxu3 %v2163_v12  ;;  %v2160_v34 = vld [vmem:[%s4188_s1 + $0x350] sm:$0xff]  ;;  %v1034_v63 = vsel %vm1032_vm1, 1.0, %v2548_v20  ;;  %v2187_v12 = vld [vmem:[%s4188_s1 + $0x428] sm:$0xff] }
 0x8ab   : > { %v1038_v24 = vmul.f32 0.3275911, %v3370_v22  ;;  %v1090_v7 = vsub.f32 0.0, %v3370_v22  ;;  %v2168_v19 = vld [vmem:[%s4188_s1 + $0x390] sm:$0xff] }
 0x8ad   : > { %v2442_v25 = vpop.eup %2441  ;;  %v1040_v28 = vadd.f32 1.0, %v1038_v24  ;;  %v1092_v23 = vmul.f32 %v1090_v7, %v3370_v22  ;;  %v2162_v24 = vld [vmem:[%s4188_s1 + $0x360] sm:$0xff]  ;;  %v2161_v22 = vld [vmem:[%s4188_s1 + $0x358] sm:$0xff] }
 0x8ae   : > { %v1042_v27 = vmul.f32 %v2442_v25, %v1039_v13  ;;  %vm1047_vm7 = vweird.f32 %v2442_v25  ;;  %1385 = vmatpush.msra.mxu3 %v2162_v24  ;;  %v2184_v24 = vld [vmem:[%s4188_s1 + $0x410] sm:$0xff] }
 0x8af   : > { %2443 = vrcp.f32 %v1040_v28  ;;  %vm1048_vm9 = vmor %vm1046_vm8, %vm1047_vm7  ;;  %v1067_v49 = vand.u32 2147483648, %v1040_v28  ;;  %v1065_v51 = vand.u32 2147483647, %v1040_v28  ;;  %vm1061_vm13 = vweird.f32 %v1040_v28 }
 0x8b0   : > { %v1043_v30 = vsub.f32 1.0, %v1042_v27  ;;  %2445 = vpow2.f32 %v1093_v59  ;;  %v2193_v27 = vld [vmem:[%s4188_s1 + $0x458] sm:$0xff]  ;;  %1386 = vmatpush.msra.mxu3 %v2161_v22  ;;  %v2150_v22 = vld [vmem:[%s4188_s1 + $0x300] sm:$0xff] }
 0x8b1   : > { %v1068_v58 = vor.u32 1.1754944e-38, %v1067_v49  ;;  %vm1066_vm15 = vcmp.eq.f32.partialorder %v1065_v51, 8.507059e+37  ;;  %1409 = vmatpush.msra.mxu0 %v2193_v27  ;;  %v2151_v27 = vld [vmem:[%s4188_s1 + $0x308] sm:$0xff] }
 0x8b2   : > { %v1044_v33 = vmul.f32 %v2442_v25, %v1043_v30  ;;  %v2175_v30 = vld [vmem:[%s4188_s1 + $0x3c8] sm:$0xff]  ;;  %1387 = vmatpush.msra.mxu3 %v2160_v34 }
 0x8b3   : > { %1365 = vmatpush.msra.mxu2 %v2175_v30  ;;  %1410 = vmatpush.msra.mxu0 %v2192_v31 }
 0x8b4   : > { %v1045_v37 = vadd.f32 %v2442_v25, %v1044_v33  ;;  %v1095_v33 = vmul.f32 1.442695, %v1092_v23  ;;  %v2153_v23 = vld [vmem:[%s4188_s1 + $0x318] sm:$0xff] }
 0x8b5   : > { %v2444_v39 = vpop.eup %2443 }
 0x8b6   : > { %v1049_v40 = vsel %vm1048_vm9, %v2442_v25, %v1045_v37  ;;  %v1057_v45 = vmul.f32 %v2444_v39, %v1040_v28  ;;  %vm1062_vm12 = vweird.f32 %v2444_v39  ;;  %v2446_v35 = vpop.eup %2445  ;;  %2447 = vpow2.f32 %v1095_v33 }
 0x8b7   : > { %v3388_v43 = vsel %vm1051_vm10, %v1053_v38, %v1049_v40  ;;  %vm1063_vm14 = vmor %vm1061_vm13, %vm1062_vm12  ;;  %v2174_v38 = vld [vmem:[%s4188_s1 + $0x3c0] sm:$0xff] }
 0x8b8   : > { %v1071_v1 = vmul.f32 1.0614054, %v3388_v43  ;;  %v1058_v47 = vsub.f32 1.0, %v1057_v45  ;;  %v2173_v45 = vld [vmem:[%s4188_s1 + $0x3b8] sm:$0xff]  ;;  %1366 = vmatpush.msra.mxu2 %v2174_v38 }
 0x8ba   : > { %v2146_v48 = vadd.f32 -1.4531521, %v1071_v1  ;;  %v1059_v50 = vmul.f32 %v2444_v39, %v1058_v47  ;;  %v2190_v1 = vld [vmem:[%s4188_s1 + $0x440] sm:$0xff]  ;;  %1367 = vmatpush.msra.mxu2 %v2173_v45 }
 0x8bc   : > { %v1075_v52 = vmul.f32 %v2146_v48, %v3388_v43  ;;  %v1060_v53 = vadd.f32 %v2444_v39, %v1059_v50  ;;  %v1033_v48 = vsel %vm1031_vm0, 1.0, %v2548_v20  ;;  %1368 = vmatpush.msra.mxu2 %v2172_v36 }
 0x8be   : > { %v1077_v57 = vadd.f32 1.4214138, %v1075_v52  ;;  %v1064_v61 = vsel %vm1063_vm14, %v2444_v39, %v1060_v53  ;;  %v2191_v39 = vld [vmem:[%s4188_s1 + $0x448] sm:$0xff]  ;;  %v1027_v53 = vmul.f32 0.5, %v3337_v5 }
 0x8bf   : > { %v3409_v16 = vsel %vm1066_vm15, %v1068_v58, %v1064_v61  ;;  %1411 = vmatpush.msra.mxu0 %v2191_v39  ;;  %v2171_v52 = vld [vmem:[%s4188_s1 + $0x3a8] sm:$0xff]  ;;  %v2448_v58 = vpop.eup %2447 }
 0x8c0   : > { %v1079_v4 = vmul.f32 %v1077_v57, %v3388_v43  ;;  %v1072_v9 = vmul.f32 1.0614054, %v3409_v16  ;;  %v2170_v57 = vld [vmem:[%s4188_s1 + $0x3a0] sm:$0xff]  ;;  %1369 = vmatpush.msra.mxu2 %v2171_v52 }
 0x8c1   : > { %1412 = vmatpush.msra.mxu0 %v2190_v1 }
 0x8c2   : > { %v2148_v11 = vadd.f32 -0.28449672, %v1079_v4  ;;  %v2147_v13 = vadd.f32 -1.4531521, %v1072_v9  ;;  %1370 = vmatpush.msra.mxu2 %v2170_v57  ;;  %v1028_v4 = vmul.f32 0.5, %v3355_v14  ;;  %v2167_v14 = vld [vmem:[%s4188_s1 + $0x388] sm:$0xff] }
 0x8c3   : > { %1413 = vmatpush.msra.mxu0 %v2189_v8  ;;  %v2157_v9 = vld [vmem:[%s4188_s1 + $0x338] sm:$0xff]  ;;  %v2303_v8 = vld [vmem:[%s4189_s2 + $0x548] sm:$0xff] }
 0x8c4   : > { %v1083_v21 = vmul.f32 %v2148_v11, %v3388_v43  ;;  %v1076_v25 = vmul.f32 %v2147_v13, %v3409_v16  ;;  %1371 = vmatpush.msra.mxu2 %v2169_v62  ;;  %v2156_v11 = vld [vmem:[%s4188_s1 + $0x330] sm:$0xff]  ;;  %v2155_v13 = vld [vmem:[%s4188_s1 + $0x328] sm:$0xff]  ;;  %v2338_v62 = vld [vmem:[%s4189_s2 + $0x660] sm:$0xff] }
 0x8c5   : > { %1414 = vmatpush.msra.mxu0 %v2188_v10 }
 0x8c6   : > { %v1085_v28 = vadd.f32 0.2548296, %v1083_v21  ;;  %v1078_v29 = vadd.f32 1.4214138, %v1076_v25  ;;  %1372 = vmatpush.msra.mxu2 %v2168_v19  ;;  %v2185_v21 = vld [vmem:[%s4188_s1 + $0x418] sm:$0xff]  ;;  %v2152_v25 = vld [vmem:[%s4188_s1 + $0x310] sm:$0xff] }
 0x8c7   : > { %1415 = vmatpush.msra.mxu0 %v2187_v12  ;;  %v2317_v19 = vld [vmem:[%s4189_s2 + $0x5b8] sm:$0xff] }
 0x8c8   : > { %v1087_v32 = vmul.f32 %v1085_v28, %v3388_v43  ;;  %v1080_v37 = vmul.f32 %v1078_v29, %v3409_v16  ;;  %v2159_v43 = vld [vmem:[%s4188_s1 + $0x348] sm:$0xff]  ;;  %1373 = vmatpush.msra.mxu2 %v2167_v14  ;;  %v2182_v28 = vld [vmem:[%s4188_s1 + $0x400] sm:$0xff]  ;;  %v1132_v29 = vperm.slane %v3319_v46, 6  ;;  %v2296_v14 = vld [vmem:[%s4189_s2 + $0x510] sm:$0xff] }
 0x8c9   : > { %1388 = vmatpush.msra.mxu3 %v2159_v43  ;;  %1416 = vmatpush.msra.mxu0 %v2186_v17 }
 0x8ca   : > { %v1097_v40 = vmul.f32 %v2446_v35, %v1087_v32  ;;  %v2149_v44 = vadd.f32 -0.28449672, %v1080_v37  ;;  %1374 = vmatpush.msra.mxu2 %v2166_v41 }
 0x8cb   : > { %1389 = vmatpush.msra.mxu3 %v2158_v6  ;;  %1417 = vmatpush.msra.mxu0 %v2185_v21  ;;  %v2310_v6 = vld [vmem:[%s4189_s2 + $0x580] sm:$0xff] }
 0x8cc   : > { %v1099_v47 = vsub.f32 1.0, %v1097_v40  ;;  %v1084_v49 = vmul.f32 %v2149_v44, %v3409_v16 }
 0x8cd   : > { %1390 = vmatpush.msra.mxu3 %v2157_v9  ;;  %1418 = vmatpush.msra.mxu0 %v2184_v24  ;;  %v2289_v24 = vld [vmem:[%s4189_s2 + $0x4d8] sm:$0xff] }
 0x8ce   : > { %v1101_v50 = vmul.f32 %v1099_v47, %v1033_v48  ;;  %v1086_v51 = vadd.f32 0.2548296, %v1084_v49  ;;  %v3570_v49 = vld [vmem:[%s4190_s3 + $0x8] sm:$0xff] }
 0x8cf   : > { %1391 = vmatpush.msra.mxu3 %v2156_v11  ;;  %1419 = vmatpush.msra.mxu0 %v2183_v26  ;;  %v2339_v26 = vld [vmem:[%s4189_s2 + $0x668] sm:$0xff] }
 0x8d0   : > { %v1103_v54 = vadd.f32 1.0, %v1101_v50  ;;  %v1088_v56 = vmul.f32 %v1086_v51, %v3409_v16  ;;  %v1432_v50 = vperm.slane %v3570_v49, 0 }
 0x8d1   : > { %1392 = vmatpush.msra.mxu3 %v2155_v13  ;;  %1420 = vmatpush.msra.mxu0 %v2182_v28  ;;  %v2330_v28 = vld [vmem:[%s4189_s2 + $0x620] sm:$0xff] }
 0x8d2   : > { %v1105_v59 = vmul.f32 %v1103_v54, %v1027_v53  ;;  %v1098_v61 = vmul.f32 %v2448_v58, %v1088_v56 }
 0x8d3   : > { %1393 = vmatpush.msra.mxu3 %v2154_v18 }
 0x8d4   : > { %1123 = vmatmul.f32.vlgmr.msra.gmra.mxu1 %v1105_v59  ;;  %v1100_v5 = vsub.f32 1.0, %v1098_v61  ;;  %v2352_v59 = vld [vmem:[%s4189_s2 + $0x6d0] sm:$0xff]  ;;  %v2345_v61 = vld [vmem:[%s4189_s2 + $0x698] sm:$0xff] }
 0x8d5   : > { %1394 = vmatpush.msra.mxu3 %v2153_v23  ;;  %1506 = vmatpush.msrb.mxu2 %v2352_v59  ;;  %v2321_v59 = vld [vmem:[%s4189_s2 + $0x5d8] sm:$0xff] }
 0x8d6   : > { %v1102_v2 = vmul.f32 %v1100_v5, %v1034_v63  ;;  %v2351_v5 = vld [vmem:[%s4189_s2 + $0x6c8] sm:$0xff]  ;;  %v2353_v63 = vld [vmem:[%s4189_s2 + $0x6d8] sm:$0xff] }
 0x8d7   : > { %1395 = vmatpush.msra.mxu3 %v2152_v25  ;;  %1507 = vmatpush.msrb.mxu2 %v2345_v61  ;;  %v2337_v25 = vld [vmem:[%s4189_s2 + $0x658] sm:$0xff] }
 0x8d8   : > { %v1104_v7 = vadd.f32 1.0, %v1102_v2  ;;  %1483 = vmatpush.msrb.mxu1 %v2351_v5  ;;  %v2344_v2 = vld [vmem:[%s4189_s2 + $0x690] sm:$0xff]  ;;  %v2253_v61 = vld [vmem:[%s4189_s2 + $0x3b8] sm:$0xff]  ;;  %v2314_v5 = vld [vmem:[%s4189_s2 + $0x5a0] sm:$0xff] }
 0x8d9   : > { %1396 = vmatpush.msra.mxu3 %v2151_v27  ;;  %1508 = vmatpush.msrb.mxu2 %v2338_v62  ;;  %v2282_v27 = vld [vmem:[%s4189_s2 + $0x4a0] sm:$0xff]  ;;  %v2255_v62 = vld [vmem:[%s4189_s2 + $0x3c8] sm:$0xff] }
 0x8da   : > { %v1106_v16 = vmul.f32 %v1104_v7, %v1028_v4  ;;  %v2331_v4 = vld [vmem:[%s4189_s2 + $0x628] sm:$0xff]  ;;  %v2346_v7 = vld [vmem:[%s4189_s2 + $0x6a0] sm:$0xff]  ;;  %1484 = vmatpush.msrb.mxu1 %v2344_v2  ;;  %v2248_v2 = vld [vmem:[%s4189_s2 + $0x390] sm:$0xff] }
 0x8db   : > { %1397 = vmatpush.msra.mxu3 %v2150_v22  ;;  %1509 = vmatpush.msrb.mxu2 %v2331_v4  ;;  %v2332_v22 = vld [vmem:[%s4189_s2 + $0x630] sm:$0xff]  ;;  %v2307_v4 = vld [vmem:[%s4189_s2 + $0x568] sm:$0xff] }
 0x8dc   : > { %1126 = vmatmul.f32.gmra.mxu1 %v1106_v16  ;;  %v2324_v16 = vld [vmem:[%s4189_s2 + $0x5f0] sm:$0xff] }
 0x8dd   : > { %1529 = vmatpush.msrb.mxu3 %v2353_v63  ;;  %1510 = vmatpush.msrb.mxu2 %v2324_v16  ;;  %v2246_v63 = vld [vmem:[%s4189_s2 + $0x380] sm:$0xff] }
 0x8de   : > { %1485 = vmatpush.msrb.mxu1 %v2337_v25 }
 0x8df   : > { %1530 = vmatpush.msrb.mxu3 %v2346_v7  ;;  %1511 = vmatpush.msrb.mxu2 %v2317_v19  ;;  %v2300_v7 = vld [vmem:[%s4189_s2 + $0x530] sm:$0xff]  ;;  %v2293_v19 = vld [vmem:[%s4189_s2 + $0x4f8] sm:$0xff] }
 0x8e0   : > { %1486 = vmatpush.msrb.mxu1 %v2330_v28 }
 0x8e1   : > { %1512 = vmatpush.msrb.mxu2 %v2310_v6  ;;  %1531 = vmatpush.msrb.mxu3 %v2339_v26 }
 0x8e3   : > { %1513 = vmatpush.msrb.mxu2 %v2303_v8  ;;  %1532 = vmatpush.msrb.mxu3 %v2332_v22  ;;  %v2286_v8 = vld [vmem:[%s4189_s2 + $0x4c0] sm:$0xff] }
 0x8e5   : > { %1514 = vmatpush.msrb.mxu2 %v2296_v14 }
 0x8e7   : > { %1515 = vmatpush.msrb.mxu2 %v2289_v24  ;;  %v2251_v24 = vld [vmem:[%s4189_s2 + $0x3a8] sm:$0xff] }
 0x8e9   : > { %1516 = vmatpush.msrb.mxu2 %v2282_v27 }
 0x951   : > { %v1124_v30 = vpop.f32.mrf.mxu1 }
 0x952   : > { %v1130_v31 = vadd.f32 %v1124_v30, %v3254_v60  ;;  %v2323_v30 = vld [vmem:[%s4189_s2 + $0x5e8] sm:$0xff] }
 0x953   : > { %1487 = vmatpush.msrb.mxu1 %v2323_v30 }
 0x954   : > { %v1133_v32 = vadd.f32 %v1132_v29, %v1130_v31  ;;  %v2325_v31 = vld [vmem:[%s4189_s2 + $0x5f8] sm:$0xff] }
 0x955   : > { %1533 = vmatpush.msrb.mxu3 %v2325_v31  ;;  %v1477_v31 = vperm.slane %v3570_v49, 1 }
 0x956   : > { %1375 = vmatmul.f32.vlgmr.msra.gmra.mxu2 %v1133_v32  ;;  %v1347_v37 = vrot.slane %v1133_v32, 7  ;;  %v1353_v39 = vrot.slane %v1133_v32, 1 }
 0x959   : > { %v1127_v33 = vpop.f32.mrf.mxu1 }
 0x95a   : > { %v1131_v34 = vadd.f32 %v1127_v33, %v3258_v3  ;;  %v2316_v33 = vld [vmem:[%s4189_s2 + $0x5b0] sm:$0xff] }
 0x95b   : > { %1488 = vmatpush.msrb.mxu1 %v2316_v33 }
 0x95c   : > { %v1134_v35 = vadd.f32 %v1132_v29, %v1131_v34  ;;  %v2275_v29 = vld [vmem:[%s4189_s2 + $0x468] sm:$0xff]  ;;  %v2318_v34 = vld [vmem:[%s4189_s2 + $0x5c0] sm:$0xff] }
 0x95d   : > { %1517 = vmatpush.msrb.mxu2 %v2275_v29  ;;  %1534 = vmatpush.msrb.mxu3 %v2318_v34  ;;  %v1480_v34 = vperm.slane %v3570_v49, 2 }
 0x95e   : > { %v1348_v38 = vrot.slane %v1134_v35, 7  ;;  %1378 = vmatmul.f32.gmra.mxu2 %v1134_v35  ;;  %v1354_v40 = vrot.slane %v1134_v35, 1 }
 0x960   : > { %v1355_v43 = vsel %vm436_vm3, %v1353_v39, %v1354_v40  ;;  %v1350_v46 = vsel %vm429_vm2, %v1348_v38, %v1347_v37  ;;  %v1356_v44 = vsel %vm436_vm3, %v1354_v40, %v1353_v39  ;;  %v1349_v45 = vsel %vm429_vm2, %v1347_v37, %v1348_v38  ;;  %v2309_v37 = vld [vmem:[%s4189_s2 + $0x578] sm:$0xff]  ;;  %v2311_v38 = vld [vmem:[%s4189_s2 + $0x588] sm:$0xff]  ;;  %v2254_v39 = vld [vmem:[%s4189_s2 + $0x3c0] sm:$0xff] }
 0x961   : > { %1421 = vmatmul.f32.vlgmr.msra.gmra.mxu0 %v1355_v43  ;;  %v1351_v60 = vmul.f32 %v2776_v55, %v1350_v46  ;;  %v1358_v3 = vmul.f32 %v2797_v0, %v1356_v44  ;;  %1489 = vmatpush.msrb.mxu1 %v2309_v37  ;;  %v2302_v40 = vld [vmem:[%s4189_s2 + $0x540] sm:$0xff]  ;;  %v2304_v43 = vld [vmem:[%s4189_s2 + $0x550] sm:$0xff]  ;;  %v2247_v46 = vld [vmem:[%s4189_s2 + $0x388] sm:$0xff] }
 0x962   : > { %1535 = vmatpush.msrb.mxu3 %v2311_v38  ;;  %v2297_v44 = vld [vmem:[%s4189_s2 + $0x518] sm:$0xff] }
 0x963   : > { %1398 = vmatmul.f32.vlgmr.msra.gmra.mxu3 %v1351_v60  ;;  %1490 = vmatpush.msrb.mxu1 %v2302_v40  ;;  %v2295_v60 = vld [vmem:[%s4189_s2 + $0x508] sm:$0xff] }
 0x964   : > { %1536 = vmatpush.msrb.mxu3 %v2304_v43 }
 0x965   : > { %1491 = vmatpush.msrb.mxu1 %v2295_v60 }
 0x966   : > { %1537 = vmatpush.msrb.mxu3 %v2297_v44 }
 0x969   : > { %1424 = vmatmul.f32.gmra.mxu0 %v1358_v3  ;;  %v2356_v3 = vld [vmem:[%s4189_s2 + $0x6f0] sm:$0xff] }
 0x96b   : > { %1401 = vmatmul.f32.gmra.mxu3 %v1349_v45  ;;  %v2288_v45 = vld [vmem:[%s4189_s2 + $0x4d0] sm:$0xff] }
 0x96c   : > { %1492 = vmatpush.msrb.mxu1 %v2288_v45 }
 0x9d9   : > { %v1376_v1 = vpop.f32.mrf.mxu2 }
 0x9de   : > { %v1422_v47 = vpop.f32.mrf.mxu0 }
 0x9e1   : > { %v1379_v0 = vpop.f32.mrf.mxu2 }
 0x9e6   : > { %v1399_v48 = vpop.f32.mrf.mxu3  ;;  %v1425_v54 = vpop.f32.mrf.mxu0 }
 0x9e7   : > { %v1400_v55 = vadd.f32 %v1399_v48, %v1376_v1  ;;  %v2290_v1 = vld [vmem:[%s4189_s2 + $0x4e0] sm:$0xff]  ;;  %v2281_v48 = vld [vmem:[%s4189_s2 + $0x498] sm:$0xff] }
 0x9e8   : > { %1538 = vmatpush.msrb.mxu3 %v2290_v1  ;;  %1493 = vmatpush.msrb.mxu1 %v2281_v48 }
 0x9e9   : > { %v1428_v36 = vadd.f32 %v1422_v47, %v1400_v55  ;;  %v2349_v47 = vld [vmem:[%s4189_s2 + $0x6b8] sm:$0xff]  ;;  %v2283_v55 = vld [vmem:[%s4189_s2 + $0x4a8] sm:$0xff] }
 0x9ea   : > { %1539 = vmatpush.msrb.mxu3 %v2283_v55  ;;  %v2347_v55 = vld [vmem:[%s4189_s2 + $0x6a8] sm:$0xff] }
 0x9eb   : > { %v1430_v51 = vadd.f32 %v1428_v36, %v1133_v32  ;;  %v2268_v32 = vld [vmem:[%s4189_s2 + $0x430] sm:$0xff]  ;;  %v2342_v36 = vld [vmem:[%s4189_s2 + $0x680] sm:$0xff] }
 0x9ec   : > { %1518 = vmatpush.msrb.mxu2 %v2268_v32 }
 0x9ed   : > { %v3573_v52 = vadd.f32 %v1432_v50, %v1430_v51  ;;  %v2276_v51 = vld [vmem:[%s4189_s2 + $0x470] sm:$0xff] }
 0x9ee   : > { %v1402_v53 = vpop.f32.mrf.mxu3  ;;  %1540 = vmatpush.msrb.mxu3 %v2276_v51  ;;  %v2326_v51 = vld [vmem:[%s4189_s2 + $0x600] sm:$0xff] }
 0x9ef   : > { %v1403_v42 = vadd.f32 %v1402_v53, %v1379_v0  ;;  %1435 = vadd.xlane.f32.xlu1 %v3573_v52  ;;  %v2335_v0 = vld [vmem:[%s4189_s2 + $0x648] sm:$0xff] }
 0x9f0   : > { %v2267_v53 = vld [vmem:[%s4189_s2 + $0x428] sm:$0xff] }
 0x9f1   : > { %v1429_v56 = vadd.f32 %v1425_v54, %v1403_v42  ;;  %v2269_v42 = vld [vmem:[%s4189_s2 + $0x438] sm:$0xff]  ;;  %v2328_v54 = vld [vmem:[%s4189_s2 + $0x610] sm:$0xff] }
 0x9f2   : > { %1541 = vmatpush.msrb.mxu3 %v2269_v42  ;;  %v2312_v42 = vld [vmem:[%s4189_s2 + $0x590] sm:$0xff] }
 0x9f3   : > { %v1431_v57 = vadd.f32 %v1429_v56, %v1134_v35  ;;  %v2261_v35 = vld [vmem:[%s4189_s2 + $0x3f8] sm:$0xff]  ;;  %v2260_v56 = vld [vmem:[%s4189_s2 + $0x3f0] sm:$0xff] }
 0x9f4   : > { %1519 = vmatpush.msrb.mxu2 %v2261_v35 }
 0x9f5   : > { %v3576_v58 = vadd.f32 %v1432_v50, %v1431_v57  ;;  %v2274_v50 = vld [vmem:[%s4189_s2 + $0x460] sm:$0xff] }
 0x9f6   : > { %1520 = vmatpush.msrb.mxu2 %v2254_v39  ;;  %1494 = vmatpush.msrb.mxu1 %v2274_v50  ;;  %v2262_v57 = vld [vmem:[%s4189_s2 + $0x400] sm:$0xff]  ;;  %v2333_v50 = vld [vmem:[%s4189_s2 + $0x638] sm:$0xff] }
 0x9f7   : > { %1437 = vadd.xlane.f32.xlu2 %v3576_v58  ;;  %1542 = vmatpush.msrb.mxu3 %v2262_v57  ;;  %v2291_v57 = vld [vmem:[%s4189_s2 + $0x4e8] sm:$0xff] }
 0x9f8   : > { %1521 = vmatpush.msrb.mxu2 %v2247_v46  ;;  %1495 = vmatpush.msrb.mxu1 %v2267_v53 }
 0x9f9   : > { %1543 = vmatpush.msrb.mxu3 %v2255_v62  ;;  %v2270_v62 = vld [vmem:[%s4189_s2 + $0x440] sm:$0xff] }
 0x9fa   : > { %1698 = vmatpush.msra.mxu2 %v2356_v3  ;;  %1496 = vmatpush.msrb.mxu1 %v2260_v56  ;;  %v2298_v56 = vld [vmem:[%s4189_s2 + $0x520] sm:$0xff] }
 0x9fb   : > { %1544 = vmatpush.msrb.mxu3 %v2248_v2  ;;  %v2249_v2 = vld [vmem:[%s4189_s2 + $0x398] sm:$0xff] }
 0x9fc   : > { %1699 = vmatpush.msra.mxu2 %v2349_v47  ;;  %1497 = vmatpush.msrb.mxu1 %v2253_v61  ;;  %v2277_v61 = vld [vmem:[%s4189_s2 + $0x478] sm:$0xff] }
 0x9fe   : > { %1700 = vmatpush.msra.mxu2 %v2342_v36  ;;  %1498 = vmatpush.msrb.mxu1 %v2246_v63  ;;  %v2340_v36 = vld [vmem:[%s4189_s2 + $0x670] sm:$0xff] }
 0x9ff   : > { %v2256_v63 = vld [vmem:[%s4189_s2 + $0x3d0] sm:$0xff] }
 0xa00   : > { %1701 = vmatpush.msra.mxu2 %v2335_v0  ;;  %v2319_v0 = vld [vmem:[%s4189_s2 + $0x5c8] sm:$0xff] }
 0xa02   : > { %1702 = vmatpush.msra.mxu2 %v2328_v54  ;;  %v2305_v54 = vld [vmem:[%s4189_s2 + $0x558] sm:$0xff] }
 0xa04   : > { %1703 = vmatpush.msra.mxu2 %v2321_v59  ;;  %v2284_v59 = vld [vmem:[%s4189_s2 + $0x4b0] sm:$0xff] }
 0xa06   : > { %1704 = vmatpush.msra.mxu2 %v2314_v5  ;;  %v2263_v5 = vld [vmem:[%s4189_s2 + $0x408] sm:$0xff] }
 0xa08   : > { %1705 = vmatpush.msra.mxu2 %v2307_v4 }
 0xa0a   : > { %1706 = vmatpush.msra.mxu2 %v2300_v7 }
 0xa0c   : > { %1707 = vmatpush.msra.mxu2 %v2293_v19 }
 0xa0e   : > { %1708 = vmatpush.msra.mxu2 %v2286_v8 }
 0xa62   : > { %v1436_v9 = vpop.xlane.xlu1 %1435 }
 0xa63   : > { %v1439_v10 = vmul.f32 0.03125, %v1436_v9  ;;  %v2279_v9 = vld [vmem:[%s4189_s2 + $0x488] sm:$0xff] }
 0xa64   : > { %1709 = vmatpush.msra.mxu2 %v2279_v9 }
 0xa65   : > { %v3619_v41 = vsub.f32 %v3573_v52, %v1439_v10  ;;  %v2272_v10 = vld [vmem:[%s4189_s2 + $0x450] sm:$0xff] }
 0xa66   : > { %1710 = vmatpush.msra.mxu2 %v2272_v10 }
 0xa67   : > { %v1443_v11 = vmul.f32 %v2662_v15, %v3619_v41 }
 0xa69   : > { %v1445_v12 = vmul.f32 %v1443_v11, %v1443_v11  ;;  %v2265_v11 = vld [vmem:[%s4189_s2 + $0x418] sm:$0xff] }
 0xa6a   : > { %v1438_v13 = vpop.xlane.xlu2 %1437  ;;  %1711 = vmatpush.msra.mxu2 %v2265_v11 }
 0xa6b   : > { %v1440_v17 = vmul.f32 0.03125, %v1438_v13  ;;  %1447 = vadd.xlane.f32.xlu0 %v1445_v12 }
 0xa6d   : > { %v3624_v18 = vsub.f32 %v3576_v58, %v1440_v17  ;;  %v2258_v17 = vld [vmem:[%s4189_s2 + $0x3e0] sm:$0xff] }
 0xa6e   : > { %1712 = vmatpush.msra.mxu2 %v2258_v17 }
 0xa6f   : > { %v1444_v21 = vmul.f32 %v2662_v15, %v3624_v18 }
 0xa70   : > { %1713 = vmatpush.msra.mxu2 %v2251_v24  ;;  %v2348_v24 = vld [vmem:[%s4189_s2 + $0x6b0] sm:$0xff] }
 0xa71   : > { %v1446_v23 = vmul.f32 %v1444_v21, %v1444_v21 }
 0xa73   : > { %1449 = vadd.xlane.f32.xlu1 %v1446_v23 }
 0xade   : > { %v1448_v16 = vpop.xlane.xlu0 %1447 }
 0xadf   : > { %v1451_v6 = vmul.f32 0.03125, %v1448_v16 }
 0xae1   : > { %v1453_v14 = vadd.f32 1e-05, %v1451_v6 }
 0xae3   : > { %2449 = vrsqrt.f32 %v1453_v14  ;;  %vm1461_vm3 = vweird.f32 %v1453_v14 }
 0xae6   : > { %v1450_v12 = vpop.xlane.xlu1 %1449 }
 0xae7   : > { %v1452_v13 = vmul.f32 0.03125, %v1450_v12 }
 0xae9   : > { %v2450_v21 = vpop.eup %2449  ;;  %v1454_v23 = vadd.f32 1e-05, %v1452_v13 }
 0xaea   : > { %v1456_v25 = vmul.f32 %v2450_v21, %v1453_v14  ;;  %vm1462_vm2 = vweird.f32 %v2450_v21 }
 0xaeb   : > { %2451 = vrsqrt.f32 %v1454_v23  ;;  %vm1463_vm4 = vmor %vm1461_vm3, %vm1462_vm2  ;;  %vm1471_vm6 = vweird.f32 %v1454_v23 }
 0xaec   : > { %v1457_v26 = vmul.f32 %v2450_v21, %v1456_v25  ;;  %v2341_v25 = vld [vmem:[%s4189_s2 + $0x678] sm:$0xff] }
 0xaee   : > { %v1458_v27 = vmul.f32 0.5, %v1457_v26  ;;  %v2334_v26 = vld [vmem:[%s4189_s2 + $0x640] sm:$0xff] }
 0xaf0   : > { %v1459_v28 = vsub.f32 1.5, %v1458_v27  ;;  %v2327_v27 = vld [vmem:[%s4189_s2 + $0x608] sm:$0xff] }
 0xaf1   : > { %v2452_v22 = vpop.eup %2451 }
 0xaf2   : > { %v1460_v29 = vmul.f32 %v2450_v21, %v1459_v28  ;;  %v1466_v30 = vmul.f32 %v2452_v22, %v1454_v23  ;;  %vm1472_vm5 = vweird.f32 %v2452_v22  ;;  %v2355_v23 = vld [vmem:[%s4189_s2 + $0x6e8] sm:$0xff]  ;;  %v2320_v28 = vld [vmem:[%s4189_s2 + $0x5d0] sm:$0xff] }
 0xaf3   : > { %vm1473_vm7 = vmor %vm1471_vm6, %vm1472_vm5 }
 0xaf4   : > { %v1464_v32 = vsel %vm1463_vm4, %v2450_v21, %v1460_v29  ;;  %v1467_v33 = vmul.f32 %v2452_v22, %v1466_v30  ;;  %v2306_v29 = vld [vmem:[%s4189_s2 + $0x560] sm:$0xff]  ;;  %v2299_v30 = vld [vmem:[%s4189_s2 + $0x528] sm:$0xff] }
 0xaf5   : > { %v1475_v35 = vmul.f32 %v1464_v32, %v3619_v41  ;;  %v2285_v32 = vld [vmem:[%s4189_s2 + $0x4b8] sm:$0xff] }
 0xaf6   : > { %v1468_v37 = vmul.f32 0.5, %v1467_v33  ;;  %v2278_v33 = vld [vmem:[%s4189_s2 + $0x480] sm:$0xff] }
 0xaf7   : > { %v1478_v38 = vmul.f32 %v1477_v31, %v1475_v35  ;;  %v2264_v35 = vld [vmem:[%s4189_s2 + $0x410] sm:$0xff] }
 0xaf8   : > { %v1469_v39 = vsub.f32 1.5, %v1468_v37  ;;  %v2257_v37 = vld [vmem:[%s4189_s2 + $0x3d8] sm:$0xff] }
 0xaf9   : > { %v3784_v40 = vadd.f32 %v1480_v34, %v1478_v38 }
 0xafa   : > { %v1470_v43 = vmul.f32 %v2452_v22, %v1469_v39  ;;  %v2250_v39 = vld [vmem:[%s4189_s2 + $0x3a0] sm:$0xff] }
 0xafb   : > { %1499 = vmatmul.f32.vlgmr.msrb.gmra.mxu1 %v3784_v40  ;;  %1522 = vmatmul.f32.vlgmr.msrb.gmra.mxu2 %v3784_v40 }
 0xafc   : > { %v1474_v46 = vsel %vm1473_vm7, %v2452_v22, %v1470_v43  ;;  %1545 = vmatmul.f32.vlgmr.msrb.gmra.mxu3 %v3784_v40  ;;  %v2313_v22 = vld [vmem:[%s4189_s2 + $0x598] sm:$0xff] }
 0xafd   : > { %v1476_v60 = vmul.f32 %v1474_v46, %v3624_v18  ;;  %v2354_v18 = vld [vmem:[%s4189_s2 + $0x6e0] sm:$0xff] }
 0xaff   : > { %v1479_v44 = vmul.f32 %v1477_v31, %v1476_v60  ;;  %v2292_v31 = vld [vmem:[%s4189_s2 + $0x4f0] sm:$0xff] }
 0xb01   : > { %v3790_v41 = vadd.f32 %v1480_v34, %v1479_v44  ;;  %v2271_v34 = vld [vmem:[%s4189_s2 + $0x448] sm:$0xff] }
 0xb03   : > { %1502 = vmatmul.f32.gmra.mxu1 %v3790_v41  ;;  %1525 = vmatmul.f32.gmra.mxu2 %v3790_v41 }
 0xb04   : > { %1548 = vmatmul.f32.gmra.mxu3 %v3790_v41 }
 0xb0b   : > { %1714 = vmatmul.f32.vlgmr.msra.gmra.mxu2 %v3784_v40 }
 0xb13   : > { %1717 = vmatmul.f32.gmra.mxu2 %v3790_v41 }
 0xb78   : > { %v1500_v48 = vpop.f32.mrf.mxu1 }
 0xb7e   : > { %v1523_v3 = vpop.f32.mrf.mxu2 }
 0xb7f   : > { %v1546_v45 = vpop.f32.mrf.mxu3 }
 0xb80   : > { %v1503_v53 = vpop.f32.mrf.mxu1 }
 0xb86   : > { %v1526_v1 = vpop.f32.mrf.mxu2 }
 0xb87   : > { %v1549_v47 = vpop.f32.mrf.mxu3  ;;  %1566 = vmatpush.xpose.msrb.mxu0 %v1526_v1 }
 0xb88   : > { %1643 = vmatpush.msra.mxu1 %v1549_v47 }
 0xb8a   : > { %1644 = vmatpush.msra.mxu1 %v1546_v45 }
 0xb8b   : > { %1567 = vmatpush.xpose.msrb.mxu0 %v1523_v3 }
 0xb8c   : > { %1675 = vmatpush.msrb.mxu1 %v2355_v23 }
 0xb8e   : > { %1568 = vmatmul.f32.vlgmr.msrb.gmra.mxu0 %v1500_v48  ;;  %1676 = vmatpush.msrb.mxu1 %v2348_v24  ;;  %v1715_v23 = vpop.f32.mrf.mxu2 }
 0xb8f   : > { %1652 = vmatpush.msra.mxu0 %v2354_v18 }
 0xb90   : > { %1677 = vmatpush.msrb.mxu1 %v2341_v25 }
 0xb91   : > { %1653 = vmatpush.msra.mxu0 %v2347_v55 }
 0xb92   : > { %1678 = vmatpush.msrb.mxu1 %v2334_v26 }
 0xb93   : > { %1654 = vmatpush.msra.mxu0 %v2340_v36 }
 0xb94   : > { %1679 = vmatpush.msrb.mxu1 %v2327_v27 }
 0xb95   : > { %1655 = vmatpush.msra.mxu0 %v2333_v50 }
 0xb96   : > { %1571 = vmatmul.f32.gmra.mxu0 %v1503_v53  ;;  %1680 = vmatpush.msrb.mxu1 %v2320_v28  ;;  %v2213_v53 = vld [vmem:[%s4188_s1 + $0x4f8] sm:$0xff]  ;;  %v1718_v25 = vpop.f32.mrf.mxu2 }
 0xb97   : > { %1656 = vmatpush.msra.mxu0 %v2326_v51 }
 0xb98   : > { %1681 = vmatpush.msrb.mxu1 %v2313_v22 }
 0xb99   : > { %1657 = vmatpush.msra.mxu0 %v2319_v0 }
 0xb9a   : > { %1682 = vmatpush.msrb.mxu1 %v2306_v29 }
 0xb9b   : > { %1658 = vmatpush.msra.mxu0 %v2312_v42 }
 0xb9c   : > { %1683 = vmatpush.msrb.mxu1 %v2299_v30 }
 0xb9d   : > { %1659 = vmatpush.msra.mxu0 %v2305_v54 }
 0xb9e   : > { %1684 = vmatpush.msrb.mxu1 %v2292_v31 }
 0xb9f   : > { %1660 = vmatpush.msra.mxu0 %v2298_v56 }
 0xba0   : > { %1685 = vmatpush.msrb.mxu1 %v2285_v32 }
 0xba1   : > { %1661 = vmatpush.msra.mxu0 %v2291_v57  ;;  %v2212_v57 = vld [vmem:[%s4188_s1 + $0x4f0] sm:$0xff] }
 0xba2   : > { %1686 = vmatpush.msrb.mxu1 %v2278_v33 }
 0xba3   : > { %1662 = vmatpush.msra.mxu0 %v2284_v59 }
 0xba4   : > { %1687 = vmatpush.msrb.mxu1 %v2271_v34 }
 0xba5   : > { %1663 = vmatpush.msra.mxu0 %v2277_v61  ;;  %v2211_v61 = vld [vmem:[%s4188_s1 + $0x4e8] sm:$0xff] }
 0xba6   : > { %1688 = vmatpush.msrb.mxu1 %v2264_v35 }
 0xba7   : > { %1664 = vmatpush.msra.mxu0 %v2270_v62 }
 0xba8   : > { %1689 = vmatpush.msrb.mxu1 %v2257_v37 }
 0xba9   : > { %1665 = vmatpush.msra.mxu0 %v2263_v5 }
 0xbaa   : > { %1690 = vmatpush.msrb.mxu1 %v2250_v39 }
 0xbab   : > { %1666 = vmatpush.msra.mxu0 %v2256_v63  ;;  %v2210_v63 = vld [vmem:[%s4188_s1 + $0x4e0] sm:$0xff] }
 0xbad   : > { %1667 = vmatpush.msra.mxu0 %v2249_v2 }
 0xbae   : > { %1668 = vmatmul.f32.vlgmr.msra.gmra.mxu0 %v3784_v40 }
 0xbb6   : > { %1671 = vmatmul.f32.gmra.mxu0 %v3790_v41 }
 0xc0b   : > { %v1569_v4 = vpop.f32.mrf.mxu0 }
 0xc0c   : > { %v1575_v7 = vsel %vm657_vm11, %v1569_v4, -inf }
 0xc0d   : > { %1576 = vmax.xlane.f32.xlu2 %v1575_v7  ;;  %v2209_v7 = vld [vmem:[%s4188_s1 + $0x4d8] sm:$0xff] }
 0xc13   : > { %v1572_v16 = vpop.f32.mrf.mxu0 }
 0xc14   : > { %v1578_v19 = vsel %vm657_vm11, %v1572_v16, -inf }
 0xc15   : > { %1579 = vmax.xlane.f32.xlu0 %v1578_v19  ;;  %v2207_v19 = vld [vmem:[%s4188_s1 + $0x4c8] sm:$0xff] }
 0xc2b   : > { %v1669_v26 = vpop.f32.mrf.mxu0 }
 0xc33   : > { %v1672_v27 = vpop.f32.mrf.mxu0 }
 0xc80   : > { %v1577_v6 = vpop.xlane.xlu2 %1576 }
 0xc81   : > { %v1581_v8 = vsub.f32 %v1569_v4, %v1577_v6  ;;  %v2206_v6 = vld [vmem:[%s4188_s1 + $0x4c0] sm:$0xff] }
 0xc83   : > { %v1583_v14 = vmul.f32 1.442695, %v1581_v8  ;;  %v2205_v8 = vld [vmem:[%s4188_s1 + $0x4b8] sm:$0xff] }
 0xc85   : > { %2453 = vpow2.f32 %v1583_v14  ;;  %v2204_v14 = vld [vmem:[%s4188_s1 + $0x4b0] sm:$0xff] }
 0xc88   : > { %v1580_v9 = vpop.xlane.xlu0 %1579 }
 0xc89   : > { %v1582_v10 = vsub.f32 %v1572_v16, %v1580_v9  ;;  %v2208_v16 = vld [vmem:[%s4188_s1 + $0x4d0] sm:$0xff]  ;;  %v2203_v9 = vld [vmem:[%s4188_s1 + $0x4a8] sm:$0xff] }
 0xc8b   : > { %v2454_v11 = vpop.eup %2453  ;;  %v1585_v12 = vmul.f32 1.442695, %v1582_v10  ;;  %v2202_v10 = vld [vmem:[%s4188_s1 + $0x4a0] sm:$0xff] }
 0xc8c   : > { %v1587_v13 = vsel %vm657_vm11, %v2454_v11, 0.0 }
 0xc8d   : > { %2455 = vpow2.f32 %v1585_v12  ;;  %1588 = vadd.xlane.f32.xlu1 %v1587_v13  ;;  %v2199_v12 = vld [vmem:[%s4188_s1 + $0x488] sm:$0xff]  ;;  %v2198_v13 = vld [vmem:[%s4188_s1 + $0x480] sm:$0xff] }
 0xc93   : > { %v3850_v17 = vpop.eup %2455 }
 0xc94   : > { %v1590_v21 = vsel %vm657_vm11, %v3850_v17, 0.0 }
 0xc95   : > { %1591 = vadd.xlane.f32.xlu2 %v1590_v21 }
 0xd00   : > { %v1589_v38 = vpop.xlane.xlu1 %1588 }
 0xd01   : > { %2457 = vrcp.f32 %v1589_v38  ;;  %v1604_v3 = vand.u32 2147483648, %v1589_v38  ;;  %v1602_v1 = vand.u32 2147483647, %v1589_v38  ;;  %vm1598_vm9 = vweird.f32 %v1589_v38 }
 0xd03   : > { %v1605_v48 = vor.u32 1.1754944e-38, %v1604_v3  ;;  %vm1603_vm12 = vcmp.eq.f32.partialorder %v1602_v1, 8.507059e+37  ;;  %v2227_v3 = vld [vmem:[%s4188_s1 + $0x568] sm:$0xff]  ;;  %v2226_v1 = vld [vmem:[%s4188_s1 + $0x560] sm:$0xff] }
 0xd07   : > { %v2458_v43 = vpop.eup %2457 }
 0xd08   : > { %v1594_v46 = vmul.f32 %v2458_v43, %v1589_v38  ;;  %v1592_v60 = vpop.xlane.xlu2 %1591  ;;  %vm1599_vm8 = vweird.f32 %v2458_v43 }
 0xd09   : > { %2459 = vrcp.f32 %v1592_v60  ;;  %vm1600_vm10 = vmor %vm1598_vm9, %vm1599_vm8  ;;  %v1619_v42 = vand.u32 2147483648, %v1592_v60  ;;  %v1617_v56 = vand.u32 2147483647, %v1592_v60  ;;  %vm1613_vm14 = vweird.f32 %v1592_v60 }
 0xd0a   : > { %v1595_v44 = vsub.f32 1.0, %v1594_v46 }
 0xd0b   : > { %v1620_v62 = vor.u32 1.1754944e-38, %v1619_v42  ;;  %vm1618_vm0 = vcmp.eq.f32.partialorder %v1617_v56, 8.507059e+37 }
 0xd0c   : > { %v1596_v45 = vmul.f32 %v2458_v43, %v1595_v44  ;;  %v2228_v44 = vld [vmem:[%s4188_s1 + $0x570] sm:$0xff] }
 0xd0e   : > { %v1597_v47 = vadd.f32 %v2458_v43, %v1596_v45 }
 0xd0f   : > { %v2460_v18 = vpop.eup %2459 }
 0xd10   : > { %v1601_v55 = vsel %vm1600_vm10, %v2458_v43, %v1597_v47  ;;  %v1609_v36 = vmul.f32 %v2460_v18, %v1592_v60  ;;  %vm1614_vm13 = vweird.f32 %v2460_v18  ;;  %v2229_v60 = vld [vmem:[%s4188_s1 + $0x578] sm:$0xff] }
 0xd11   : > { %v1606_v50 = vsel %vm1603_vm12, %v1605_v48, %v1601_v55  ;;  %vm1615_vm15 = vmor %vm1613_vm14, %vm1614_vm13  ;;  %1821 = vmatpush.msrb.mxu0 %v2229_v60  ;;  %v2225_v47 = vld [vmem:[%s4188_s1 + $0x558] sm:$0xff]  ;;  %v2223_v48 = vld [vmem:[%s4188_s1 + $0x548] sm:$0xff] }
 0xd12   : > { %v1610_v51 = vsub.f32 1.0, %v1609_v36  ;;  %v1607_v0 = vmul.f32 %v2454_v11, %v1606_v50  ;;  %v2201_v11 = vld [vmem:[%s4188_s1 + $0x498] sm:$0xff] }
 0xd13   : > { %1822 = vmatpush.msrb.mxu0 %v2228_v44 }
 0xd14   : > { %v1611_v54 = vmul.f32 %v2460_v18, %v1610_v51  ;;  %2359 = vmatmul.msk.f32.vlgmr.msra.gmra.mxu1 %vm657_vm11, %v1607_v0  ;;  %v2222_v51 = vld [vmem:[%s4188_s1 + $0x540] sm:$0xff] }
 0xd15   : > { %1844 = vmatpush.msra.mxu1 %v2213_v53  ;;  %1823 = vmatpush.msrb.mxu0 %v2227_v3  ;;  %v2221_v53 = vld [vmem:[%s4188_s1 + $0x538] sm:$0xff] }
 0xd16   : > { %v1612_v59 = vadd.f32 %v2460_v18, %v1611_v54 }
 0xd17   : > { %1845 = vmatpush.msra.mxu1 %v2212_v57  ;;  %1824 = vmatpush.msrb.mxu0 %v2226_v1  ;;  %v2220_v57 = vld [vmem:[%s4188_s1 + $0x530] sm:$0xff] }
 0xd18   : > { %v1616_v5 = vsel %vm1615_vm15, %v2460_v18, %v1612_v59  ;;  %v2224_v18 = vld [vmem:[%s4188_s1 + $0x550] sm:$0xff] }
 0xd19   : > { %v1621_v2 = vsel %vm1618_vm0, %v1620_v62, %v1616_v5  ;;  %1846 = vmatpush.msra.mxu1 %v2211_v61  ;;  %1825 = vmatpush.msrb.mxu0 %v2225_v47  ;;  %v2219_v61 = vld [vmem:[%s4188_s1 + $0x528] sm:$0xff]  ;;  %v2336_v1 = vld [vmem:[%s4189_s2 + $0x650] sm:$0xff]  ;;  %v2329_v47 = vld [vmem:[%s4189_s2 + $0x618] sm:$0xff] }
 0xd1a   : > { %v1622_v4 = vmul.f32 %v3850_v17, %v1621_v2 }
 0xd1b   : > { %1847 = vmatpush.msra.mxu1 %v2210_v63  ;;  %1826 = vmatpush.msrb.mxu0 %v2224_v18  ;;  %v2315_v18 = vld [vmem:[%s4189_s2 + $0x5a8] sm:$0xff] }
 0xd1c   : > { %2360 = vmatmul.msk.f32.gmra.mxu1 %vm657_vm11, %v1622_v4  ;;  %v2218_v4 = vld [vmem:[%s4188_s1 + $0x520] sm:$0xff] }
 0xd1d   : > { %1848 = vmatpush.msra.mxu1 %v2209_v7  ;;  %1827 = vmatpush.msrb.mxu0 %v2223_v48  ;;  %v2308_v48 = vld [vmem:[%s4189_s2 + $0x570] sm:$0xff] }
 0xd1f   : > { %1849 = vmatpush.msra.mxu1 %v2208_v16  ;;  %1828 = vmatpush.msrb.mxu0 %v2222_v51  ;;  %v2280_v51 = vld [vmem:[%s4189_s2 + $0x490] sm:$0xff] }
 0xd21   : > { %1850 = vmatpush.msra.mxu1 %v2207_v19  ;;  %1829 = vmatpush.msrb.mxu0 %v2221_v53  ;;  %v2266_v53 = vld [vmem:[%s4189_s2 + $0x420] sm:$0xff] }
 0xd23   : > { %1851 = vmatpush.msra.mxu1 %v2206_v6  ;;  %1830 = vmatpush.msrb.mxu0 %v2220_v57  ;;  %v2217_v6 = vld [vmem:[%s4188_s1 + $0x518] sm:$0xff] }
 0xd24   : > { %1691 = vmatmul.f32.vlgmr.msrb.gmra.mxu1 %v3784_v40  ;;  %v2200_v40 = vld [vmem:[%s4188_s1 + $0x490] sm:$0xff] }
 0xd25   : > { %1852 = vmatpush.msra.mxu1 %v2205_v8  ;;  %1831 = vmatpush.msrb.mxu0 %v2219_v61 }
 0xd27   : > { %1853 = vmatpush.msra.mxu1 %v2204_v14  ;;  %1832 = vmatpush.msrb.mxu0 %v2218_v4 }
 0xd29   : > { %1854 = vmatpush.msra.mxu1 %v2203_v9  ;;  %1833 = vmatpush.msrb.mxu0 %v2217_v6 }
 0xd2b   : > { %1855 = vmatpush.msra.mxu1 %v2202_v10  ;;  %v2216_v10 = vld [vmem:[%s4188_s1 + $0x510] sm:$0xff] }
 0xd2c   : > { %1694 = vmatmul.f32.gmra.mxu1 %v3790_v41  ;;  %1834 = vmatpush.msrb.mxu0 %v2216_v10 }
 0xd2d   : > { %1856 = vmatpush.msra.mxu1 %v2201_v11 }
 0xd2f   : > { %1857 = vmatpush.msra.mxu1 %v2200_v40  ;;  %v2215_v40 = vld [vmem:[%s4188_s1 + $0x508] sm:$0xff] }
 0xd30   : > { %1835 = vmatpush.msrb.mxu0 %v2215_v40 }
 0xd31   : > { %1858 = vmatpush.msra.mxu1 %v2199_v12 }
 0xd33   : > { %1859 = vmatpush.msra.mxu1 %v2198_v13 }
 0xd91   : > { %v1646_v17 = vpop.f32.mrf.mxu1 }
 0xd92   : > { %1860 = vmatmul.f32.vlgmr.msra.gmra.mxu1 %v1646_v17 }
 0xd99   : > { %v1649_v21 = vpop.f32.mrf.mxu1 }
 0xd9a   : > { %1863 = vmatmul.f32.gmra.mxu1 %v1649_v21 }
 0xda1   : > { %v1692_v41 = vpop.f32.mrf.mxu1 }
 0xda9   : > { %v1695_v24 = vpop.f32.mrf.mxu1 }
 0xdaa   : > { %1735 = vmatpush.xpose.msra.mxu3 %v1695_v24 }
 0xdae   : > { %1736 = vmatpush.xpose.msra.mxu3 %v1692_v41  ;;  %v2214_v41 = vld [vmem:[%s4188_s1 + $0x500] sm:$0xff] }
 0xdaf   : > { %1836 = vmatpush.msrb.mxu0 %v2214_v41 }
 0xdb1   : > { %1737 = vmatmul.f32.vlgmr.msra.gmra.mxu3 %v1669_v26 }
 0xdb2   : > { %1812 = vmatpush.msrb.mxu3 %v1718_v25 }
 0xdb4   : > { %1813 = vmatpush.msrb.mxu3 %v1715_v23 }
 0xdb9   : > { %1740 = vmatmul.f32.gmra.mxu3 %v1672_v27 }
 0xe0f   : > { %v1861_v25 = vpop.f32.mrf.mxu1 }
 0xe34   : > { %v1738_v28 = vpop.f32.mrf.mxu3 }
 0xe35   : > { %v1744_v22 = vsel %vm657_vm11, %v1738_v28, -inf }
 0xe36   : > { %1745 = vmax.xlane.f32.xlu0 %v1744_v22 }
 0xe3c   : > { %v1741_v29 = vpop.f32.mrf.mxu3 }
 0xe3d   : > { %v1747_v30 = vsel %vm657_vm11, %v1741_v29, -inf }
 0xe3e   : > { %1748 = vmax.xlane.f32.xlu1 %v1747_v30  ;;  %v1864_v30 = vpop.f32.mrf.mxu1 }
 0xea9   : > { %v1746_v31 = vpop.xlane.xlu0 %1745 }
 0xeaa   : > { %v1750_v32 = vsub.f32 %v1738_v28, %v1746_v31  ;;  %v1869_v28 = vperm.slane %v3570_v49, 3  ;;  %v2350_v49 = vld [vmem:[%s4189_s2 + $0x6c0] sm:$0xff] }
 0xeac   : > { %v1752_v33 = vmul.f32 1.442695, %v1750_v32 }
 0xeae   : > { %2461 = vpow2.f32 %v1752_v33 }
 0xeb1   : > { %v1749_v34 = vpop.xlane.xlu1 %1748 }
 0xeb2   : > { %v1751_v35 = vsub.f32 %v1741_v29, %v1749_v34 }
 0xeb4   : > { %v2462_v37 = vpop.eup %2461  ;;  %v1754_v38 = vmul.f32 1.442695, %v1751_v35  ;;  %v2357_v35 = vld [vmem:[%s4189_s2 + $0x6f8] sm:$0xff] }
 0xeb5   : > { %v1756_v39 = vsel %vm657_vm11, %v2462_v37, 0.0  ;;  %1921 = vmatpush.msrb.mxu2 %v2357_v35 }
 0xeb6   : > { %2463 = vpow2.f32 %v1754_v38  ;;  %1757 = vadd.xlane.f32.xlu2 %v1756_v39 }
 0xeb7   : > { %1922 = vmatpush.msrb.mxu2 %v2350_v49  ;;  %v2241_v49 = vld [vmem:[%s4188_s1 + $0x5d8] sm:$0xff] }
 0xebc   : > { %v3958_v43 = vpop.eup %2463 }
 0xebd   : > { %v1759_v46 = vsel %vm657_vm11, %v3958_v43, 0.0 }
 0xebe   : > { %1760 = vadd.xlane.f32.xlu0 %v1759_v46 }
 0xf29   : > { %v1758_v45 = vpop.xlane.xlu2 %1757 }
 0xf2a   : > { %2465 = vrcp.f32 %v1758_v45  ;;  %v1773_v42 = vand.u32 2147483648, %v1758_v45  ;;  %v1771_v56 = vand.u32 2147483647, %v1758_v45  ;;  %vm1767_vm2 = vweird.f32 %v1758_v45 }
 0xf2c   : > { %v1774_v5 = vor.u32 1.1754944e-38, %v1773_v42  ;;  %vm1772_vm4 = vcmp.eq.f32.partialorder %v1771_v56, 8.507059e+37  ;;  %v2259_v42 = vld [vmem:[%s4189_s2 + $0x3e8] sm:$0xff] }
 0xf30   : > { %v2466_v55 = vpop.eup %2465 }
 0xf31   : > { %v1763_v36 = vmul.f32 %v2466_v55, %v1758_v45  ;;  %v1761_v50 = vpop.xlane.xlu0 %1760  ;;  %vm1768_vm1 = vweird.f32 %v2466_v55  ;;  %v2343_v45 = vld [vmem:[%s4189_s2 + $0x688] sm:$0xff] }
 0xf32   : > { %2467 = vrcp.f32 %v1761_v50  ;;  %vm1769_vm3 = vmor %vm1767_vm2, %vm1768_vm1  ;;  %v1788_v8 = vand.u32 2147483648, %v1761_v50  ;;  %v1786_v9 = vand.u32 2147483647, %v1761_v50  ;;  %vm1782_vm6 = vweird.f32 %v1761_v50  ;;  %1923 = vmatpush.msrb.mxu2 %v2343_v45  ;;  %v2236_v45 = vld [vmem:[%s4188_s1 + $0x5b0] sm:$0xff] }
 0xf33   : > { %v1764_v0 = vsub.f32 1.0, %v1763_v36  ;;  %v2294_v36 = vld [vmem:[%s4189_s2 + $0x500] sm:$0xff] }
 0xf34   : > { %v1789_v12 = vor.u32 1.1754944e-38, %v1788_v8  ;;  %vm1787_vm8 = vcmp.eq.f32.partialorder %v1786_v9, 8.507059e+37  ;;  %1924 = vmatpush.msrb.mxu2 %v2336_v1 }
 0xf35   : > { %v1765_v54 = vmul.f32 %v2466_v55, %v1764_v0  ;;  %v2273_v0 = vld [vmem:[%s4189_s2 + $0x458] sm:$0xff] }
 0xf36   : > { %1925 = vmatpush.msrb.mxu2 %v2329_v47  ;;  %v2235_v47 = vld [vmem:[%s4188_s1 + $0x5a8] sm:$0xff] }
 0xf37   : > { %v1766_v59 = vadd.f32 %v2466_v55, %v1765_v54  ;;  %v2252_v54 = vld [vmem:[%s4189_s2 + $0x3b0] sm:$0xff] }
 0xf38   : > { %v2468_v62 = vpop.eup %2467 }
 0xf39   : > { %v1770_v63 = vsel %vm1769_vm3, %v2466_v55, %v1766_v59  ;;  %v1778_v2 = vmul.f32 %v2468_v62, %v1761_v50  ;;  %vm1783_vm5 = vweird.f32 %v2468_v62  ;;  %v2301_v55 = vld [vmem:[%s4189_s2 + $0x538] sm:$0xff]  ;;  %v2287_v50 = vld [vmem:[%s4189_s2 + $0x4c8] sm:$0xff] }
 0xf3a   : > { %v1775_v7 = vsel %vm1772_vm4, %v1774_v5, %v1770_v63  ;;  %vm1784_vm7 = vmor %vm1782_vm6, %vm1783_vm5 }
 0xf3b   : > { %v1779_v16 = vsub.f32 1.0, %v1778_v2  ;;  %v1776_v19 = vmul.f32 %v2462_v37, %v1775_v7 }
 0xf3d   : > { %v1780_v14 = vmul.f32 %v2468_v62, %v1779_v16  ;;  %2361 = vmatmul.msk.f32.vlgmr.msrb.gmra.mxu3 %vm657_vm11, %v1776_v19 }
 0xf3f   : > { %v1781_v11 = vadd.f32 %v2468_v62, %v1780_v14  ;;  %v4080_v14 = vld [vmem:[%s4190_s3 + $0x8] sm:$0xff] }
 0xf40   : > { %v1914_v9 = vperm.slane %v4080_v14, 4 }
 0xf41   : > { %v1785_v13 = vsel %vm1784_vm7, %v2468_v62, %v1781_v11 }
 0xf42   : > { %v1790_v17 = vsel %vm1787_vm8, %v1789_v12, %v1785_v13  ;;  %v1917_v12 = vperm.slane %v4080_v14, 5 }
 0xf43   : > { %v1791_v21 = vmul.f32 %v3958_v43, %v1790_v17 }
 0xf45   : > { %2362 = vmatmul.msk.f32.gmra.mxu3 %vm657_vm11, %v1791_v21 }
 0xfc0   : > { %v1815_v23 = vpop.f32.mrf.mxu3 }
 0xfc1   : > { %1837 = vmatmul.f32.vlgmr.msrb.gmra.mxu0 %v1815_v23 }
 0xfc8   : > { %v1818_v24 = vpop.f32.mrf.mxu3 }
 0xfc9   : > { %1840 = vmatmul.f32.gmra.mxu0 %v1818_v24 }
0x103e   : > { %v1838_v26 = vpop.f32.mrf.mxu0 }
0x103f   : > { %v1862_v27 = vadd.f32 %v1861_v25, %v1838_v26 }
0x1041   : > { %v1867_v22 = vadd.f32 %v1862_v27, %v3573_v52 }
0x1043   : > { %v4015_v29 = vadd.f32 %v1869_v28, %v1867_v22  ;;  %v2244_v22 = vld [vmem:[%s4188_s1 + $0x5f0] sm:$0xff] }
0x1045   : > { %1872 = vadd.xlane.f32.xlu1 %v4015_v29 }
0x1046   : > { %v1841_v31 = vpop.f32.mrf.mxu0 }
0x1047   : > { %v1865_v32 = vadd.f32 %v1864_v30, %v1841_v31  ;;  %v1920_v30 = vperm.slane %v4080_v14, 7  ;;  %v2243_v31 = vld [vmem:[%s4188_s1 + $0x5e8] sm:$0xff] }
0x1049   : > { %v1868_v33 = vadd.f32 %v1865_v32, %v3576_v58  ;;  %v2242_v32 = vld [vmem:[%s4188_s1 + $0x5e0] sm:$0xff] }
0x104b   : > { %v4019_v34 = vadd.f32 %v1869_v28, %v1868_v33  ;;  %v2245_v28 = vld [vmem:[%s4188_s1 + $0x5f8] sm:$0xff] }
0x104c   : > { %2024 = vmatpush.msra.mxu3 %v2245_v28 }
0x104d   : > { %1874 = vadd.xlane.f32.xlu2 %v4019_v34 }
0x104e   : > { %2025 = vmatpush.msra.mxu3 %v2244_v22 }
0x1050   : > { %2026 = vmatpush.msra.mxu3 %v2243_v31 }
0x1052   : > { %2027 = vmatpush.msra.mxu3 %v2242_v32 }
0x1054   : > { %2028 = vmatpush.msra.mxu3 %v2241_v49 }
0x10b8   : > { %v1873_v52 = vpop.xlane.xlu1 %1872 }
0x10b9   : > { %v1876_v37 = vmul.f32 0.03125, %v1873_v52 }
0x10bb   : > { %v1878_v38 = vsub.f32 %v4015_v29, %v1876_v37  ;;  %v2240_v37 = vld [vmem:[%s4188_s1 + $0x5d0] sm:$0xff] }
0x10bc   : > { %2029 = vmatpush.msra.mxu3 %v2240_v37 }
0x10bd   : > { %v1880_v58 = vmul.f32 %v2662_v15, %v1878_v38 }
0x10bf   : > { %v1882_v39 = vmul.f32 %v1880_v58, %v1880_v58  ;;  %v2239_v58 = vld [vmem:[%s4188_s1 + $0x5c8] sm:$0xff] }
0x10c0   : > { %v1875_v43 = vpop.xlane.xlu2 %1874  ;;  %2030 = vmatpush.msra.mxu3 %v2239_v58 }
0x10c1   : > { %v1877_v46 = vmul.f32 0.03125, %v1875_v43  ;;  %1884 = vadd.xlane.f32.xlu0 %v1882_v39  ;;  %v2238_v43 = vld [vmem:[%s4188_s1 + $0x5c0] sm:$0xff] }
0x10c2   : > { %2031 = vmatpush.msra.mxu3 %v2238_v43 }
0x10c3   : > { %v4031_v60 = vsub.f32 %v4019_v34, %v1877_v46 }
0x10c5   : > { %v1881_v44 = vmul.f32 %v2662_v15, %v4031_v60  ;;  %v2322_v15 = vld [vmem:[%s4189_s2 + $0x5e0] sm:$0xff] }
0x10c6   : > { %1926 = vmatpush.msrb.mxu2 %v2322_v15 }
0x10c7   : > { %v1883_v3 = vmul.f32 %v1881_v44, %v1881_v44 }
0x10c8   : > { %1927 = vmatpush.msrb.mxu2 %v2315_v18  ;;  %v2234_v18 = vld [vmem:[%s4188_s1 + $0x5a0] sm:$0xff] }
0x10c9   : > { %1886 = vadd.xlane.f32.xlu1 %v1883_v3  ;;  %v2237_v3 = vld [vmem:[%s4188_s1 + $0x5b8] sm:$0xff] }
0x10ca   : > { %1928 = vmatpush.msrb.mxu2 %v2308_v48  ;;  %2032 = vmatpush.msra.mxu3 %v2237_v3 }
0x10cc   : > { %1929 = vmatpush.msrb.mxu2 %v2301_v55  ;;  %2033 = vmatpush.msra.mxu3 %v2236_v45 }
0x10ce   : > { %1930 = vmatpush.msrb.mxu2 %v2294_v36  ;;  %2034 = vmatpush.msra.mxu3 %v2235_v47  ;;  %v2233_v36 = vld [vmem:[%s4188_s1 + $0x598] sm:$0xff] }
0x10d0   : > { %1931 = vmatpush.msrb.mxu2 %v2287_v50  ;;  %2035 = vmatpush.msra.mxu3 %v2234_v18 }
0x10d2   : > { %1932 = vmatpush.msrb.mxu2 %v2280_v51  ;;  %2036 = vmatpush.msra.mxu3 %v2233_v36 }
0x10d4   : > { %1933 = vmatpush.msrb.mxu2 %v2273_v0  ;;  %v2232_v0 = vld [vmem:[%s4188_s1 + $0x590] sm:$0xff] }
0x10d5   : > { %2037 = vmatpush.msra.mxu3 %v2232_v0 }
0x10d6   : > { %1934 = vmatpush.msrb.mxu2 %v2266_v53 }
0x10d8   : > { %1935 = vmatpush.msrb.mxu2 %v2259_v42 }
0x10da   : > { %1936 = vmatpush.msrb.mxu2 %v2252_v54  ;;  %v2231_v54 = vld [vmem:[%s4188_s1 + $0x588] sm:$0xff] }
0x10db   : > { %2038 = vmatpush.msra.mxu3 %v2231_v54 }
0x1134   : > { %v1885_v56 = vpop.xlane.xlu0 %1884 }
0x1135   : > { %v1888_v57 = vmul.f32 0.03125, %v1885_v56 }
0x1137   : > { %v1890_v59 = vadd.f32 1e-05, %v1888_v57 }
0x1139   : > { %2469 = vrsqrt.f32 %v1890_v59  ;;  %vm1898_vm9 = vweird.f32 %v1890_v59 }
0x113c   : > { %v1887_v61 = vpop.xlane.xlu1 %1886 }
0x113d   : > { %v1889_v62 = vmul.f32 0.03125, %v1887_v61 }
0x113f   : > { %v2470_v5 = vpop.eup %2469  ;;  %v1891_v63 = vadd.f32 1e-05, %v1889_v62 }
0x1140   : > { %v1893_v2 = vmul.f32 %v2470_v5, %v1890_v59  ;;  %vm1899_vm11 = vweird.f32 %v2470_v5  ;;  %v2230_v59 = vld [vmem:[%s4188_s1 + $0x580] sm:$0xff] }
0x1141   : > { %2471 = vrsqrt.f32 %v1891_v63  ;;  %vm1900_vm10 = vmor %vm1898_vm9, %vm1899_vm11  ;;  %vm1908_vm13 = vweird.f32 %v1891_v63  ;;  %2039 = vmatpush.msra.mxu3 %v2230_v59 }
0x1142   : > { %v1894_v4 = vmul.f32 %v2470_v5, %v1893_v2 }
0x1144   : > { %v1895_v7 = vmul.f32 0.5, %v1894_v4 }
0x1146   : > { %v1896_v16 = vsub.f32 1.5, %v1895_v7 }
0x1147   : > { %v2472_v19 = vpop.eup %2471 }
0x1148   : > { %v1897_v6 = vmul.f32 %v2470_v5, %v1896_v16  ;;  %v1903_v8 = vmul.f32 %v2472_v19, %v1891_v63  ;;  %vm1909_vm12 = vweird.f32 %v2472_v19 }
0x1149   : > { %vm1910_vm14 = vmor %vm1908_vm13, %vm1909_vm12 }
0x114a   : > { %v1901_v10 = vsel %vm1900_vm10, %v2470_v5, %v1897_v6  ;;  %v1904_v11 = vmul.f32 %v2472_v19, %v1903_v8 }
0x114b   : > { %v1912_v40 = vmul.f32 %v1901_v10, %v1878_v38 }
0x114c   : > { %v1905_v13 = vmul.f32 0.5, %v1904_v11 }
0x114d   : > { %v1915_v17 = vmul.f32 %v1914_v9, %v1912_v40 }
0x114e   : > { %v1906_v21 = vsub.f32 1.5, %v1905_v13 }
0x114f   : > { %v1918_v41 = vadd.f32 %v1917_v12, %v1915_v17 }
0x1150   : > { %v1907_v23 = vmul.f32 %v2472_v19, %v1906_v21 }
0x1151   : > { %1937 = vmatmul.f32.vlgmr.msrb.gmra.mxu2 %v1918_v41 }
0x1152   : > { %v1911_v24 = vsel %vm1910_vm14, %v2472_v19, %v1907_v23 }
0x1153   : > { %v1913_v25 = vmul.f32 %v1911_v24, %v4031_v60 }
0x1155   : > { %v1916_v26 = vmul.f32 %v1914_v9, %v1913_v25 }
0x1157   : > { %v1919_v27 = vadd.f32 %v1917_v12, %v1916_v26 }
0x1159   : > { %1940 = vmatmul.f32.gmra.mxu2 %v1919_v27 }
0x11d4   : > { %v1938_v33 = vpop.f32.mrf.mxu2 }
0x11d5   : > { %v4098_v35 = vadd.f32 %v1938_v33, %v1920_v30 }
0x11d7   : > { %v4104_v52 = vmul.f32 0.70710677, %v4098_v35 }
0x11d9   : > { %v1952_v38 = vand.u32 2147483647, %v4104_v52  ;;  %vm1948_vm7 = vcmp.ge.f32.partialorder %v4104_v52, 0.0 }
0x11db   : > { %v1954_v39 = vmul.f32 0.3275911, %v1952_v38  ;;  %v2006_v4 = vsub.f32 0.0, %v1952_v38 }
0x11dc   : > { %v1941_v46 = vpop.f32.mrf.mxu2 }
0x11dd   : > { %v1956_v60 = vadd.f32 1.0, %v1954_v39  ;;  %v4116_v44 = vadd.f32 %v1941_v46, %v1920_v30  ;;  %v2008_v9 = vmul.f32 %v2006_v4, %v1952_v38 }
0x11df   : > { %2473 = vrcp.f32 %v1956_v60  ;;  %v4125_v1 = vmul.f32 0.70710677, %v4116_v44  ;;  %v1969_v42 = vand.u32 2147483648, %v1956_v60  ;;  %v1967_v57 = vand.u32 2147483647, %v1956_v60 }
0x11e0   : > { %vm1963_vm0 = vweird.f32 %v1956_v60  ;;  %v2010_v21 = vmul.f32 1.442695, %v2008_v9 }
0x11e1   : > { %v1953_v15 = vand.u32 2147483647, %v4125_v1  ;;  %v1970_v62 = vor.u32 1.1754944e-38, %v1969_v42  ;;  %vm1968_vm2 = vcmp.eq.f32.partialorder %v1967_v57, 8.507059e+37  ;;  %vm1949_vm8 = vcmp.ge.f32.partialorder %v4125_v1, 0.0 }
0x11e3   : > { %v1955_v48 = vmul.f32 0.3275911, %v1953_v15  ;;  %v2007_v24 = vsub.f32 0.0, %v1953_v15 }
0x11e5   : > { %v2474_v55 = vpop.eup %2473  ;;  %v1957_v51 = vadd.f32 1.0, %v1955_v48  ;;  %v2009_v30 = vmul.f32 %v2007_v24, %v1953_v15  ;;  %v1944_v15 = vmul.f32 0.5, %v4098_v35  ;;  %v2049_v35 = vperm.slane %v4080_v14, 6 }
0x11e6   : > { %v1959_v50 = vmul.f32 %v2474_v55, %v1956_v60  ;;  %vm1964_vm15 = vweird.f32 %v2474_v55  ;;  %v1950_v60 = vsel %vm1948_vm7, 1.0, %v2548_v20 }
0x11e7   : > { %2475 = vrcp.f32 %v1957_v51  ;;  %vm1965_vm1 = vmor %vm1963_vm0, %vm1964_vm15  ;;  %v1984_v8 = vand.u32 2147483648, %v1957_v51  ;;  %v1982_v11 = vand.u32 2147483647, %v1957_v51  ;;  %vm1978_vm4 = vweird.f32 %v1957_v51 }
0x11e8   : > { %v1960_v53 = vsub.f32 1.0, %v1959_v50  ;;  %2477 = vpow2.f32 %v2010_v21  ;;  %v2012_v37 = vmul.f32 1.442695, %v2009_v30 }
0x11e9   : > { %v1985_v17 = vor.u32 1.1754944e-38, %v1984_v8  ;;  %vm1983_vm6 = vcmp.eq.f32.partialorder %v1982_v11, 8.507059e+37 }
0x11ea   : > { %v1961_v56 = vmul.f32 %v2474_v55, %v1960_v53  ;;  %2479 = vpow2.f32 %v2012_v37  ;;  %v1945_v53 = vmul.f32 0.5, %v4116_v44 }
0x11ec   : > { %v1962_v61 = vadd.f32 %v2474_v55, %v1961_v56 }
0x11ed   : > { %v2476_v5 = vpop.eup %2475 }
0x11ee   : > { %v1966_v63 = vsel %vm1965_vm1, %v2474_v55, %v1962_v61  ;;  %v1974_v7 = vmul.f32 %v2476_v5, %v1957_v51  ;;  %vm1979_vm3 = vweird.f32 %v2476_v5  ;;  %v2478_v38 = vpop.eup %2477  ;;  %v1951_v51 = vsel %vm1949_vm8, 1.0, %v2548_v20 }
0x11ef   : > { %v1971_v2 = vsel %vm1968_vm2, %v1970_v62, %v1966_v63  ;;  %vm1980_vm5 = vmor %vm1978_vm4, %vm1979_vm3 }
0x11f0   : > { %v1988_v16 = vmul.f32 1.0614054, %v1971_v2  ;;  %v1975_v19 = vsub.f32 1.0, %v1974_v7  ;;  %v2480_v55 = vpop.eup %2479 }
0x11f2   : > { %v2363_v6 = vadd.f32 -1.4531521, %v1988_v16  ;;  %v1976_v10 = vmul.f32 %v2476_v5, %v1975_v19 }
0x11f4   : > { %v1992_v40 = vmul.f32 %v2363_v6, %v1971_v2  ;;  %v1977_v12 = vadd.f32 %v2476_v5, %v1976_v10 }
0x11f6   : > { %v1994_v13 = vadd.f32 1.4214138, %v1992_v40  ;;  %v1981_v41 = vsel %vm1980_vm5, %v2476_v5, %v1977_v12 }
0x11f7   : > { %v1986_v25 = vsel %vm1983_vm6, %v1985_v17, %v1981_v41 }
0x11f8   : > { %v1996_v23 = vmul.f32 %v1994_v13, %v1971_v2  ;;  %v1989_v26 = vmul.f32 1.0614054, %v1986_v25 }
0x11fa   : > { %v2365_v27 = vadd.f32 -0.28449672, %v1996_v23  ;;  %v2364_v28 = vadd.f32 -1.4531521, %v1989_v26 }
0x11fc   : > { %v2000_v22 = vmul.f32 %v2365_v27, %v1971_v2  ;;  %v1993_v31 = vmul.f32 %v2364_v28, %v1986_v25 }
0x11fe   : > { %v2002_v32 = vadd.f32 0.2548296, %v2000_v22  ;;  %v1995_v33 = vadd.f32 1.4214138, %v1993_v31 }
0x1200   : > { %v2004_v49 = vmul.f32 %v2002_v32, %v1971_v2  ;;  %v1997_v58 = vmul.f32 %v1995_v33, %v1986_v25 }
0x1202   : > { %v2014_v39 = vmul.f32 %v2478_v38, %v2004_v49  ;;  %v2366_v43 = vadd.f32 -0.28449672, %v1997_v58 }
0x1204   : > { %v2016_v46 = vsub.f32 1.0, %v2014_v39  ;;  %v2001_v3 = vmul.f32 %v2366_v43, %v1986_v25 }
0x1206   : > { %v2018_v45 = vmul.f32 %v2016_v46, %v1950_v60  ;;  %v2003_v47 = vadd.f32 0.2548296, %v2001_v3 }
0x1208   : > { %v2020_v18 = vadd.f32 1.0, %v2018_v45  ;;  %v2005_v48 = vmul.f32 %v2003_v47, %v1986_v25 }
0x120a   : > { %v2022_v36 = vmul.f32 %v2020_v18, %v1944_v15  ;;  %v2015_v52 = vmul.f32 %v2480_v55, %v2005_v48 }
0x120c   : > { %2040 = vmatmul.f32.vlgmr.msra.gmra.mxu3 %v2022_v36  ;;  %v2017_v50 = vsub.f32 1.0, %v2015_v52 }
0x120e   : > { %v2019_v0 = vmul.f32 %v2017_v50, %v1951_v51 }
0x1210   : > { %v2021_v42 = vadd.f32 1.0, %v2019_v0 }
0x1212   : > { %v2023_v54 = vmul.f32 %v2021_v42, %v1945_v53 }
0x1214   : > { %2043 = vmatmul.f32.gmra.mxu3 %v2023_v54 }
0x128f   : > { %v2041_v56 = vpop.f32.mrf.mxu3 }
0x1290   : > { %v2047_v57 = vadd.f32 %v2041_v56, %v4015_v29 }
0x1292   : > { %v2050_v1 = vadd.f32 %v2049_v35, %v2047_v57 }
0x1294   : > { %2052 = vst [vmem:[%s190_s22] sm:$0xff] %v2050_v1 }
0x1297   : > { %v2044_v20 = vpop.f32.mrf.mxu3 }
0x1298   : > { %v2048_v44 = vadd.f32 %v2044_v20, %v4019_v34 }
0x129a   : > { %v2051_v59 = vadd.f32 %v2049_v35, %v2048_v44 }
0x129c   : > { %2053 = vst [vmem:[%s190_s22 + $0x8] sm:$0xff] %v2051_v59 }
0x129d   : > { %2510 = shalt.err (!%p2507_p3)
}
0x129e   : > { %s2549_s13 = smov 128   ;;  %s2550_s14 = smov 8  }
0x129f   : > { %2374 = dma.vmem_to_hbm [thread:$0]  (%p2614_p5), %s2068_s29, 256, %s2070_s30, %s2055_s6, %s2549_s13, %s2549_s13, %s2550_s14  }
0x12a0 PF: > { %p2380_p4 = scmp.ge.s32.totalorder %s2545_s18, 2  ;;  %s2084_s9 = sand.u32 1, %s2533_s15  }
0x12a1   : > { %s2085_s20 = scalar_lea.sflag [#allocation3], %s2084_s9 }
0x12a2   : > { %p2377_p7 = pnand %p2380_p4, %p2618_p6 }
0x12a4   : > { %p2378_p8 = pneg %p2377_p7 }
0x12a6   : > { %2528 = dma.done.wait (%p2378_p8), %s2085_s20, 256  }
0x12a7   : > { %2530 = vsyncadd (%p2378_p8), %s2085_s20, 4294967040  ;;  %p14_p9 = scmp.ge.s32.totalorder %s2601_s21, 4   ;;  %s4194_s15 = smov %s2537_s16 }
0x12a8   : > { %s4195_s16 = smov %s2541_s17  ;;  %s4196_s17 = smov %s2612_s24 }
0x12a9   : > { %s4197_s18 = smov %s2601_s21  ;;  %16 = sbr.rel (!%p14_p9) target bundleno = 3 (0x3), region = 74 }
0x12ae   :  { %2091 = vsyncpa [#allocation3], 1 }
0x12af   :  { %2093 = vsyncpa [#allocation3 + $0x1], 1 }

</bundles_post_ra>
